<compile_context>
chip_gen: v7x
topology: tpu7x:2x2x1
jax: 0.10.0
libtpu: 0.0.40
codegen_flags: <defaults>
</compile_context>

<pallas_src>
import functools

import numpy as np
import jax
import jax.numpy as jnp
from jax.experimental import pallas as pl
from jax.experimental.pallas import tpu as pltpu


# -----------------------------------------------------------------------------
# Fused Pallas kernel: one grid step == one batch block, full TNet forward.
# -----------------------------------------------------------------------------
def _tnet_kernel(pts_ref, idx_ref, w1_ref, w2_ref, w3_ref, w4_ref, w5_ref,
                 w6_ref, bias_ref, out_ref, *, bb, n, k, c):
    f32 = jnp.float32
    bf16 = jnp.bfloat16

    pts = pts_ref[0]                                   # (bb*n, c)   bf16
    idx = idx_ref[0]                                   # (bb*k*n, 1) int32 (block-local)

    rows = bb * k * n
    # One-hot neighbour gather as an MXU matmul (no dynamic gather needed).
    # TODO(synk): at real DGCNN sizes (N=1024, K=20) replace this with a
    # row-gather DMA and chunk the K*N rows over an extra 'arbitrary' grid
    # axis carrying the running max (v7x has only 64 MiB VMEM).
    cols = jax.lax.broadcasted_iota(jnp.int32, (rows, bb * n), 1)
    onehot = jnp.where(cols == idx, 1.0, 0.0).astype(bf16)        # (rows, bb*n)
    nbr = jnp.dot(onehot, pts, preferred_element_type=f32)        # (rows, c) exact

    central = jnp.broadcast_to(
        pts.reshape(bb, 1, n, c), (bb, k, n, c)).reshape(rows, c).astype(f32)
    edge = jnp.concatenate([central, nbr - central], axis=-1).astype(bf16)

    # EdgeConv: one (bb*K*N, 2C) @ (2C, C1) matmul for the whole batch block.
    h = jnp.maximum(jnp.dot(edge, w1_ref[...],
                            preferred_element_type=f32), 0.0)     # (rows, C1)
    h = jnp.maximum(jnp.dot(h.astype(bf16), w2_ref[...],
                            preferred_element_type=f32), 0.0)     # (rows, C2)

    # Max over K: reshape + reduce (no per-slice relayouts).
    c2 = h.shape[-1]
    hm = jnp.max(h.reshape(bb, k, n, c2), axis=1).reshape(bb * n, c2)

    # mlp_local + max over N -> per-sample global feature.
    loc = jnp.maximum(jnp.dot(hm.astype(bf16), w3_ref[...],
                              preferred_element_type=f32), 0.0)   # (bb*n, CL)
    cl = loc.shape[-1]
    g = jnp.max(loc.reshape(bb, n, cl), axis=1)                   # (bb, CL)

    # mlp_global + final linear, batched over the whole block (bb rows).
    h4 = jnp.maximum(jnp.dot(g.astype(bf16), w4_ref[...],
                             preferred_element_type=f32), 0.0)    # (bb, G0)
    h5 = jnp.maximum(jnp.dot(h4.astype(bf16), w5_ref[...],
                             preferred_element_type=f32), 0.0)    # (bb, G1)
    # bias already contains linear bias + flattened identity, padded to 128.
    y = jnp.dot(h5.astype(bf16), w6_ref[...],
                preferred_element_type=f32) + bias_ref[...]       # (bb, out_pad)
    out_ref[0] = y


# -----------------------------------------------------------------------------
# Plain-JAX glue: knn indices, parameters, wrapper, reference.
# -----------------------------------------------------------------------------
def _knn_indices(x, k):
    """x: (B, C, N) -> (B, K, N) int32 knn indices (self included, remove=False)."""
    # TODO(synk): jax.lax.top_k (sorting) has no clean Mosaic lowering; the kNN
    # index selection stays in plain JAX (it is under torch.no_grad upstream).
    xt = jnp.transpose(x, (0, 2, 1))                               # (B, N, C)
    sq = jnp.sum(xt * xt, axis=-1)                                 # (B, N)
    inner = jnp.einsum('bnc,bmc->bnm', xt, xt)                     # (B, N, N)
    pdist = sq[:, :, None] + sq[:, None, :] - 2.0 * inner
    _, knn = jax.lax.top_k(-pdist, k)                              # (B, N, K)
    return jnp.transpose(knn, (0, 2, 1)).astype(jnp.int32)         # (B, K, N)


def make_params(key, in_channels, out_channels, conv_channels,
                local_channels, global_channels):
    bn_scale = 1.0 / np.sqrt(1.0 + 1e-5)   # eval-mode BN with default stats

    def xavier(k_, fan_in, fan_out):
        bound = float(np.sqrt(6.0 / (fan_in + fan_out)))
        return jax.random.uniform(k_, (fan_in, fan_out), jnp.float32, -bound, bound)

    keys = jax.random.split(key, 5)
    c2 = 2 * in_channels
    w1 = xavier(keys[0], c2, conv_channels[0]) * bn_scale
    w2 = xavier(keys[1], conv_channels[0], conv_channels[1]) * bn_scale
    w3 = xavier(keys[2], conv_channels[1], local_channels[0]) * bn_scale
    w4 = xavier(keys[3], local_channels[0], global_channels[0]) * bn_scale
    w5 = xavier(keys[4], global_channels[0], global_channels[1]) * bn_scale
    # final linear: zero-initialized weight and bias (as in TNet.init_weights)
    w6 = jnp.zeros((global_channels[1], out_channels * in_channels), jnp.float32)
    b6 = jnp.zeros((1, out_channels * in_channels), jnp.float32)
    return (w1, w2, w3, w4, w5, w6, b6)


def tnet_forward(x, params, k, in_channels, out_channels, batch_block=2):
    """x: (B, in_channels, N) -> (B, out_channels, in_channels)."""
    w1, w2, w3, w4, w5, w6, b6 = params
    B, C, N = x.shape
    out_dim = out_channels * in_channels
    out_pad = ((out_dim + 127) // 128) * 128            # lane-dense output slab
    bf = jnp.bfloat16

    bb = max(1, min(batch_block, B))
    b_pad = ((B + bb - 1) // bb) * bb
    num_blocks = b_pad // bb

    xt = jnp.transpose(x, (0, 2, 1))                     # (B, N, C) -- small
    idx = _knn_indices(x, k)                             # (B, K, N)
    if b_pad != B:
        xt = jnp.concatenate([xt, jnp.zeros((b_pad - B, N, C), xt.dtype)], 0)
        idx = jnp.concatenate([idx, jnp.zeros((b_pad - B, k, N), idx.dtype)], 0)

    # Points in bf16, grouped per batch block; indices offset to block-local rows.
    pts_in = xt.astype(bf).reshape(num_blocks, bb * N, C)
    off = (jnp.arange(b_pad, dtype=jnp.int32) % bb) * N
    idx_in = (idx.reshape(b_pad, k * N) + off[:, None]).reshape(
        num_blocks, bb * k * N, 1)

    # bf16 weights; fold final-linear bias + flattened identity; pad to 128 lanes.
    eye_flat = jnp.eye(out_channels, in_channels, dtype=jnp.float32).reshape(1, out_dim)
    w6p = jnp.zeros((w6.shape[0], out_pad), jnp.float32).at[:, :out_dim].set(w6)
    biasp = jnp.zeros((1, out_pad), jnp.float32).at[:, :out_dim].set(b6 + eye_flat)
    w1b, w2b, w3b, w4b, w5b, w6b = (w.astype(bf) for w in (w1, w2, w3, w4, w5, w6p))

    kern = functools.partial(_tnet_kernel, bb=bb, n=N, k=k, c=C)

    def call(weight_bufs):
        def wspec(shape):
            if weight_bufs == 1:
                # constant index map -> one buffer is enough; saves VMEM.
                return pl.BlockSpec(shape, lambda s: (0, 0),
                                    pipeline_mode=pl.Buffered(1))
            return pl.BlockSpec(shape, lambda s: (0, 0))

        return pl.pallas_call(
            kern,
            out_shape=jax.ShapeDtypeStruct((num_blocks, bb, out_pad), jnp.float32),
            grid=(num_blocks,),
            in_specs=[
                pl.BlockSpec((1, bb * N, C), lambda s: (s, 0, 0)),
                pl.BlockSpec((1, bb * k * N, 1), lambda s: (s, 0, 0)),
                wspec(w1b.shape), wspec(w2b.shape), wspec(w3b.shape),
                wspec(w4b.shape), wspec(w5b.shape), wspec(w6b.shape),
                wspec(biasp.shape),
            ],
            out_specs=pl.BlockSpec((1, bb, out_pad), lambda s: (s, 0, 0)),
            compiler_params=pltpu.CompilerParams(
                dimension_semantics=("parallel",),
                vmem_limit_bytes=32 * 1024 * 1024),
        )(pts_in, idx_in, w1b, w2b, w3b, w4b, w5b, w6b, biasp)

    try:
        y = call(1)
        y.block_until_ready()
    except Exception:
        # TODO(synk): pl.Buffered(1) not accepted by this jax build; fall back
        # to default (double) buffering for the weight operands.
        y = call(2)

    y = y.reshape(b_pad, out_pad)[:B, :out_dim]
    return y.reshape(B, out_channels, in_channels)


def tnet_reference(x, params, k, in_channels, out_channels):
    """Pure-JAX reference mirroring the PyTorch forward with the same
    bf16-matmul / f32-accumulate precision recipe as the kernel."""
    w1, w2, w3, w4, w5, w6, b6 = params
    B = x.shape[0]
    bf, f32 = jnp.bfloat16, jnp.float32

    xt = jnp.transpose(x, (0, 2, 1))                     # (B, N, C)
    idx = _knn_indices(x, k)                             # (B, K, N)
    pts = xt.astype(bf)
    nbr = jax.vmap(lambda p, i: p[i])(pts, idx)          # (B, K, N, C)
    central = jnp.broadcast_to(pts[:, None], nbr.shape).astype(f32)
    e = jnp.concatenate([central, nbr.astype(f32) - central], axis=-1).astype(bf)

    h = jax.nn.relu(jnp.einsum('bknc,cd->bknd', e, w1.astype(bf),
                               preferred_element_type=f32))
    h = jax.nn.relu(jnp.einsum('bknc,cd->bknd', h.astype(bf), w2.astype(bf),
                               preferred_element_type=f32))
    h = jnp.max(h, axis=1)                               # max over K
    h = jax.nn.relu(jnp.einsum('bnc,cd->bnd', h.astype(bf), w3.astype(bf),
                               preferred_element_type=f32))
    g = jnp.max(h, axis=1)                               # max over N
    h = jax.nn.relu(jnp.dot(g.astype(bf), w4.astype(bf), preferred_element_type=f32))
    h = jax.nn.relu(jnp.dot(h.astype(bf), w5.astype(bf), preferred_element_type=f32))
    y = jnp.dot(h.astype(bf), w6.astype(bf), preferred_element_type=f32) + b6
    y = y.reshape(B, out_channels, in_channels) + jnp.eye(out_channels, in_channels)
    return y


# -----------------------------------------------------------------------------
if __name__ == "__main__":
    # Small-but-consistent shapes: B=4, in=out=3, N=32 points, k=4 neighbors,
    # conv_channels=(16, 32), local_channels=(64,), global_channels=(32, 16).
    # batch_block=2 -> grid of 2 "parallel" steps (keeps both v7x TCs busy).
    B, IN_C, OUT_C, N, K = 4, 3, 3, 32, 4
    CONV_CH, LOCAL_CH, GLOBAL_CH = (16, 32), (64,), (32, 16)

    key = jax.random.PRNGKey(0)
    k_x, k_p, k_w6, k_b6 = jax.random.split(key, 4)
    x = jax.random.normal(k_x, (B, IN_C, N), dtype=jnp.float32)
    params = make_params(k_p, IN_C, OUT_C, CONV_CH, LOCAL_CH, GLOBAL_CH)

    # The module's init_weights zeroes the final linear (output == identity);
    # substitute small random w6/b6 purely so the numerical check exercises the
    # full forward path.  Forward semantics are unchanged.
    w1, w2, w3, w4, w5, _, _ = params
    w6 = 0.01 * jax.random.normal(k_w6, (GLOBAL_CH[-1], OUT_C * IN_C), jnp.float32)
    b6 = 0.01 * jax.random.normal(k_b6, (1, OUT_C * IN_C), jnp.float32)
    params = (w1, w2, w3, w4, w5, w6, b6)

    y = tnet_forward(x, params, K, IN_C, OUT_C, batch_block=2)
    y = jax.block_until_ready(y)

    y_ref = tnet_reference(x, params, K, IN_C, OUT_C)
    np.testing.assert_allclose(np.asarray(y), np.asarray(y_ref),
                               rtol=1e-3, atol=1e-3)
    assert y.shape == (B, OUT_C, IN_C)

    print("KERNEL_OK")
</pallas_src>

<mosaic_0001>
module attributes {stable_mosaic.version = 11 : i64} {
  func.func @_tnet_kernel(%arg0: i32, %arg1: memref<1x64x3xbf16, #tpu.memory_space<vmem>>, %arg2: memref<1x256x1xi32, #tpu.memory_space<vmem>>, %arg3: memref<6x16xbf16, #tpu.memory_space<vmem>>, %arg4: memref<16x32xbf16, #tpu.memory_space<vmem>>, %arg5: memref<32x64xbf16, #tpu.memory_space<vmem>>, %arg6: memref<64x32xbf16, #tpu.memory_space<vmem>>, %arg7: memref<32x16xbf16, #tpu.memory_space<vmem>>, %arg8: memref<16x128xbf16, #tpu.memory_space<vmem>>, %arg9: memref<1x128xf32, #tpu.memory_space<vmem>>, %arg10: memref<1x2x128xf32, #tpu.memory_space<vmem>>) attributes {dimension_semantics = [#tpu.dimension_semantics<parallel>], iteration_bounds = array<i64: 2>, scalar_prefetch = 0 : i64, scratch_operands = 0 : i64, tpu.core_type = #tpu.core_type<tc>, window_params = [{transform_indices = @transform_0, window_bounds = array<i64: 1, 64, 3>}, {transform_indices = @transform_1, window_bounds = array<i64: 1, 256, 1>}, {pipeline_mode = #tpu.pipeline_mode<synchronous>, transform_indices = @transform_2, window_bounds = array<i64: 6, 16>}, {pipeline_mode = #tpu.pipeline_mode<synchronous>, transform_indices = @transform_3, window_bounds = array<i64: 16, 32>}, {pipeline_mode = #tpu.pipeline_mode<synchronous>, transform_indices = @transform_4, window_bounds = array<i64: 32, 64>}, {pipeline_mode = #tpu.pipeline_mode<synchronous>, transform_indices = @transform_5, window_bounds = array<i64: 64, 32>}, {pipeline_mode = #tpu.pipeline_mode<synchronous>, transform_indices = @transform_6, window_bounds = array<i64: 32, 16>}, {pipeline_mode = #tpu.pipeline_mode<synchronous>, transform_indices = @transform_7, window_bounds = array<i64: 16, 128>}, {pipeline_mode = #tpu.pipeline_mode<synchronous>, transform_indices = @transform_8, window_bounds = array<i64: 1, 128>}, {transform_indices = @transform_9, window_bounds = array<i64: 1, 2, 128>}]} {
    %c0 = arith.constant 0 : index
    %c0_0 = arith.constant 0 : index
    %c0_1 = arith.constant 0 : index
    %0 = vector.load %arg1[%c0, %c0_0, %c0_1] : memref<1x64x3xbf16, #tpu.memory_space<vmem>>, vector<1x64x3xbf16>
    %1 = vector.shape_cast %0 : vector<1x64x3xbf16> to vector<64x3xbf16>
    %c0_2 = arith.constant 0 : index
    %c0_3 = arith.constant 0 : index
    %c0_4 = arith.constant 0 : index
    %2 = vector.load %arg2[%c0_2, %c0_3, %c0_4] : memref<1x256x1xi32, #tpu.memory_space<vmem>>, vector<1x256x1xi32>
    %3 = vector.shape_cast %2 : vector<1x256x1xi32> to vector<256x1xi32>
    %4 = tpu.iota {dimensions = array<i32: 1>} : vector<256x64xi32>
    %5 = vector.broadcast %3 : vector<256x1xi32> to vector<256x64xi32>
    %6 = arith.cmpi eq, %4, %5 : vector<256x64xi32>
    %cst = arith.constant 1.000000e+00 : f32
    %cst_5 = arith.constant 0.000000e+00 : f32
    %7 = vector.broadcast %cst : f32 to vector<256x64xf32>
    %8 = vector.broadcast %cst_5 : f32 to vector<256x64xf32>
    %9 = arith.select %6, %7, %8 : vector<256x64xi1>, vector<256x64xf32>
    %10 = arith.truncf %9 : vector<256x64xf32> to vector<256x64xbf16>
    %cst_6 = arith.constant dense<0.000000e+00> : vector<256x3xf32>
    %11 = tpu.matmul %10, %1, %cst_6 {dimension_numbers = #tpu.dot_dimension_numbers<[1], [0], [0], [1], [0, 0, 1, 1], [], []>} : vector<256x64xbf16>, vector<64x3xbf16>, vector<256x3xf32> -> vector<256x3xf32>
    %12 = vector.shape_cast %1 : vector<64x3xbf16> to vector<2x1x32x3xbf16>
    %13 = vector.shape_cast %12 : vector<2x1x32x3xbf16> to vector<2x1x32x3xbf16>
    %14 = vector.broadcast %13 : vector<2x1x32x3xbf16> to vector<2x4x32x3xbf16>
    %15 = vector.shape_cast %14 : vector<2x4x32x3xbf16> to vector<256x3xbf16>
    %16 = arith.extf %15 : vector<256x3xbf16> to vector<256x3xf32>
    %17 = arith.subf %11, %16 : vector<256x3xf32>
    %18 = tpu.concatenate %16, %17 in 1 : vector<256x3xf32>, vector<256x3xf32> -> vector<256x6xf32>
    %19 = arith.truncf %18 : vector<256x6xf32> to vector<256x6xbf16>
    %c0_7 = arith.constant 0 : index
    %c0_8 = arith.constant 0 : index
    %20 = vector.load %arg3[%c0_7, %c0_8] : memref<6x16xbf16, #tpu.memory_space<vmem>>, vector<6x16xbf16>
    %cst_9 = arith.constant dense<0.000000e+00> : vector<256x16xf32>
    %21 = tpu.matmul %19, %20, %cst_9 {dimension_numbers = #tpu.dot_dimension_numbers<[1], [0], [0], [1], [0, 0, 1, 1], [], []>} : vector<256x6xbf16>, vector<6x16xbf16>, vector<256x16xf32> -> vector<256x16xf32>
    %cst_10 = arith.constant 0.000000e+00 : f32
    %22 = vector.broadcast %cst_10 : f32 to vector<256x16xf32>
    %23 = arith.maximumf %21, %22 : vector<256x16xf32>
    %24 = arith.truncf %23 : vector<256x16xf32> to vector<256x16xbf16>
    %c0_11 = arith.constant 0 : index
    %c0_12 = arith.constant 0 : index
    %25 = vector.load %arg4[%c0_11, %c0_12] : memref<16x32xbf16, #tpu.memory_space<vmem>>, vector<16x32xbf16>
    %cst_13 = arith.constant dense<0.000000e+00> : vector<256x32xf32>
    %26 = tpu.matmul %24, %25, %cst_13 {dimension_numbers = #tpu.dot_dimension_numbers<[1], [0], [0], [1], [0, 0, 1, 1], [], []>} : vector<256x16xbf16>, vector<16x32xbf16>, vector<256x32xf32> -> vector<256x32xf32>
    %cst_14 = arith.constant 0.000000e+00 : f32
    %27 = vector.broadcast %cst_14 : f32 to vector<256x32xf32>
    %28 = arith.maximumf %26, %27 : vector<256x32xf32>
    %29 = vector.shape_cast %28 : vector<256x32xf32> to vector<2x4x32x32xf32>
    %cst_15 = arith.constant dense<0xFF800000> : vector<2x32x32xf32>
    %30 = vector.multi_reduction <maximumf>, %29, %cst_15 [1] : vector<2x4x32x32xf32> to vector<2x32x32xf32>
    %31 = vector.shape_cast %30 : vector<2x32x32xf32> to vector<64x32xf32>
    %32 = arith.truncf %31 : vector<64x32xf32> to vector<64x32xbf16>
    %c0_16 = arith.constant 0 : index
    %c0_17 = arith.constant 0 : index
    %33 = vector.load %arg5[%c0_16, %c0_17] : memref<32x64xbf16, #tpu.memory_space<vmem>>, vector<32x64xbf16>
    %cst_18 = arith.constant dense<0.000000e+00> : vector<64x64xf32>
    %34 = tpu.matmul %32, %33, %cst_18 {dimension_numbers = #tpu.dot_dimension_numbers<[1], [0], [0], [1], [0, 0, 1, 1], [], []>} : vector<64x32xbf16>, vector<32x64xbf16>, vector<64x64xf32> -> vector<64x64xf32>
    %cst_19 = arith.constant 0.000000e+00 : f32
    %35 = vector.broadcast %cst_19 : f32 to vector<64x64xf32>
    %36 = arith.maximumf %34, %35 : vector<64x64xf32>
    %37 = vector.shape_cast %36 : vector<64x64xf32> to vector<2x32x64xf32>
    %cst_20 = arith.constant dense<0xFF800000> : vector<2x64xf32>
    %38 = vector.multi_reduction <maximumf>, %37, %cst_20 [1] : vector<2x32x64xf32> to vector<2x64xf32>
    %39 = arith.truncf %38 : vector<2x64xf32> to vector<2x64xbf16>
    %c0_21 = arith.constant 0 : index
    %c0_22 = arith.constant 0 : index
    %40 = vector.load %arg6[%c0_21, %c0_22] : memref<64x32xbf16, #tpu.memory_space<vmem>>, vector<64x32xbf16>
    %cst_23 = arith.constant dense<0.000000e+00> : vector<2x32xf32>
    %41 = tpu.matmul %39, %40, %cst_23 {dimension_numbers = #tpu.dot_dimension_numbers<[1], [0], [0], [1], [0, 0, 1, 1], [], []>} : vector<2x64xbf16>, vector<64x32xbf16>, vector<2x32xf32> -> vector<2x32xf32>
    %cst_24 = arith.constant 0.000000e+00 : f32
    %42 = vector.broadcast %cst_24 : f32 to vector<2x32xf32>
    %43 = arith.maximumf %41, %42 : vector<2x32xf32>
    %44 = arith.truncf %43 : vector<2x32xf32> to vector<2x32xbf16>
    %c0_25 = arith.constant 0 : index
    %c0_26 = arith.constant 0 : index
    %45 = vector.load %arg7[%c0_25, %c0_26] : memref<32x16xbf16, #tpu.memory_space<vmem>>, vector<32x16xbf16>
    %cst_27 = arith.constant dense<0.000000e+00> : vector<2x16xf32>
    %46 = tpu.matmul %44, %45, %cst_27 {dimension_numbers = #tpu.dot_dimension_numbers<[1], [0], [0], [1], [0, 0, 1, 1], [], []>} : vector<2x32xbf16>, vector<32x16xbf16>, vector<2x16xf32> -> vector<2x16xf32>
    %cst_28 = arith.constant 0.000000e+00 : f32
    %47 = vector.broadcast %cst_28 : f32 to vector<2x16xf32>
    %48 = arith.maximumf %46, %47 : vector<2x16xf32>
    %49 = arith.truncf %48 : vector<2x16xf32> to vector<2x16xbf16>
    %c0_29 = arith.constant 0 : index
    %c0_30 = arith.constant 0 : index
    %50 = vector.load %arg8[%c0_29, %c0_30] : memref<16x128xbf16, #tpu.memory_space<vmem>>, vector<16x128xbf16>
    %cst_31 = arith.constant dense<0.000000e+00> : vector<2x128xf32>
    %51 = tpu.matmul %49, %50, %cst_31 {dimension_numbers = #tpu.dot_dimension_numbers<[1], [0], [0], [1], [0, 0, 1, 1], [], []>} : vector<2x16xbf16>, vector<16x128xbf16>, vector<2x128xf32> -> vector<2x128xf32>
    %c0_32 = arith.constant 0 : index
    %c0_33 = arith.constant 0 : index
    %52 = vector.load %arg9[%c0_32, %c0_33] : memref<1x128xf32, #tpu.memory_space<vmem>>, vector<1x128xf32>
    %53 = vector.broadcast %52 : vector<1x128xf32> to vector<2x128xf32>
    %54 = arith.addf %51, %53 : vector<2x128xf32>
    %c0_34 = arith.constant 0 : index
    %c0_35 = arith.constant 0 : index
    %c0_36 = arith.constant 0 : index
    %55 = vector.load %arg10[%c0_34, %c0_35, %c0_36] : memref<1x2x128xf32, #tpu.memory_space<vmem>>, vector<1x2x128xf32>
    %56 = vector.shape_cast %55 : vector<1x2x128xf32> to vector<2x128xf32>
    %57 = vector.shape_cast %54 : vector<2x128xf32> to vector<1x2x128xf32>
    tpu.vector_store %arg10[%c0_34, %c0_35, %c0_36], %57 {strides = array<i32>} : memref<1x2x128xf32, #tpu.memory_space<vmem>>, vector<1x2x128xf32>,
    return
  }
  func.func @transform_0(%arg0: i32) -> (i32, i32, i32) {
    %c0_i32 = arith.constant 0 : i32
    %c0_i32_0 = arith.constant 0 : i32
    %c0_i32_1 = arith.constant 0 : i32
    return %arg0, %c0_i32, %c0_i32_0 : i32, i32, i32
  }
  func.func @transform_1(%arg0: i32) -> (i32, i32, i32) {
    %c0_i32 = arith.constant 0 : i32
    %c0_i32_0 = arith.constant 0 : i32
    %c0_i32_1 = arith.constant 0 : i32
    return %arg0, %c0_i32, %c0_i32_0 : i32, i32, i32
  }
  func.func @transform_2(%arg0: i32) -> (i32, i32) {
    %c0_i32 = arith.constant 0 : i32
    %c0_i32_0 = arith.constant 0 : i32
    %c0_i32_1 = arith.constant 0 : i32
    return %c0_i32, %c0_i32_0 : i32, i32
  }
  func.func @transform_3(%arg0: i32) -> (i32, i32) {
    %c0_i32 = arith.constant 0 : i32
    %c0_i32_0 = arith.constant 0 : i32
    %c0_i32_1 = arith.constant 0 : i32
    return %c0_i32, %c0_i32_0 : i32, i32
  }
  func.func @transform_4(%arg0: i32) -> (i32, i32) {
    %c0_i32 = arith.constant 0 : i32
    %c0_i32_0 = arith.constant 0 : i32
    %c0_i32_1 = arith.constant 0 : i32
    return %c0_i32, %c0_i32_0 : i32, i32
  }
  func.func @transform_5(%arg0: i32) -> (i32, i32) {
    %c0_i32 = arith.constant 0 : i32
    %c0_i32_0 = arith.constant 0 : i32
    %c0_i32_1 = arith.constant 0 : i32
    return %c0_i32, %c0_i32_0 : i32, i32
  }
  func.func @transform_6(%arg0: i32) -> (i32, i32) {
    %c0_i32 = arith.constant 0 : i32
    %c0_i32_0 = arith.constant 0 : i32
    %c0_i32_1 = arith.constant 0 : i32
    return %c0_i32, %c0_i32_0 : i32, i32
  }
  func.func @transform_7(%arg0: i32) -> (i32, i32) {
    %c0_i32 = arith.constant 0 : i32
    %c0_i32_0 = arith.constant 0 : i32
    %c0_i32_1 = arith.constant 0 : i32
    return %c0_i32, %c0_i32_0 : i32, i32
  }
  func.func @transform_8(%arg0: i32) -> (i32, i32) {
    %c0_i32 = arith.constant 0 : i32
    %c0_i32_0 = arith.constant 0 : i32
    %c0_i32_1 = arith.constant 0 : i32
    return %c0_i32, %c0_i32_0 : i32, i32
  }
  func.func @transform_9(%arg0: i32) -> (i32, i32, i32) {
    %c0_i32 = arith.constant 0 : i32
    %c0_i32_0 = arith.constant 0 : i32
    %c0_i32_1 = arith.constant 0 : i32
    return %arg0, %c0_i32, %c0_i32_0 : i32, i32, i32
  }
}

module attributes {stable_mosaic.version = 11 : i64} {
  func.func @_tnet_kernel(%arg0: i32, %arg1: memref<1x64x3xbf16, #tpu.memory_space<vmem>>, %arg2: memref<1x256x1xi32, #tpu.memory_space<vmem>>, %arg3: memref<6x16xbf16, #tpu.memory_space<vmem>>, %arg4: memref<16x32xbf16, #tpu.memory_space<vmem>>, %arg5: memref<32x64xbf16, #tpu.memory_space<vmem>>, %arg6: memref<64x32xbf16, #tpu.memory_space<vmem>>, %arg7: memref<32x16xbf16, #tpu.memory_space<vmem>>, %arg8: memref<16x128xbf16, #tpu.memory_space<vmem>>, %arg9: memref<1x128xf32, #tpu.memory_space<vmem>>, %arg10: memref<1x2x128xf32, #tpu.memory_space<vmem>>) attributes {dimension_semantics = [#tpu.dimension_semantics<parallel>], iteration_bounds = array<i64: 2>, scalar_prefetch = 0 : i64, scratch_operands = 0 : i64, tpu.core_type = #tpu.core_type<tc>, window_params = [{transform_indices = @transform_0, window_bounds = array<i64: 1, 64, 3>}, {transform_indices = @transform_1, window_bounds = array<i64: 1, 256, 1>}, {pipeline_mode = #tpu.pipeline_mode<synchronous>, transform_indices = @transform_2, window_bounds = array<i64: 6, 16>}, {pipeline_mode = #tpu.pipeline_mode<synchronous>, transform_indices = @transform_3, window_bounds = array<i64: 16, 32>}, {pipeline_mode = #tpu.pipeline_mode<synchronous>, transform_indices = @transform_4, window_bounds = array<i64: 32, 64>}, {pipeline_mode = #tpu.pipeline_mode<synchronous>, transform_indices = @transform_5, window_bounds = array<i64: 64, 32>}, {pipeline_mode = #tpu.pipeline_mode<synchronous>, transform_indices = @transform_6, window_bounds = array<i64: 32, 16>}, {pipeline_mode = #tpu.pipeline_mode<synchronous>, transform_indices = @transform_7, window_bounds = array<i64: 16, 128>}, {pipeline_mode = #tpu.pipeline_mode<synchronous>, transform_indices = @transform_8, window_bounds = array<i64: 1, 128>}, {transform_indices = @transform_9, window_bounds = array<i64: 1, 2, 128>}]} {
    %c0 = arith.constant 0 : index
    %c0_0 = arith.constant 0 : index
    %c0_1 = arith.constant 0 : index
    %0 = vector.load %arg1[%c0, %c0_0, %c0_1] : memref<1x64x3xbf16, #tpu.memory_space<vmem>>, vector<1x64x3xbf16>
    %1 = vector.shape_cast %0 : vector<1x64x3xbf16> to vector<64x3xbf16>
    %c0_2 = arith.constant 0 : index
    %c0_3 = arith.constant 0 : index
    %c0_4 = arith.constant 0 : index
    %2 = vector.load %arg2[%c0_2, %c0_3, %c0_4] : memref<1x256x1xi32, #tpu.memory_space<vmem>>, vector<1x256x1xi32>
    %3 = vector.shape_cast %2 : vector<1x256x1xi32> to vector<256x1xi32>
    %4 = tpu.iota {dimensions = array<i32: 1>} : vector<256x64xi32>
    %5 = vector.broadcast %3 : vector<256x1xi32> to vector<256x64xi32>
    %6 = arith.cmpi eq, %4, %5 : vector<256x64xi32>
    %cst = arith.constant 1.000000e+00 : f32
    %cst_5 = arith.constant 0.000000e+00 : f32
    %7 = vector.broadcast %cst : f32 to vector<256x64xf32>
    %8 = vector.broadcast %cst_5 : f32 to vector<256x64xf32>
    %9 = arith.select %6, %7, %8 : vector<256x64xi1>, vector<256x64xf32>
    %10 = arith.truncf %9 : vector<256x64xf32> to vector<256x64xbf16>
    %cst_6 = arith.constant dense<0.000000e+00> : vector<256x3xf32>
    %11 = tpu.matmul %10, %1, %cst_6 {dimension_numbers = #tpu.dot_dimension_numbers<[1], [0], [0], [1], [0, 0, 1, 1], [], []>} : vector<256x64xbf16>, vector<64x3xbf16>, vector<256x3xf32> -> vector<256x3xf32>
    %12 = vector.shape_cast %1 : vector<64x3xbf16> to vector<2x1x32x3xbf16>
    %13 = vector.shape_cast %12 : vector<2x1x32x3xbf16> to vector<2x1x32x3xbf16>
    %14 = vector.broadcast %13 : vector<2x1x32x3xbf16> to vector<2x4x32x3xbf16>
    %15 = vector.shape_cast %14 : vector<2x4x32x3xbf16> to vector<256x3xbf16>
    %16 = arith.extf %15 : vector<256x3xbf16> to vector<256x3xf32>
    %17 = arith.subf %11, %16 : vector<256x3xf32>
    %18 = tpu.concatenate %16, %17 in 1 : vector<256x3xf32>, vector<256x3xf32> -> vector<256x6xf32>
    %19 = arith.truncf %18 : vector<256x6xf32> to vector<256x6xbf16>
    %c0_7 = arith.constant 0 : index
    %c0_8 = arith.constant 0 : index
    %20 = vector.load %arg3[%c0_7, %c0_8] : memref<6x16xbf16, #tpu.memory_space<vmem>>, vector<6x16xbf16>
    %cst_9 = arith.constant dense<0.000000e+00> : vector<256x16xf32>
    %21 = tpu.matmul %19, %20, %cst_9 {dimension_numbers = #tpu.dot_dimension_numbers<[1], [0], [0], [1], [0, 0, 1, 1], [], []>} : vector<256x6xbf16>, vector<6x16xbf16>, vector<256x16xf32> -> vector<256x16xf32>
    %cst_10 = arith.constant 0.000000e+00 : f32
    %22 = vector.broadcast %cst_10 : f32 to vector<256x16xf32>
    %23 = arith.maximumf %21, %22 : vector<256x16xf32>
    %24 = arith.truncf %23 : vector<256x16xf32> to vector<256x16xbf16>
    %c0_11 = arith.constant 0 : index
    %c0_12 = arith.constant 0 : index
    %25 = vector.load %arg4[%c0_11, %c0_12] : memref<16x32xbf16, #tpu.memory_space<vmem>>, vector<16x32xbf16>
    %cst_13 = arith.constant dense<0.000000e+00> : vector<256x32xf32>
    %26 = tpu.matmul %24, %25, %cst_13 {dimension_numbers = #tpu.dot_dimension_numbers<[1], [0], [0], [1], [0, 0, 1, 1], [], []>} : vector<256x16xbf16>, vector<16x32xbf16>, vector<256x32xf32> -> vector<256x32xf32>
    %cst_14 = arith.constant 0.000000e+00 : f32
    %27 = vector.broadcast %cst_14 : f32 to vector<256x32xf32>
    %28 = arith.maximumf %26, %27 : vector<256x32xf32>
    %29 = vector.shape_cast %28 : vector<256x32xf32> to vector<2x4x32x32xf32>
    %cst_15 = arith.constant dense<0xFF800000> : vector<2x32x32xf32>
    %30 = vector.multi_reduction <maximumf>, %29, %cst_15 [1] : vector<2x4x32x32xf32> to vector<2x32x32xf32>
    %31 = vector.shape_cast %30 : vector<2x32x32xf32> to vector<64x32xf32>
    %32 = arith.truncf %31 : vector<64x32xf32> to vector<64x32xbf16>
    %c0_16 = arith.constant 0 : index
    %c0_17 = arith.constant 0 : index
    %33 = vector.load %arg5[%c0_16, %c0_17] : memref<32x64xbf16, #tpu.memory_space<vmem>>, vector<32x64xbf16>
    %cst_18 = arith.constant dense<0.000000e+00> : vector<64x64xf32>
    %34 = tpu.matmul %32, %33, %cst_18 {dimension_numbers = #tpu.dot_dimension_numbers<[1], [0], [0], [1], [0, 0, 1, 1], [], []>} : vector<64x32xbf16>, vector<32x64xbf16>, vector<64x64xf32> -> vector<64x64xf32>
    %cst_19 = arith.constant 0.000000e+00 : f32
    %35 = vector.broadcast %cst_19 : f32 to vector<64x64xf32>
    %36 = arith.maximumf %34, %35 : vector<64x64xf32>
    %37 = vector.shape_cast %36 : vector<64x64xf32> to vector<2x32x64xf32>
    %cst_20 = arith.constant dense<0xFF800000> : vector<2x64xf32>
    %38 = vector.multi_reduction <maximumf>, %37, %cst_20 [1] : vector<2x32x64xf32> to vector<2x64xf32>
    %39 = arith.truncf %38 : vector<2x64xf32> to vector<2x64xbf16>
    %c0_21 = arith.constant 0 : index
    %c0_22 = arith.constant 0 : index
    %40 = vector.load %arg6[%c0_21, %c0_22] : memref<64x32xbf16, #tpu.memory_space<vmem>>, vector<64x32xbf16>
    %cst_23 = arith.constant dense<0.000000e+00> : vector<2x32xf32>
    %41 = tpu.matmul %39, %40, %cst_23 {dimension_numbers = #tpu.dot_dimension_numbers<[1], [0], [0], [1], [0, 0, 1, 1], [], []>} : vector<2x64xbf16>, vector<64x32xbf16>, vector<2x32xf32> -> vector<2x32xf32>
    %cst_24 = arith.constant 0.000000e+00 : f32
    %42 = vector.broadcast %cst_24 : f32 to vector<2x32xf32>
    %43 = arith.maximumf %41, %42 : vector<2x32xf32>
    %44 = arith.truncf %43 : vector<2x32xf32> to vector<2x32xbf16>
    %c0_25 = arith.constant 0 : index
    %c0_26 = arith.constant 0 : index
    %45 = vector.load %arg7[%c0_25, %c0_26] : memref<32x16xbf16, #tpu.memory_space<vmem>>, vector<32x16xbf16>
    %cst_27 = arith.constant dense<0.000000e+00> : vector<2x16xf32>
    %46 = tpu.matmul %44, %45, %cst_27 {dimension_numbers = #tpu.dot_dimension_numbers<[1], [0], [0], [1], [0, 0, 1, 1], [], []>} : vector<2x32xbf16>, vector<32x16xbf16>, vector<2x16xf32> -> vector<2x16xf32>
    %cst_28 = arith.constant 0.000000e+00 : f32
    %47 = vector.broadcast %cst_28 : f32 to vector<2x16xf32>
    %48 = arith.maximumf %46, %47 : vector<2x16xf32>
    %49 = arith.truncf %48 : vector<2x16xf32> to vector<2x16xbf16>
    %c0_29 = arith.constant 0 : index
    %c0_30 = arith.constant 0 : index
    %50 = vector.load %arg8[%c0_29, %c0_30] : memref<16x128xbf16, #tpu.memory_space<vmem>>, vector<16x128xbf16>
    %cst_31 = arith.constant dense<0.000000e+00> : vector<2x128xf32>
    %51 = tpu.matmul %49, %50, %cst_31 {dimension_numbers = #tpu.dot_dimension_numbers<[1], [0], [0], [1], [0, 0, 1, 1], [], []>} : vector<2x16xbf16>, vector<16x128xbf16>, vector<2x128xf32> -> vector<2x128xf32>
    %c0_32 = arith.constant 0 : index
    %c0_33 = arith.constant 0 : index
    %52 = vector.load %arg9[%c0_32, %c0_33] : memref<1x128xf32, #tpu.memory_space<vmem>>, vector<1x128xf32>
    %53 = vector.broadcast %52 : vector<1x128xf32> to vector<2x128xf32>
    %54 = arith.addf %51, %53 : vector<2x128xf32>
    %c0_34 = arith.constant 0 : index
    %c0_35 = arith.constant 0 : index
    %c0_36 = arith.constant 0 : index
    %55 = vector.load %arg10[%c0_34, %c0_35, %c0_36] : memref<1x2x128xf32, #tpu.memory_space<vmem>>, vector<1x2x128xf32>
    %56 = vector.shape_cast %55 : vector<1x2x128xf32> to vector<2x128xf32>
    %57 = vector.shape_cast %54 : vector<2x128xf32> to vector<1x2x128xf32>
    tpu.vector_store %arg10[%c0_34, %c0_35, %c0_36], %57 {strides = array<i32>} : memref<1x2x128xf32, #tpu.memory_space<vmem>>, vector<1x2x128xf32>,
    return
  }
  func.func @transform_0(%arg0: i32) -> (i32, i32, i32) {
    %c0_i32 = arith.constant 0 : i32
    %c0_i32_0 = arith.constant 0 : i32
    %c0_i32_1 = arith.constant 0 : i32
    return %arg0, %c0_i32, %c0_i32_0 : i32, i32, i32
  }
  func.func @transform_1(%arg0: i32) -> (i32, i32, i32) {
    %c0_i32 = arith.constant 0 : i32
    %c0_i32_0 = arith.constant 0 : i32
    %c0_i32_1 = arith.constant 0 : i32
    return %arg0, %c0_i32, %c0_i32_0 : i32, i32, i32
  }
  func.func @transform_2(%arg0: i32) -> (i32, i32) {
    %c0_i32 = arith.constant 0 : i32
    %c0_i32_0 = arith.constant 0 : i32
    %c0_i32_1 = arith.constant 0 : i32
    return %c0_i32, %c0_i32_0 : i32, i32
  }
  func.func @transform_3(%arg0: i32) -> (i32, i32) {
    %c0_i32 = arith.constant 0 : i32
    %c0_i32_0 = arith.constant 0 : i32
    %c0_i32_1 = arith.constant 0 : i32
    return %c0_i32, %c0_i32_0 : i32, i32
  }
  func.func @transform_4(%arg0: i32) -> (i32, i32) {
    %c0_i32 = arith.constant 0 : i32
    %c0_i32_0 = arith.constant 0 : i32
    %c0_i32_1 = arith.constant 0 : i32
    return %c0_i32, %c0_i32_0 : i32, i32
  }
  func.func @transform_5(%arg0: i32) -> (i32, i32) {
    %c0_i32 = arith.constant 0 : i32
    %c0_i32_0 = arith.constant 0 : i32
    %c0_i32_1 = arith.constant 0 : i32
    return %c0_i32, %c0_i32_0 : i32, i32
  }
  func.func @transform_6(%arg0: i32) -> (i32, i32) {
    %c0_i32 = arith.constant 0 : i32
    %c0_i32_0 = arith.constant 0 : i32
    %c0_i32_1 = arith.constant 0 : i32
    return %c0_i32, %c0_i32_0 : i32, i32
  }
  func.func @transform_7(%arg0: i32) -> (i32, i32) {
    %c0_i32 = arith.constant 0 : i32
    %c0_i32_0 = arith.constant 0 : i32
    %c0_i32_1 = arith.constant 0 : i32
    return %c0_i32, %c0_i32_0 : i32, i32
  }
  func.func @transform_8(%arg0: i32) -> (i32, i32) {
    %c0_i32 = arith.constant 0 : i32
    %c0_i32_0 = arith.constant 0 : i32
    %c0_i32_1 = arith.constant 0 : i32
    return %c0_i32, %c0_i32_0 : i32, i32
  }
  func.func @transform_9(%arg0: i32) -> (i32, i32, i32) {
    %c0_i32 = arith.constant 0 : i32
    %c0_i32_0 = arith.constant 0 : i32
    %c0_i32_1 = arith.constant 0 : i32
    return %arg0, %c0_i32, %c0_i32_0 : i32, i32, i32
  }
}

</mosaic_0001>

<bundles_post_ra>
// kernel: tpu_custom_call.1
= control target key start
LH: loop header
LB: loop body
LE: loop exit
PB: predicated region body
PF: predicated region fallthrough
CT: control target
= control target key end

     0   :  { %14 = vsyncpa [#allocation3], 0  ;;  %s3076_s0 = inlined_call_operand.vmem [shape: bf16[2,64,3], index: 0, kind: input, shape index: {}]   ;;  %s3077_s1 = inlined_call_operand.vmem [shape: s32[2,256,1], index: 1, kind: input, shape index: {}]   ;;  %s3078_s2 = inlined_call_operand.vmem [shape: bf16[6,16], index: 2, kind: input, shape index: {}]   ;;  %s3079_s3 = inlined_call_operand.vmem [shape: bf16[16,32], index: 3, kind: input, shape index: {}]   ;;  %s3080_s4 = inlined_call_operand.vmem [shape: bf16[32,64], index: 4, kind: input, shape index: {}]   ;;  %s3081_s5 = inlined_call_operand.vmem [shape: bf16[64,32], index: 5, kind: input, shape index: {}]   ;;  %s3082_s6 = inlined_call_operand.vmem [shape: bf16[32,16], index: 6, kind: input, shape index: {}]   ;;  %s3083_s7 = inlined_call_operand.vmem [shape: bf16[16,128], index: 7, kind: input, shape index: {}]   ;;  %s3084_s8 = inlined_call_operand.vmem [shape: f32[1,128], index: 8, kind: input, shape index: {}]   ;;  %s3085_s9 = inlined_call_operand.hbm [shape: f32[2,2,128], index: 9, kind: output, shape index: {}]  }
   0x1   :  { %16 = vsyncpa [#allocation3 + $0x1], 0  ;;  %s2577_s30 = smov 0   ;;  %s2579_s10 = smov 0  }
   0x2   :  { %s2581_s11 = smov 0   ;;  %s2583_s12 = smov 0  }
   0x3 LB: > { %s2598_s13 = sadd.s32 4294967295, %s2520_s12   ;;  %s2013_s14 = sadd.s32 4294967294, %s2520_s12   ;;  %s2520_s12 = sphi %s2583_s12, %s3091_s12   ;;  %s2516_s11 = sphi %s2581_s11, %s3090_s11   ;;  %s2512_s10 = sphi %s2579_s10, %s3089_s10   ;;  %s2508_s30 = sphi %s2577_s30, %s3088_s30  }
   0x4   : > { %s2602_s15 = sadd.s32 1, %s2520_s12   ;;  %s228_s16 = sadd.s32 1, %s2516_s11 }
   0x5   : > { %s225_s17 = ssub.s32 %s2520_s12, %s2602_s15  ;;  %p238_p0 = scmp.ne.s32.totalorder %s2516_s11, %s2512_s10 }
   0x6   : > { %p226_p1 = scmp.eq.s32.totalorder %s225_s17, 0  ;;  %p239_p2 = scmp.eq.s32.totalorder %s2598_s13, 1 }
   0x7   : > { %p244_p3 = scmp.ne.s32.totalorder %s2512_s10, %s2508_s30  ;;  %p245_p4 = scmp.eq.s32.totalorder %s2013_s14, 1 }
   0x8   : > { %s2613_s18 = scalar_select %p226_p1, %s2516_s11, %s228_s16  }
   0x9   : > { %p2615_p5 = por %p239_p2, %p238_p0  ;;  %p2619_p6 = por %p245_p4, %p244_p3 }
   0xa   : > { %p2016_p7 = scmp.ge.s32.totalorder %s2520_s12, 1  ;;  %p300_p8 = scmp.lt.s32.totalorder %s2520_s12, 3 }
   0xc   : > { %p301_p9 = pnand %p2016_p7, %p300_p8 }
   0xd   : > { %p341_p10 = scmp.lt.s32.totalorder (!%p301_p9), %s2598_s13, 1  ;;  %v2522_v0 = vmov (!%p301_p9), 0   ;;  %v392_v37 = vlaneseq (!%p301_p9)  ;;  %vm594_vm4 = vcmask (!%p301_p9), 523264   ;;  %v2523_v43 = vmov (!%p301_p9), 0.0   ;;  %s2524_s17 = smov (!%p301_p9), 3  }
   0xe   : > { %304 = sbr.rel (%p301_p9) target bundleno = 1903 (0x76f), region = 56  ;;  %2359 = vset.pattern.permute.xlu1 (!%p301_p9), %v2522_v0  ;;  %2358 = vset.pattern.permute.xlu0 (!%p301_p9), %v2522_v0  ;;  %s2526_s28 = smov (!%p301_p9), [#allocation2]  }
   0xf   : > { %v2683_v38 = vand.u32 (!%p301_p9), 127, %v392_v37 }
  0x15   : > { %s342_s21 = scalar_select %p341_p10, %s2598_s13, 1 }
  0x17   : > { %s2097_s22 = sshll.u32 %s342_s21, 8  ;;  %s2096_s26 = sshll.u32 %s342_s21, 5 }
  0x18   : > { %s2630_s25 = scalar_lea.vmem %s3077_s1, %s2097_s22  ;;  %s345_s29 = scalar_lea.vmem %s3076_s0, %s2096_s26 }
  0x19   : > { %v362_v1 = vld [vmem:[%s2630_s25 + $0x10] sm:$0xff]  ;;  %v360_v2 = vld [vmem:[%s2630_s25] sm:$0xff]  ;;  %v363_v3 = vld [vmem:[%s2630_s25 + $0x18] sm:$0xff]  ;;  %s2093_s21 = sshll.u32 %s2598_s13, 5 }
  0x1a   : > { %401 = vperm.xlu1 %2359, %v362_v1   ;;  %395 = vperm.xlu0 %2358, %v360_v2   ;;  %v361_v4 = vld [vmem:[%s2630_s25 + $0x8] sm:$0xff]  ;;  %v364_v6 = vld [vmem:[%s2630_s25 + $0x20] sm:$0xff]  ;;  %v367_v7 = vld [vmem:[%s2630_s25 + $0x38] sm:$0xff]  ;;  %s3034_s26 = scalar_lea.hbm %s3085_s9, %s2093_s21 }
  0x1b   : > { %v365_v5 = vld [vmem:[%s2630_s25 + $0x28] sm:$0xff]  ;;  %v366_v8 = vld [vmem:[%s2630_s25 + $0x30] sm:$0xff]  ;;  %v2643_v9 = vld [vmem:[%s345_s29] sm:$0xff]  }
  0x1c   : > { %v2645_v10 = vld [vmem:[%s345_s29 + $0x8] sm:$0xff]   ;;  %v2647_v11 = vld [vmem:[%s345_s29 + $0x10] sm:$0xff]   ;;  %v368_v13 = vld [vmem:[%s2630_s25 + $0x40] sm:$0xff]  ;;  %2168 = vmatprep.subr.bf16.mxu0 %v2643_v9 }
  0x1d   : > { %v369_v12 = vld [vmem:[%s2630_s25 + $0x48] sm:$0xff]  ;;  %2169 = vmatpush3.bf16.msra.mxu0 %v2643_v9  ;;  %v2654_v14 = vld [vmem:[%s345_s29 + $0x18] sm:$0xff]   ;;  %v370_v16 = vld [vmem:[%s2630_s25 + $0x50] sm:$0xff]  ;;  %s338_s29 = sand.u32 1, %s2512_s10  }
  0x1e   : > { %404 = vperm.xlu1 %2359, %v363_v3   ;;  %398 = vperm.xlu0 %2358, %v361_v4   ;;  %v371_v15 = vld [vmem:[%s2630_s25 + $0x58] sm:$0xff]  ;;  %v373_v17 = vld [vmem:[%s2630_s25 + $0x68] sm:$0xff]  ;;  %v372_v18 = vld [vmem:[%s2630_s25 + $0x60] sm:$0xff]  ;;  %s2017_s14 = sshll.u32 %s338_s29, 1  ;;  %s1929_s27 = scalar_lea.sflag [#allocation3], %s338_s29 }
  0x1f   : > { %2170 = vmatprep.subr.bf16.mxu0 %v2645_v10  ;;  %v375_v19 = vld [vmem:[%s2630_s25 + $0x78] sm:$0xff]  ;;  %v374_v20 = vld [vmem:[%s2630_s25 + $0x70] sm:$0xff]  ;;  %v377_v21 = vld [vmem:[%s2630_s25 + $0x88] sm:$0xff]  ;;  %s340_s22 = scalar_lea.vmem [#allocation2], %s2017_s14  ;;  %s2462_s14 = sshll.u32 %s2526_s28, 4  ;;  %s2463_s14 = int_to_ptr.vmem [resolvable:$false] %s2462_s14 }
  0x20   : > { %v376_v22 = vld [vmem:[%s2630_s25 + $0x80] sm:$0xff]  ;;  %v379_v23 = vld [vmem:[%s2630_s25 + $0x98] sm:$0xff]  ;;  %v378_v24 = vld [vmem:[%s2630_s25 + $0x90] sm:$0xff]  ;;  %s1942_s23 = sshll.u32 %s340_s22, 4  ;;  %s2464_s16 = scalar_lea.vmem %s2463_s14, 64  ;;  %s3036_s23 = int_to_ptr.vmem [resolvable:$true] %s1942_s23 }
  0x21   : > { %2171 = vmatpush3.bf16.msra.mxu0 %v2645_v10  ;;  %v381_v25 = vld [vmem:[%s2630_s25 + $0xa8] sm:$0xff]  ;;  %v380_v26 = vld [vmem:[%s2630_s25 + $0xa0] sm:$0xff]  ;;  %v383_v27 = vld [vmem:[%s2630_s25 + $0xb8] sm:$0xff]  ;;  %s2458_s13 = scalar_lea.vmem %s3036_s23, 32  ;;  %p2465_p0 = scmp.lt.s32.totalorder %s3036_s23, %s2463_s14 }
  0x22   : > { %410 = vperm.xlu1 %2359, %v365_v5   ;;  %407 = vperm.xlu0 %2358, %v364_v6   ;;  %v382_v28 = vld [vmem:[%s2630_s25 + $0xb0] sm:$0xff]  ;;  %v385_v29 = vld [vmem:[%s2630_s25 + $0xc8] sm:$0xff]  ;;  %v384_v30 = vld [vmem:[%s2630_s25 + $0xc0] sm:$0xff]  ;;  %p2459_p11 = scmp.ne.s32.totalorder %s3036_s23, %s2458_s13  ;;  %p2466_p1 = scmp.lt.s32.totalorder %s2464_s16, %s2458_s13 }
  0x23   : > { %2172 = vmatprep.subr.bf16.mxu0 %v2647_v11  ;;  %v387_v31 = vld [vmem:[%s2630_s25 + $0xd8] sm:$0xff]  ;;  %v386_v32 = vld [vmem:[%s2630_s25 + $0xd0] sm:$0xff]  ;;  %v389_v33 = vld [vmem:[%s2630_s25 + $0xe8] sm:$0xff] }
  0x24   : > { %v388_v34 = vld [vmem:[%s2630_s25 + $0xe0] sm:$0xff]  ;;  %v391_v35 = vld [vmem:[%s2630_s25 + $0xf8] sm:$0xff]  ;;  %v390_v36 = vld [vmem:[%s2630_s25 + $0xf0] sm:$0xff]  ;;  %p2460_p12 = pnand %p2459_p11, %p2615_p5  ;;  %p2467_p2 = por %p2466_p1, %p2465_p0 }
  0x25   : > { %2173 = vmatpush3.bf16.msra.mxu0 %v2647_v11 }
  0x26   : > { %416 = vperm.xlu1 %2359, %v367_v7   ;;  %413 = vperm.xlu0 %2358, %v366_v8   ;;  %p2461_p13 = pneg %p2460_p12 }
  0x27   : > { %2174 = vmatprep.subr.bf16.mxu0 %v2654_v14 }
  0x28   : > { %p2468_p3 = pnand %p2467_p2, %p2461_p13 }
  0x29   : > { %2175 = vmatpush3.bf16.msra.mxu0 %v2654_v14 }
  0x2a   : > { %422 = vperm.xlu1 %2359, %v369_v12   ;;  %419 = vperm.xlu0 %2358, %v368_v13  }
  0x2e   : > { %428 = vperm.xlu1 %2359, %v371_v15   ;;  %425 = vperm.xlu0 %2358, %v370_v16  }
  0x32   : > { %434 = vperm.xlu1 %2359, %v373_v17   ;;  %431 = vperm.xlu0 %2358, %v372_v18  }
  0x36   : > { %440 = vperm.xlu1 %2359, %v375_v19   ;;  %437 = vperm.xlu0 %2358, %v374_v20  }
  0x3a   : > { %446 = vperm.xlu1 %2359, %v377_v21   ;;  %443 = vperm.xlu0 %2358, %v376_v22  }
  0x3e   : > { %452 = vperm.xlu1 %2359, %v379_v23   ;;  %449 = vperm.xlu0 %2358, %v378_v24  }
  0x42   : > { %458 = vperm.xlu1 %2359, %v381_v25   ;;  %455 = vperm.xlu0 %2358, %v380_v26  }
  0x46   : > { %464 = vperm.xlu1 %2359, %v383_v27   ;;  %461 = vperm.xlu0 %2358, %v382_v28  }
  0x4a   : > { %470 = vperm.xlu1 %2359, %v385_v29   ;;  %467 = vperm.xlu0 %2358, %v384_v30  }
  0x4e   : > { %476 = vperm.xlu1 %2359, %v387_v31   ;;  %473 = vperm.xlu0 %2358, %v386_v32  }
  0x52   : > { %482 = vperm.xlu1 %2359, %v389_v33   ;;  %479 = vperm.xlu0 %2358, %v388_v34  }
  0x56   : > { %488 = vperm.xlu1 %2359, %v391_v35   ;;  %485 = vperm.xlu0 %2358, %v390_v36  }
  0x99   : > { %v402_v39 = vpop.permute.xlu1 %401  ;;  %v396_v40 = vpop.permute.xlu0 %395 }
  0x9a   : > { %vm492_vm0 = vcmp.eq.s32.totalorder %v2683_v38, %v402_v39  ;;  %vm490_vm1 = vcmp.eq.s32.totalorder %v2683_v38, %v396_v40 }
  0x9b   : > { %v524_v44 = vsel %vm492_vm0, 1.0, %v2523_v43  ;;  %v522_v45 = vsel %vm490_vm1, 1.0, %v2523_v43 }
  0x9d   : > { %v405_v41 = vpop.permute.xlu1 %404  ;;  %v399_v42 = vpop.permute.xlu0 %398 }
  0x9e   : > { %vm493_vm2 = vcmp.eq.s32.totalorder %v2683_v38, %v405_v41  ;;  %vm491_vm3 = vcmp.eq.s32.totalorder %v2683_v38, %v399_v42 }
  0x9f   : > { %v525_v46 = vsel %vm493_vm2, 1.0, %v2523_v43  ;;  %v523_v47 = vsel %vm491_vm3, 1.0, %v2523_v43 }
  0xa0   : > { %v555_v48 = vpack.c.bf16 %v525_v46, %v524_v44  ;;  %v554_v49 = vpack.c.bf16 %v523_v47, %v522_v45 }
  0xa1   : > { %v411_v50 = vpop.permute.xlu1 %410  ;;  %v408_v51 = vpop.permute.xlu0 %407 }
  0xa2   : > { %vm495_vm5 = vcmp.eq.s32.totalorder %v2683_v38, %v411_v50  ;;  %vm494_vm6 = vcmp.eq.s32.totalorder %v2683_v38, %v408_v51  ;;  %2176 = vmatprep.mubr.msk.bf16.mxu0 %vm594_vm4, %v554_v49 }
  0xa3   : > { %v527_v52 = vsel %vm495_vm5, 1.0, %v2523_v43  ;;  %v526_v53 = vsel %vm494_vm6, 1.0, %v2523_v43  ;;  %2177 = vmatmul.mubr.msk.bf16.vlgmr.msra.gmra.mrb[0].mxu0 %vm594_vm4, %v555_v48 }
  0xa4   : > { %v556_v54 = vpack.c.bf16 %v527_v52, %v526_v53 }
  0xa5   : > { %v417_v55 = vpop.permute.xlu1 %416  ;;  %v414_v56 = vpop.permute.xlu0 %413 }
  0xa6   : > { %vm497_vm7 = vcmp.eq.s32.totalorder %v2683_v38, %v417_v55  ;;  %vm496_vm8 = vcmp.eq.s32.totalorder %v2683_v38, %v414_v56  ;;  %2180 = vmatprep.mubr.msk.bf16.mxu0 %vm594_vm4, %v556_v54 }
  0xa7   : > { %v529_v57 = vsel %vm497_vm7, 1.0, %v2523_v43  ;;  %v528_v58 = vsel %vm496_vm8, 1.0, %v2523_v43 }
  0xa8   : > { %v557_v59 = vpack.c.bf16 %v529_v57, %v528_v58 }
  0xa9   : > { %v423_v60 = vpop.permute.xlu1 %422  ;;  %v420_v61 = vpop.permute.xlu0 %419 }
  0xaa   : > { %vm499_vm9 = vcmp.eq.s32.totalorder %v2683_v38, %v423_v60  ;;  %vm498_vm10 = vcmp.eq.s32.totalorder %v2683_v38, %v420_v61 }
  0xab   : > { %v531_v62 = vsel %vm499_vm9, 1.0, %v2523_v43  ;;  %v530_v63 = vsel %vm498_vm10, 1.0, %v2523_v43  ;;  %2181 = vmatmul.mubr.msk.bf16.gmra.mrb[4].mxu0 %vm594_vm4, %v557_v59 }
  0xac   : > { %v558_v0 = vpack.c.bf16 %v531_v62, %v530_v63  ;;  %v1021_v62 = vld [vmem:[%s3078_s2] sm:$0x7] }
  0xad   : > { %v429_v1 = vpop.permute.xlu1 %428  ;;  %v426_v2 = vpop.permute.xlu0 %425 }
  0xae   : > { %vm501_vm11 = vcmp.eq.s32.totalorder %v2683_v38, %v429_v1  ;;  %vm500_vm12 = vcmp.eq.s32.totalorder %v2683_v38, %v426_v2  ;;  %2184 = vmatprep.mubr.msk.bf16.mxu0 %vm594_vm4, %v558_v0  ;;  %v2769_v0 = vunpack.c.l.bf16 %v2645_v10  ;;  %v2775_v1 = vunpack.c.l.bf16 %v2643_v9 }
  0xaf   : > { %v533_v3 = vsel %vm501_vm11, 1.0, %v2523_v43  ;;  %v532_v4 = vsel %vm500_vm12, 1.0, %v2523_v43  ;;  %v2778_v2 = vunpack.c.h.bf16 %v2643_v9 }
  0xb0   : > { %v559_v5 = vpack.c.bf16 %v533_v3, %v532_v4 }
  0xb1   : > { %v435_v6 = vpop.permute.xlu1 %434  ;;  %v432_v7 = vpop.permute.xlu0 %431 }
  0xb2   : > { %vm503_vm13 = vcmp.eq.s32.totalorder %v2683_v38, %v435_v6  ;;  %vm502_vm14 = vcmp.eq.s32.totalorder %v2683_v38, %v432_v7 }
  0xb3   : > { %v535_v8 = vsel %vm503_vm13, 1.0, %v2523_v43  ;;  %v534_v12 = vsel %vm502_vm14, 1.0, %v2523_v43  ;;  %2185 = vmatmul.mubr.msk.bf16.gmra.mrb[8].mxu0 %vm594_vm4, %v559_v5 }
  0xb4   : > { %v560_v13 = vpack.c.bf16 %v535_v8, %v534_v12 }
  0xb5   : > { %v441_v15 = vpop.permute.xlu1 %440  ;;  %v438_v16 = vpop.permute.xlu0 %437 }
  0xb6   : > { %vm505_vm15 = vcmp.eq.s32.totalorder %v2683_v38, %v441_v15  ;;  %vm504_vm0 = vcmp.eq.s32.totalorder %v2683_v38, %v438_v16  ;;  %2188 = vmatprep.mubr.msk.bf16.mxu0 %vm594_vm4, %v560_v13 }
  0xb7   : > { %v537_v17 = vsel %vm505_vm15, 1.0, %v2523_v43  ;;  %v536_v18 = vsel %vm504_vm0, 1.0, %v2523_v43 }
  0xb8   : > { %v561_v19 = vpack.c.bf16 %v537_v17, %v536_v18 }
  0xb9   : > { %v447_v20 = vpop.permute.xlu1 %446  ;;  %v444_v21 = vpop.permute.xlu0 %443 }
  0xba   : > { %vm507_vm1 = vcmp.eq.s32.totalorder %v2683_v38, %v447_v20  ;;  %vm506_vm2 = vcmp.eq.s32.totalorder %v2683_v38, %v444_v21 }
  0xbb   : > { %v539_v22 = vsel %vm507_vm1, 1.0, %v2523_v43  ;;  %v538_v23 = vsel %vm506_vm2, 1.0, %v2523_v43  ;;  %2189 = vmatmul.mubr.msk.bf16.gmra.mrb[12].mxu0 %vm594_vm4, %v561_v19  ;;  %vm1071_vm2 = vcmask 1042432  }
  0xbc   : > { %v562_v24 = vpack.c.bf16 %v539_v22, %v538_v23  ;;  %2314 = vmatprep.subr.msk.bf16.mxu1 %vm1071_vm2, %v1021_v62  ;;  %v1073_v63 = vsel %vm1071_vm2, %v1021_v62, 0 }
  0xbd   : > { %v453_v25 = vpop.permute.xlu1 %452  ;;  %v450_v26 = vpop.permute.xlu0 %449  ;;  %2209 = vmatpush3.bf16.msra.mxu1 %v1073_v63 }
  0xbe   : > { %vm509_vm3 = vcmp.eq.s32.totalorder %v2683_v38, %v453_v25  ;;  %vm508_vm5 = vcmp.eq.s32.totalorder %v2683_v38, %v450_v26  ;;  %2192 = vmatprep.mubr.msk.bf16.mxu0 %vm594_vm4, %v562_v24 }
  0xbf   : > { %v541_v27 = vsel %vm509_vm3, 1.0, %v2523_v43  ;;  %v540_v28 = vsel %vm508_vm5, 1.0, %v2523_v43  ;;  %vm972_vm3 = vcmask 23552   ;;  %vm1022_vm5 = vcmask 48128  }
  0xc0   : > { %v563_v29 = vpack.c.bf16 %v541_v27, %v540_v28 }
  0xc1   : > { %v459_v30 = vpop.permute.xlu1 %458  ;;  %v456_v31 = vpop.permute.xlu0 %455 }
  0xc2   : > { %vm511_vm6 = vcmp.eq.s32.totalorder %v2683_v38, %v459_v30  ;;  %vm510_vm7 = vcmp.eq.s32.totalorder %v2683_v38, %v456_v31 }
  0xc3   : > { %v543_v32 = vsel %vm511_vm6, 1.0, %v2523_v43  ;;  %v542_v33 = vsel %vm510_vm7, 1.0, %v2523_v43  ;;  %2193 = vmatmul.mubr.msk.bf16.gmra.mrb[16].mxu0 %vm594_vm4, %v563_v29  ;;  %vm1292_vm6 = vcmask 130048   ;;  %vm1534_vm7 = vcmask 261120  }
  0xc4   : > { %v564_v34 = vpack.c.bf16 %v543_v32, %v542_v33 }
  0xc5   : > { %v465_v35 = vpop.permute.xlu1 %464  ;;  %v462_v36 = vpop.permute.xlu0 %461 }
  0xc6   : > { %vm513_vm8 = vcmp.eq.s32.totalorder %v2683_v38, %v465_v35  ;;  %vm512_vm9 = vcmp.eq.s32.totalorder %v2683_v38, %v462_v36  ;;  %2196 = vmatprep.mubr.msk.bf16.mxu0 %vm594_vm4, %v564_v34 }
  0xc7   : > { %v545_v37 = vsel %vm513_vm8, 1.0, %v2523_v43  ;;  %v544_v39 = vsel %vm512_vm9, 1.0, %v2523_v43  ;;  %vm2525_vm8 = vmmov 0   ;;  %vm1736_vm9 = vcmask 1041409  }
  0xc8   : > { %v565_v40 = vpack.c.bf16 %v545_v37, %v544_v39 }
  0xc9   : > { %v471_v41 = vpop.permute.xlu1 %470  ;;  %v468_v42 = vpop.permute.xlu0 %467 }
  0xca   : > { %vm515_vm10 = vcmp.eq.s32.totalorder %v2683_v38, %v471_v41  ;;  %vm514_vm11 = vcmp.eq.s32.totalorder %v2683_v38, %v468_v42 }
  0xcb   : > { %v547_v44 = vsel %vm515_vm10, 1.0, %v2523_v43  ;;  %v546_v45 = vsel %vm514_vm11, 1.0, %v2523_v43  ;;  %2197 = vmatmul.mubr.msk.bf16.gmra.mrb[20].mxu0 %vm594_vm4, %v565_v40 }
  0xcc   : > { %v566_v46 = vpack.c.bf16 %v547_v44, %v546_v45 }
  0xcd   : > { %v477_v47 = vpop.permute.xlu1 %476  ;;  %v474_v48 = vpop.permute.xlu0 %473 }
  0xce   : > { %vm517_vm12 = vcmp.eq.s32.totalorder %v2683_v38, %v477_v47  ;;  %vm516_vm13 = vcmp.eq.s32.totalorder %v2683_v38, %v474_v48  ;;  %2200 = vmatprep.mubr.msk.bf16.mxu0 %vm594_vm4, %v566_v46  ;;  %v2803_v47 = vunpack.c.l.bf16 %v2654_v14  ;;  %v2806_v48 = vunpack.c.h.bf16 %v2654_v14 }
  0xcf   : > { %v549_v49 = vsel %vm517_vm12, 1.0, %v2523_v43  ;;  %v548_v50 = vsel %vm516_vm13, 1.0, %v2523_v43 }
  0xd0   : > { %v567_v51 = vpack.c.bf16 %v549_v49, %v548_v50  ;;  %v2810_v49 = vunpack.c.l.bf16 %v2647_v11  ;;  %v2813_v50 = vunpack.c.h.bf16 %v2647_v11 }
  0xd1   : > { %v483_v52 = vpop.permute.xlu1 %482  ;;  %v480_v53 = vpop.permute.xlu0 %479 }
  0xd2   : > { %vm519_vm14 = vcmp.eq.s32.totalorder %v2683_v38, %v483_v52  ;;  %vm518_vm15 = vcmp.eq.s32.totalorder %v2683_v38, %v480_v53 }
  0xd3   : > { %v551_v54 = vsel %vm519_vm14, 1.0, %v2523_v43  ;;  %v550_v55 = vsel %vm518_vm15, 1.0, %v2523_v43  ;;  %2201 = vmatmul.mubr.msk.bf16.gmra.mrb[24].mxu0 %vm594_vm4, %v567_v51 }
  0xd4   : > { %v568_v56 = vpack.c.bf16 %v551_v54, %v550_v55 }
  0xd5   : > { %v489_v57 = vpop.permute.xlu1 %488  ;;  %v486_v58 = vpop.permute.xlu0 %485 }
  0xd6   : > { %vm521_vm0 = vcmp.eq.s32.totalorder %v2683_v38, %v489_v57  ;;  %vm520_vm1 = vcmp.eq.s32.totalorder %v2683_v38, %v486_v58  ;;  %2204 = vmatprep.mubr.msk.bf16.mxu0 %vm594_vm4, %v568_v56  ;;  %v2772_v38 = vunpack.c.h.bf16 %v2645_v10 }
  0xd7   : > { %v553_v59 = vsel %vm521_vm0, 1.0, %v2523_v43  ;;  %v552_v60 = vsel %vm520_vm1, 1.0, %v2523_v43 }
  0xd8   : > { %v569_v61 = vpack.c.bf16 %v553_v59, %v552_v60 }
  0xdb   : > { %2205 = vmatmul.mubr.msk.bf16.gmra.mrb[28].mxu0 %vm594_vm4, %v569_v61 }
 0x176   : > { %v2178_v3 = vpop.f32.mrb[0].mxu0 }
 0x177   : > { %v677_v4 = vpop.f32.mrb[1].mxu0  ;;  %v814_v6 = vsub.f32 %v2178_v3, %v2769_v0 }
 0x178   : > { %v2179_v5 = vpop.f32.mrb[2].mxu0  ;;  %v812_v12 = vsub.f32 %v677_v4, %v2775_v1 }
 0x179   : > { %v815_v7 = vsub.f32 %v2179_v5, %v2772_v38  ;;  %v680_v8 = vpop.f32.mrb[3].mxu0 }
 0x17a   : > { %v813_v13 = vsub.f32 %v680_v8, %v2778_v2 }
 0x17b   : > { %v2365_v10 = vpack.i.bf16 %v815_v7, %v814_v6 }
 0x17c   : > { %v2360_v15 = vpack.i.bf16 %v813_v13, %v812_v12 }
 0x17d   : > { %2366 = vrot.lane.b32.xlu1 %v2365_v10, %s2524_s17 }
 0x17e   : > { %2361 = vrot.lane.b32.xlu0 %v2360_v15, %s2524_s17  ;;  %v2182_v9 = vpop.f32.mrb[4].mxu0 }
 0x17f   : > { %v693_v16 = vpop.f32.mrb[5].mxu0  ;;  %v818_v18 = vsub.f32 %v2182_v9, %v2769_v0 }
 0x180   : > { %v2183_v17 = vpop.f32.mrb[6].mxu0  ;;  %v816_v21 = vsub.f32 %v693_v16, %v2775_v1 }
 0x181   : > { %v819_v19 = vsub.f32 %v2183_v17, %v2772_v38  ;;  %v696_v20 = vpop.f32.mrb[7].mxu0 }
 0x182   : > { %v817_v22 = vsub.f32 %v696_v20, %v2778_v2 }
 0x183   : > { %v2375_v23 = vpack.i.bf16 %v819_v19, %v818_v18 }
 0x184   : > { %v2370_v24 = vpack.i.bf16 %v817_v22, %v816_v21  ;;  %v2444_v22 = vld [vmem:[%s3079_s3] sm:$0xff]  }
 0x185   : > { %2376 = vrot.lane.b32.xlu1 %v2375_v23, %s2524_s17  ;;  %2242 = vmatprep.subr.bf16.mxu1 %v2444_v22 }
 0x186   : > { %2371 = vrot.lane.b32.xlu0 %v2370_v24, %s2524_s17  ;;  %v2186_v25 = vpop.f32.mrb[8].mxu0 }
 0x187   : > { %v709_v26 = vpop.f32.mrb[9].mxu0  ;;  %v822_v28 = vsub.f32 %v2186_v25, %v2769_v0 }
 0x188   : > { %v2187_v27 = vpop.f32.mrb[10].mxu0  ;;  %v820_v31 = vsub.f32 %v709_v26, %v2775_v1 }
 0x189   : > { %v823_v29 = vsub.f32 %v2187_v27, %v2772_v38  ;;  %v712_v30 = vpop.f32.mrb[11].mxu0 }
 0x18a   : > { %v821_v32 = vsub.f32 %v712_v30, %v2778_v2 }
 0x18b   : > { %v2385_v33 = vpack.i.bf16 %v823_v29, %v822_v28 }
 0x18c   : > { %v2380_v34 = vpack.i.bf16 %v821_v32, %v820_v31 }
 0x18d   : > { %2386 = vrot.lane.b32.xlu1 %v2385_v33, %s2524_s17 }
 0x18e   : > { %2381 = vrot.lane.b32.xlu0 %v2380_v34, %s2524_s17  ;;  %v2190_v35 = vpop.f32.mrb[12].mxu0 }
 0x18f   : > { %v725_v36 = vpop.f32.mrb[13].mxu0  ;;  %v826_v39 = vsub.f32 %v2190_v35, %v2769_v0 }
 0x190   : > { %v2191_v37 = vpop.f32.mrb[14].mxu0  ;;  %v824_v42 = vsub.f32 %v725_v36, %v2775_v1 }
 0x191   : > { %v827_v40 = vsub.f32 %v2191_v37, %v2772_v38  ;;  %v728_v41 = vpop.f32.mrb[15].mxu0 }
 0x192   : > { %v825_v44 = vsub.f32 %v728_v41, %v2778_v2 }
 0x193   : > { %v2395_v45 = vpack.i.bf16 %v827_v40, %v826_v39 }
 0x194   : > { %v2390_v46 = vpack.i.bf16 %v825_v44, %v824_v42 }
 0x195   : > { %2396 = vrot.lane.b32.xlu1 %v2395_v45, %s2524_s17 }
 0x196   : > { %2391 = vrot.lane.b32.xlu0 %v2390_v46, %s2524_s17  ;;  %v2194_v51 = vpop.f32.mrb[16].mxu0 }
 0x197   : > { %v741_v52 = vpop.f32.mrb[17].mxu0  ;;  %v830_v54 = vsub.f32 %v2194_v51, %v2803_v47 }
 0x198   : > { %v2195_v53 = vpop.f32.mrb[18].mxu0  ;;  %v828_v14 = vsub.f32 %v741_v52, %v2810_v49 }
 0x199   : > { %v831_v55 = vsub.f32 %v2195_v53, %v2806_v48  ;;  %v744_v56 = vpop.f32.mrb[19].mxu0 }
 0x19a   : > { %v829_v57 = vsub.f32 %v744_v56, %v2813_v50 }
 0x19b   : > { %v2405_v58 = vpack.i.bf16 %v831_v55, %v830_v54 }
 0x19c   : > { %v2400_v59 = vpack.i.bf16 %v829_v57, %v828_v14 }
 0x19d   : > { %2406 = vrot.lane.b32.xlu1 %v2405_v58, %s2524_s17 }
 0x19e   : > { %2401 = vrot.lane.b32.xlu0 %v2400_v59, %s2524_s17  ;;  %v2198_v11 = vpop.f32.mrb[20].mxu0 }
 0x19f   : > { %v757_v60 = vpop.f32.mrb[21].mxu0  ;;  %v834_v62 = vsub.f32 %v2198_v11, %v2803_v47 }
 0x1a0   : > { %v2199_v61 = vpop.f32.mrb[22].mxu0  ;;  %v832_v4 = vsub.f32 %v757_v60, %v2810_v49 }
 0x1a1   : > { %v835_v63 = vsub.f32 %v2199_v61, %v2806_v48  ;;  %v760_v3 = vpop.f32.mrb[23].mxu0 }
 0x1a2   : > { %v833_v5 = vsub.f32 %v760_v3, %v2813_v50 }
 0x1a3   : > { %v2415_v6 = vpack.i.bf16 %v835_v63, %v834_v62 }
 0x1a4   : > { %v2410_v7 = vpack.i.bf16 %v833_v5, %v832_v4 }
 0x1a5   : > { %2416 = vrot.lane.b32.xlu1 %v2415_v6, %s2524_s17 }
 0x1a6   : > { %2411 = vrot.lane.b32.xlu0 %v2410_v7, %s2524_s17  ;;  %v2202_v8 = vpop.f32.mrb[24].mxu0 }
 0x1a7   : > { %v773_v12 = vpop.f32.mrb[25].mxu0  ;;  %v838_v10 = vsub.f32 %v2202_v8, %v2803_v47 }
 0x1a8   : > { %v2203_v13 = vpop.f32.mrb[26].mxu0  ;;  %v836_v16 = vsub.f32 %v773_v12, %v2810_v49 }
 0x1a9   : > { %v839_v15 = vsub.f32 %v2203_v13, %v2806_v48  ;;  %v776_v9 = vpop.f32.mrb[27].mxu0 }
 0x1aa   : > { %v837_v17 = vsub.f32 %v776_v9, %v2813_v50 }
 0x1ab   : > { %v2425_v18 = vpack.i.bf16 %v839_v15, %v838_v10 }
 0x1ac   : > { %v2420_v19 = vpack.i.bf16 %v837_v17, %v836_v16 }
 0x1ad   : > { %2426 = vrot.lane.b32.xlu1 %v2425_v18, %s2524_s17 }
 0x1ae   : > { %2421 = vrot.lane.b32.xlu0 %v2420_v19, %s2524_s17  ;;  %v2206_v20 = vpop.f32.mrb[28].mxu0 }
 0x1af   : > { %v789_v21 = vpop.f32.mrb[29].mxu0  ;;  %v842_v24 = vsub.f32 %v2206_v20, %v2803_v47 }
 0x1b0   : > { %v2207_v23 = vpop.f32.mrb[30].mxu0  ;;  %v840_v27 = vsub.f32 %v789_v21, %v2810_v49 }
 0x1b1   : > { %v843_v25 = vsub.f32 %v2207_v23, %v2806_v48  ;;  %v792_v26 = vpop.f32.mrb[31].mxu0 }
 0x1b2   : > { %v841_v28 = vsub.f32 %v792_v26, %v2813_v50 }
 0x1b3   : > { %v2435_v29 = vpack.i.bf16 %v843_v25, %v842_v24 }
 0x1b4   : > { %v2430_v30 = vpack.i.bf16 %v841_v28, %v840_v27 }
 0x1b5   : > { %2436 = vrot.lane.b32.xlu1 %v2435_v29, %s2524_s17 }
 0x1b6   : > { %2431 = vrot.lane.b32.xlu0 %v2430_v30, %s2524_s17 }
 0x1ef   : > { %v2367_v31 = vpop.permute.xlu1 %2366 }
 0x1f0   : > { %v2369_v32 = vunpack.i.h.bf16 %v2367_v31  ;;  %v2368_v33 = vunpack.i.l.bf16 %v2367_v31  ;;  %v2362_v34 = vpop.permute.xlu0 %2361 }
 0x1f1   : > { %v2364_v35 = vunpack.i.h.bf16 %v2362_v34  ;;  %v2363_v36 = vunpack.i.l.bf16 %v2362_v34 }
 0x1f2   : > { %v976_v37 = vsel %vm972_vm3, %v2772_v38, %v2369_v32  ;;  %v975_v39 = vsel %vm972_vm3, %v2769_v0, %v2368_v33 }
 0x1f3   : > { %v973_v40 = vsel %vm972_vm3, %v2775_v1, %v2363_v36  ;;  %v974_v41 = vsel %vm972_vm3, %v2778_v2, %v2364_v35  ;;  %v1006_v44 = vpack.c.bf16 %v976_v37, %v975_v39 }
 0x1f4   : > { %v1005_v42 = vpack.c.bf16 %v974_v41, %v973_v40 }
 0x1f6   : > { %2210 = vmatprep.mubr.msk.bf16.mxu1 %vm1022_vm5, %v1005_v42 }
 0x1f7   : > { %2211 = vmatmul.mubr.msk.bf16.vlgmr.msra.gmra.mrb[0].mxu1 %vm1022_vm5, %v1006_v44  ;;  %v2377_v45 = vpop.permute.xlu1 %2376 }
 0x1f8   : > { %v2379_v46 = vunpack.i.h.bf16 %v2377_v45  ;;  %v2378_v51 = vunpack.i.l.bf16 %v2377_v45  ;;  %v2372_v52 = vpop.permute.xlu0 %2371  ;;  %2243 = vmatpush3.bf16.msra.mxu1 %v2444_v22 }
 0x1f9   : > { %v2374_v53 = vunpack.i.h.bf16 %v2372_v52  ;;  %v2373_v54 = vunpack.i.l.bf16 %v2372_v52 }
 0x1fa   : > { %v980_v55 = vsel %vm972_vm3, %v2772_v38, %v2379_v46  ;;  %v979_v56 = vsel %vm972_vm3, %v2769_v0, %v2378_v51 }
 0x1fb   : > { %v978_v14 = vsel %vm972_vm3, %v2778_v2, %v2374_v53  ;;  %v977_v57 = vsel %vm972_vm3, %v2775_v1, %v2373_v54  ;;  %v1008_v59 = vpack.c.bf16 %v980_v55, %v979_v56 }
 0x1fc   : > { %v1007_v58 = vpack.c.bf16 %v978_v14, %v977_v57 }
 0x1fe   : > { %2214 = vmatprep.mubr.msk.bf16.mxu1 %vm1022_vm5, %v1007_v58 }
 0x1ff   : > { %2215 = vmatmul.mubr.msk.bf16.gmra.mrb[4].mxu1 %vm1022_vm5, %v1008_v59  ;;  %v2387_v11 = vpop.permute.xlu1 %2386 }
 0x200   : > { %v2389_v60 = vunpack.i.h.bf16 %v2387_v11  ;;  %v2388_v61 = vunpack.i.l.bf16 %v2387_v11  ;;  %v2382_v62 = vpop.permute.xlu0 %2381 }
 0x201   : > { %v2384_v63 = vunpack.i.h.bf16 %v2382_v62  ;;  %v2383_v3 = vunpack.i.l.bf16 %v2382_v62 }
 0x202   : > { %v984_v4 = vsel %vm972_vm3, %v2772_v38, %v2389_v60  ;;  %v983_v5 = vsel %vm972_vm3, %v2769_v0, %v2388_v61 }
 0x203   : > { %v982_v6 = vsel %vm972_vm3, %v2778_v2, %v2384_v63  ;;  %v981_v7 = vsel %vm972_vm3, %v2775_v1, %v2383_v3  ;;  %v1010_v12 = vpack.c.bf16 %v984_v4, %v983_v5 }
 0x204   : > { %v1009_v8 = vpack.c.bf16 %v982_v6, %v981_v7 }
 0x206   : > { %2218 = vmatprep.mubr.msk.bf16.mxu1 %vm1022_vm5, %v1009_v8 }
 0x207   : > { %2219 = vmatmul.mubr.msk.bf16.gmra.mrb[8].mxu1 %vm1022_vm5, %v1010_v12  ;;  %v2397_v13 = vpop.permute.xlu1 %2396 }
 0x208   : > { %v2399_v10 = vunpack.i.h.bf16 %v2397_v13  ;;  %v2398_v15 = vunpack.i.l.bf16 %v2397_v13  ;;  %v2392_v9 = vpop.permute.xlu0 %2391 }
 0x209   : > { %v2394_v16 = vunpack.i.h.bf16 %v2392_v9  ;;  %v2393_v17 = vunpack.i.l.bf16 %v2392_v9 }
 0x20a   : > { %v988_v18 = vsel %vm972_vm3, %v2772_v38, %v2399_v10  ;;  %v987_v19 = vsel %vm972_vm3, %v2769_v0, %v2398_v15  ;;  %v2445_v10 = vld [vmem:[%s3080_s4] sm:$0xff]  }
 0x20b   : > { %v986_v20 = vsel %vm972_vm3, %v2778_v2, %v2394_v16  ;;  %v985_v21 = vsel %vm972_vm3, %v2775_v1, %v2393_v17  ;;  %v1012_v23 = vpack.c.bf16 %v988_v18, %v987_v19  ;;  %2276 = vmatprep.subr.bf16.mxu0 %v2445_v10 }
 0x20c   : > { %v1011_v22 = vpack.c.bf16 %v986_v20, %v985_v21  ;;  %2277 = vmatpush3.bf16.msra.mxu0 %v2445_v10 }
 0x20e   : > { %2222 = vmatprep.mubr.msk.bf16.mxu1 %vm1022_vm5, %v1011_v22 }
 0x20f   : > { %2223 = vmatmul.mubr.msk.bf16.gmra.mrb[12].mxu1 %vm1022_vm5, %v1012_v23  ;;  %v2407_v24 = vpop.permute.xlu1 %2406 }
 0x210   : > { %v2409_v25 = vunpack.i.h.bf16 %v2407_v24  ;;  %v2408_v26 = vunpack.i.l.bf16 %v2407_v24  ;;  %v2402_v27 = vpop.permute.xlu0 %2401 }
 0x211   : > { %v2404_v38 = vunpack.i.h.bf16 %v2402_v27  ;;  %v2403_v28 = vunpack.i.l.bf16 %v2402_v27 }
 0x212   : > { %v992_v0 = vsel %vm972_vm3, %v2806_v48, %v2409_v25  ;;  %v991_v2 = vsel %vm972_vm3, %v2803_v47, %v2408_v26 }
 0x213   : > { %v990_v1 = vsel %vm972_vm3, %v2813_v50, %v2404_v38  ;;  %v989_v29 = vsel %vm972_vm3, %v2810_v49, %v2403_v28  ;;  %v1014_v31 = vpack.c.bf16 %v992_v0, %v991_v2 }
 0x214   : > { %v1013_v30 = vpack.c.bf16 %v990_v1, %v989_v29 }
 0x216   : > { %2226 = vmatprep.mubr.msk.bf16.mxu1 %vm1022_vm5, %v1013_v30 }
 0x217   : > { %2227 = vmatmul.mubr.msk.bf16.gmra.mrb[16].mxu1 %vm1022_vm5, %v1014_v31  ;;  %v2417_v32 = vpop.permute.xlu1 %2416 }
 0x218   : > { %v2419_v33 = vunpack.i.h.bf16 %v2417_v32  ;;  %v2418_v34 = vunpack.i.l.bf16 %v2417_v32  ;;  %v2412_v35 = vpop.permute.xlu0 %2411 }
 0x219   : > { %v2414_v36 = vunpack.i.h.bf16 %v2412_v35  ;;  %v2413_v37 = vunpack.i.l.bf16 %v2412_v35 }
 0x21a   : > { %v996_v39 = vsel %vm972_vm3, %v2806_v48, %v2419_v33  ;;  %v995_v40 = vsel %vm972_vm3, %v2803_v47, %v2418_v34 }
 0x21b   : > { %v994_v41 = vsel %vm972_vm3, %v2813_v50, %v2414_v36  ;;  %v993_v42 = vsel %vm972_vm3, %v2810_v49, %v2413_v37  ;;  %v1016_v45 = vpack.c.bf16 %v996_v39, %v995_v40 }
 0x21c   : > { %v1015_v44 = vpack.c.bf16 %v994_v41, %v993_v42 }
 0x21e   : > { %2230 = vmatprep.mubr.msk.bf16.mxu1 %vm1022_vm5, %v1015_v44 }
 0x21f   : > { %2231 = vmatmul.mubr.msk.bf16.gmra.mrb[20].mxu1 %vm1022_vm5, %v1016_v45  ;;  %v2427_v46 = vpop.permute.xlu1 %2426 }
 0x220   : > { %v2429_v51 = vunpack.i.h.bf16 %v2427_v46  ;;  %v2428_v52 = vunpack.i.l.bf16 %v2427_v46  ;;  %v2422_v53 = vpop.permute.xlu0 %2421 }
 0x221   : > { %v2424_v54 = vunpack.i.h.bf16 %v2422_v53  ;;  %v2423_v55 = vunpack.i.l.bf16 %v2422_v53 }
 0x222   : > { %v1000_v56 = vsel %vm972_vm3, %v2806_v48, %v2429_v51  ;;  %v999_v14 = vsel %vm972_vm3, %v2803_v47, %v2428_v52 }
 0x223   : > { %v998_v57 = vsel %vm972_vm3, %v2813_v50, %v2424_v54  ;;  %v997_v58 = vsel %vm972_vm3, %v2810_v49, %v2423_v55  ;;  %v1018_v11 = vpack.c.bf16 %v1000_v56, %v999_v14 }
 0x224   : > { %v1017_v59 = vpack.c.bf16 %v998_v57, %v997_v58 }
 0x226   : > { %2234 = vmatprep.mubr.msk.bf16.mxu1 %vm1022_vm5, %v1017_v59 }
 0x227   : > { %2235 = vmatmul.mubr.msk.bf16.gmra.mrb[24].mxu1 %vm1022_vm5, %v1018_v11  ;;  %v2437_v60 = vpop.permute.xlu1 %2436 }
 0x228   : > { %v2439_v61 = vunpack.i.h.bf16 %v2437_v60  ;;  %v2438_v62 = vunpack.i.l.bf16 %v2437_v60  ;;  %v2432_v63 = vpop.permute.xlu0 %2431 }
 0x229   : > { %v2434_v3 = vunpack.i.h.bf16 %v2432_v63  ;;  %v2433_v4 = vunpack.i.l.bf16 %v2432_v63 }
 0x22a   : > { %v1004_v5 = vsel %vm972_vm3, %v2806_v48, %v2439_v61  ;;  %v1003_v6 = vsel %vm972_vm3, %v2803_v47, %v2438_v62 }
 0x22b   : > { %v1002_v7 = vsel %vm972_vm3, %v2813_v50, %v2434_v3  ;;  %v1001_v8 = vsel %vm972_vm3, %v2810_v49, %v2433_v4  ;;  %v1020_v13 = vpack.c.bf16 %v1004_v5, %v1003_v6 }
 0x22c   : > { %v1019_v12 = vpack.c.bf16 %v1002_v7, %v1001_v8 }
 0x22e   : > { %2238 = vmatprep.mubr.msk.bf16.mxu1 %vm1022_vm5, %v1019_v12 }
 0x22f   : > { %2239 = vmatmul.mubr.msk.bf16.gmra.mrb[28].mxu1 %vm1022_vm5, %v1020_v13 }
 0x2ca   : > { %v2212_v48 = vpop.f32.mrb[0].mxu1 }
 0x2cb   : > { %v1109_v47 = vpop.f32.mrb[1].mxu1  ;;  %v1238_v9 = vmax.f32 %v2212_v48, 0.0 }
 0x2cc   : > { %v2213_v15 = vpop.f32.mrb[2].mxu1  ;;  %v1236_v17 = vmax.f32 %v1109_v47, 0.0 }
 0x2cd   : > { %v1239_v50 = vmax.f32 %v2213_v15, 0.0  ;;  %v1112_v16 = vpop.f32.mrb[3].mxu1 }
 0x2ce   : > { %v1237_v49 = vmax.f32 %v1112_v16, 0.0 }
 0x2cf   : > { %v1269_v18 = vpack.c.bf16 %v1239_v50, %v1238_v9 }
 0x2d0   : > { %v1268_v19 = vpack.c.bf16 %v1237_v49, %v1236_v17 }
 0x2d2   : > { %v2216_v20 = vpop.f32.mrb[4].mxu1  ;;  %2244 = vmatprep.mubr.msk.bf16.mxu1 %vm1292_vm6, %v1268_v19 }
 0x2d3   : > { %v1125_v21 = vpop.f32.mrb[5].mxu1  ;;  %2245 = vmatmul.mubr.msk.bf16.vlgmr.msra.gmra.mrb[32].mxu1 %vm1292_vm6, %v1269_v18  ;;  %v1242_v23 = vmax.f32 %v2216_v20, 0.0 }
 0x2d4   : > { %v2217_v22 = vpop.f32.mrb[6].mxu1  ;;  %v1240_v26 = vmax.f32 %v1125_v21, 0.0 }
 0x2d5   : > { %v1243_v24 = vmax.f32 %v2217_v22, 0.0  ;;  %v1128_v25 = vpop.f32.mrb[7].mxu1 }
 0x2d6   : > { %v1241_v27 = vmax.f32 %v1128_v25, 0.0 }
 0x2d7   : > { %v1271_v38 = vpack.c.bf16 %v1243_v24, %v1242_v23 }
 0x2d8   : > { %v1270_v28 = vpack.c.bf16 %v1241_v27, %v1240_v26  ;;  %v2446_v27 = vld [vmem:[%s3080_s4 + $0x8] sm:$0xff]  }
 0x2d9   : > { %2278 = vmatprep.subr.bf16.mxu0 %v2446_v27 }
 0x2da   : > { %v2220_v0 = vpop.f32.mrb[8].mxu1  ;;  %2248 = vmatprep.mubr.msk.bf16.mxu1 %vm1292_vm6, %v1270_v28  ;;  %2279 = vmatpush3.bf16.msra.mxu0 %v2446_v27 }
 0x2db   : > { %v1141_v2 = vpop.f32.mrb[9].mxu1  ;;  %2249 = vmatmul.mubr.msk.bf16.gmra.mrb[36].mxu1 %vm1292_vm6, %v1271_v38  ;;  %v1246_v29 = vmax.f32 %v2220_v0, 0.0  ;;  %2288 = vmatprep.subr.bf16.mxu0 %v2523_v43 }
 0x2dc   : > { %v2221_v1 = vpop.f32.mrb[10].mxu1  ;;  %v1244_v32 = vmax.f32 %v1141_v2, 0.0 }
 0x2dd   : > { %v1247_v30 = vmax.f32 %v2221_v1, 0.0  ;;  %v1144_v31 = vpop.f32.mrb[11].mxu1 }
 0x2de   : > { %v1245_v33 = vmax.f32 %v1144_v31, 0.0 }
 0x2df   : > { %v1273_v34 = vpack.c.bf16 %v1247_v30, %v1246_v29 }
 0x2e0   : > { %v1272_v35 = vpack.c.bf16 %v1245_v33, %v1244_v32 }
 0x2e2   : > { %v2224_v36 = vpop.f32.mrb[12].mxu1  ;;  %2252 = vmatprep.mubr.msk.bf16.mxu1 %vm1292_vm6, %v1272_v35 }
 0x2e3   : > { %v1157_v37 = vpop.f32.mrb[13].mxu1  ;;  %2253 = vmatmul.mubr.msk.bf16.gmra.mrb[40].mxu1 %vm1292_vm6, %v1273_v34  ;;  %v1250_v40 = vmax.f32 %v2224_v36, 0.0 }
 0x2e4   : > { %v2225_v39 = vpop.f32.mrb[14].mxu1  ;;  %v1248_v44 = vmax.f32 %v1157_v37, 0.0 }
 0x2e5   : > { %v1251_v41 = vmax.f32 %v2225_v39, 0.0  ;;  %v1160_v42 = vpop.f32.mrb[15].mxu1 }
 0x2e6   : > { %v1249_v45 = vmax.f32 %v1160_v42, 0.0 }
 0x2e7   : > { %v1275_v46 = vpack.c.bf16 %v1251_v41, %v1250_v40 }
 0x2e8   : > { %v1274_v51 = vpack.c.bf16 %v1249_v45, %v1248_v44 }
 0x2ea   : > { %v2228_v52 = vpop.f32.mrb[16].mxu1  ;;  %2256 = vmatprep.mubr.msk.bf16.mxu1 %vm1292_vm6, %v1274_v51 }
 0x2eb   : > { %v1173_v53 = vpop.f32.mrb[17].mxu1  ;;  %2257 = vmatmul.mubr.msk.bf16.gmra.mrb[44].mxu1 %vm1292_vm6, %v1275_v46  ;;  %v1254_v55 = vmax.f32 %v2228_v52, 0.0 }
 0x2ec   : > { %v2229_v54 = vpop.f32.mrb[18].mxu1  ;;  %v1252_v57 = vmax.f32 %v1173_v53, 0.0 }
 0x2ed   : > { %v1255_v56 = vmax.f32 %v2229_v54, 0.0  ;;  %v1176_v14 = vpop.f32.mrb[19].mxu1 }
 0x2ee   : > { %v1253_v58 = vmax.f32 %v1176_v14, 0.0 }
 0x2ef   : > { %v1277_v59 = vpack.c.bf16 %v1255_v56, %v1254_v55 }
 0x2f0   : > { %v1276_v11 = vpack.c.bf16 %v1253_v58, %v1252_v57 }
 0x2f2   : > { %v2232_v60 = vpop.f32.mrb[20].mxu1  ;;  %2260 = vmatprep.mubr.msk.bf16.mxu1 %vm1292_vm6, %v1276_v11 }
 0x2f3   : > { %v1189_v61 = vpop.f32.mrb[21].mxu1  ;;  %2261 = vmatmul.mubr.msk.bf16.gmra.mrb[48].mxu1 %vm1292_vm6, %v1277_v59  ;;  %v1258_v63 = vmax.f32 %v2232_v60, 0.0 }
 0x2f4   : > { %v2233_v62 = vpop.f32.mrb[22].mxu1  ;;  %v1256_v5 = vmax.f32 %v1189_v61, 0.0 }
 0x2f5   : > { %v1259_v3 = vmax.f32 %v2233_v62, 0.0  ;;  %v1192_v4 = vpop.f32.mrb[23].mxu1 }
 0x2f6   : > { %v1257_v6 = vmax.f32 %v1192_v4, 0.0 }
 0x2f7   : > { %v1279_v7 = vpack.c.bf16 %v1259_v3, %v1258_v63 }
 0x2f8   : > { %v1278_v8 = vpack.c.bf16 %v1257_v6, %v1256_v5 }
 0x2fa   : > { %v2236_v12 = vpop.f32.mrb[24].mxu1  ;;  %2264 = vmatprep.mubr.msk.bf16.mxu1 %vm1292_vm6, %v1278_v8 }
 0x2fb   : > { %v1205_v13 = vpop.f32.mrb[25].mxu1  ;;  %2265 = vmatmul.mubr.msk.bf16.gmra.mrb[52].mxu1 %vm1292_vm6, %v1279_v7  ;;  %v1262_v48 = vmax.f32 %v2236_v12, 0.0 }
 0x2fc   : > { %v2237_v10 = vpop.f32.mrb[26].mxu1  ;;  %v1260_v9 = vmax.f32 %v1205_v13, 0.0 }
 0x2fd   : > { %v1263_v47 = vmax.f32 %v2237_v10, 0.0  ;;  %v1208_v15 = vpop.f32.mrb[27].mxu1 }
 0x2fe   : > { %v1261_v50 = vmax.f32 %v1208_v15, 0.0 }
 0x2ff   : > { %v1281_v16 = vpack.c.bf16 %v1263_v47, %v1262_v48 }
 0x300   : > { %v1280_v17 = vpack.c.bf16 %v1261_v50, %v1260_v9 }
 0x302   : > { %v2240_v49 = vpop.f32.mrb[28].mxu1  ;;  %2268 = vmatprep.mubr.msk.bf16.mxu1 %vm1292_vm6, %v1280_v17 }
 0x303   : > { %v1221_v18 = vpop.f32.mrb[29].mxu1  ;;  %2269 = vmatmul.mubr.msk.bf16.gmra.mrb[56].mxu1 %vm1292_vm6, %v1281_v16  ;;  %v1266_v20 = vmax.f32 %v2240_v49, 0.0 }
 0x304   : > { %v2241_v19 = vpop.f32.mrb[30].mxu1  ;;  %v1264_v23 = vmax.f32 %v1221_v18, 0.0 }
 0x305   : > { %v1267_v21 = vmax.f32 %v2241_v19, 0.0  ;;  %v1224_v22 = vpop.f32.mrb[31].mxu1 }
 0x306   : > { %v1265_v24 = vmax.f32 %v1224_v22, 0.0 }
 0x307   : > { %v1283_v25 = vpack.c.bf16 %v1267_v21, %v1266_v20 }
 0x308   : > { %v1282_v26 = vpack.c.bf16 %v1265_v24, %v1264_v23 }
 0x30a   : > { %2272 = vmatprep.mubr.msk.bf16.mxu1 %vm1292_vm6, %v1282_v26 }
 0x30b   : > { %2273 = vmatmul.mubr.msk.bf16.gmra.mrb[60].mxu1 %vm1292_vm6, %v1283_v25 }
 0x3a6   : > { %v2246_v38 = vpop.f32.mrb[32].mxu1 }
 0x3a7   : > { %v1375_v28 = vpop.f32.mrb[33].mxu1  ;;  %v1504_v1 = vmax.f32 %v2246_v38, 0.0 }
 0x3a8   : > { %v2247_v0 = vpop.f32.mrb[34].mxu1  ;;  %v1502_v29 = vmax.f32 %v1375_v28, 0.0 }
 0x3a9   : > { %v1378_v2 = vpop.f32.mrb[35].mxu1  ;;  %v1505_v31 = vmax.f32 %v2247_v0, 0.0  ;;  %v1549_v37 = vsel %vm1534_vm7, %v1504_v1, -inf }
 0x3aa   : > { %v1503_v34 = vmax.f32 %v1378_v2, 0.0  ;;  %v1535_v42 = vsel %vm1534_vm7, %v1502_v29, -inf }
 0x3ab   : > { %v1556_v51 = vsel %vm1534_vm7, %v1505_v31, -inf }
 0x3ac   : > { %v1542_v54 = vsel %vm1534_vm7, %v1503_v34, -inf }
 0x3ae   : > { %v2250_v30 = vpop.f32.mrb[36].mxu1 }
 0x3af   : > { %v1508_v32 = vmax.f32 %v2250_v30, 0.0  ;;  %v1391_v33 = vpop.f32.mrb[37].mxu1 }
 0x3b0   : > { %v1506_v35 = vmax.f32 %v1391_v33, 0.0  ;;  %v2251_v36 = vpop.f32.mrb[38].mxu1 }
 0x3b1   : > { %v1550_v39 = vsel %vm1534_vm7, %v1508_v32, -inf  ;;  %v1509_v40 = vmax.f32 %v2251_v36, 0.0  ;;  %v1394_v41 = vpop.f32.mrb[39].mxu1 }
 0x3b2   : > { %v1551_v44 = vmax.f32 %v1549_v37, %v1550_v39  ;;  %v1536_v45 = vsel %vm1534_vm7, %v1506_v35, -inf  ;;  %v1507_v46 = vmax.f32 %v1394_v41, 0.0 }
 0x3b3   : > { %v1537_v52 = vmax.f32 %v1535_v42, %v1536_v45  ;;  %v1557_v53 = vsel %vm1534_vm7, %v1509_v40, -inf }
 0x3b4   : > { %v1558_v55 = vmax.f32 %v1556_v51, %v1557_v53  ;;  %v1543_v56 = vsel %vm1534_vm7, %v1507_v46, -inf }
 0x3b5   : > { %v1544_v14 = vmax.f32 %v1542_v54, %v1543_v56 }
 0x3b6   : > { %v2254_v57 = vpop.f32.mrb[40].mxu1 }
 0x3b7   : > { %v1512_v58 = vmax.f32 %v2254_v57, 0.0  ;;  %v1407_v59 = vpop.f32.mrb[41].mxu1 }
 0x3b8   : > { %v1510_v11 = vmax.f32 %v1407_v59, 0.0  ;;  %v2255_v60 = vpop.f32.mrb[42].mxu1 }
 0x3b9   : > { %v1552_v61 = vsel %vm1534_vm7, %v1512_v58, -inf  ;;  %v1513_v62 = vmax.f32 %v2255_v60, 0.0  ;;  %v1410_v63 = vpop.f32.mrb[43].mxu1 }
 0x3ba   : > { %v1553_v3 = vmax.f32 %v1551_v44, %v1552_v61  ;;  %v1538_v4 = vsel %vm1534_vm7, %v1510_v11, -inf  ;;  %v1511_v5 = vmax.f32 %v1410_v63, 0.0 }
 0x3bb   : > { %v1539_v6 = vmax.f32 %v1537_v52, %v1538_v4  ;;  %v1559_v7 = vsel %vm1534_vm7, %v1513_v62, -inf }
 0x3bc   : > { %v1560_v8 = vmax.f32 %v1558_v55, %v1559_v7  ;;  %v1545_v12 = vsel %vm1534_vm7, %v1511_v5, -inf }
 0x3bd   : > { %v1546_v13 = vmax.f32 %v1544_v14, %v1545_v12 }
 0x3be   : > { %v2258_v10 = vpop.f32.mrb[44].mxu1 }
 0x3bf   : > { %v1516_v48 = vmax.f32 %v2258_v10, 0.0  ;;  %v1423_v47 = vpop.f32.mrb[45].mxu1 }
 0x3c0   : > { %v1514_v15 = vmax.f32 %v1423_v47, 0.0  ;;  %v2259_v9 = vpop.f32.mrb[46].mxu1 }
 0x3c1   : > { %v1554_v50 = vsel %vm1534_vm7, %v1516_v48, -inf  ;;  %v1517_v16 = vmax.f32 %v2259_v9, 0.0  ;;  %v1426_v17 = vpop.f32.mrb[47].mxu1 }
 0x3c2   : > { %v1555_v49 = vmax.f32 %v1553_v3, %v1554_v50  ;;  %v1540_v18 = vsel %vm1534_vm7, %v1514_v15, -inf  ;;  %v1515_v19 = vmax.f32 %v1426_v17, 0.0 }
 0x3c3   : > { %v1541_v20 = vmax.f32 %v1539_v6, %v1540_v18  ;;  %v1561_v21 = vsel %vm1534_vm7, %v1517_v16, -inf }
 0x3c4   : > { %v1562_v22 = vmax.f32 %v1560_v8, %v1561_v21  ;;  %v1547_v23 = vsel %vm1534_vm7, %v1515_v19, -inf }
 0x3c5   : > { %v1548_v24 = vmax.f32 %v1546_v13, %v1547_v23 }
 0x3c6   : > { %v1592_v25 = vpack.c.bf16 %v1562_v22, %v1555_v49  ;;  %v2262_v26 = vpop.f32.mrb[48].mxu1 }
 0x3c7   : > { %v1591_v27 = vpack.c.bf16 %v1548_v24, %v1541_v20  ;;  %v1439_v38 = vpop.f32.mrb[49].mxu1  ;;  %v1520_v2 = vmax.f32 %v2262_v26, 0.0  ;;  %v2447_v26 = vld [vmem:[%s3081_s5] sm:$0xff]  }
 0x3c8   : > { %v2263_v28 = vpop.f32.mrb[50].mxu1  ;;  %v1518_v1 = vmax.f32 %v1439_v38, 0.0  ;;  %v2449_v38 = vld [vmem:[%s3081_s5 + $0x10] sm:$0xff]  }
 0x3c9   : > { %v1442_v0 = vpop.f32.mrb[51].mxu1  ;;  %2280 = vmatprep.mubr.msk.bf16.mxu0 %vm1534_vm7, %v1591_v27  ;;  %v1521_v30 = vmax.f32 %v2263_v28, 0.0  ;;  %v1577_v36 = vsel %vm1534_vm7, %v1520_v2, -inf  ;;  %v2448_v27 = vld [vmem:[%s3081_s5 + $0x8] sm:$0xff]   ;;  %v2450_v28 = vld [vmem:[%s3081_s5 + $0x18] sm:$0xff]  }
 0x3ca   : > { %2281 = vmatmul.mubr.msk.bf16.vlgmr.msra.gmra.mrb[32].mxu0 %vm1534_vm7, %v1592_v25  ;;  %v1519_v33 = vmax.f32 %v1442_v0, 0.0  ;;  %v1563_v41 = vsel %vm1534_vm7, %v1518_v1, -inf }
 0x3cb   : > { %v1584_v46 = vsel %vm1534_vm7, %v1521_v30, -inf  ;;  %2289 = vmatpush3.bf16.msra.mxu0 %v2447_v26 }
 0x3cc   : > { %v1570_v53 = vsel %vm1534_vm7, %v1519_v33, -inf  ;;  %2290 = vmatprep.subr.bf16.mxu0 %v2523_v43 }
 0x3ce   : > { %v2266_v29 = vpop.f32.mrb[52].mxu1 }
 0x3cf   : > { %v1524_v31 = vmax.f32 %v2266_v29, 0.0  ;;  %v1455_v32 = vpop.f32.mrb[53].mxu1  ;;  %2291 = vmatpush3.bf16.msra.mxu0 %v2448_v27 }
 0x3d0   : > { %v1522_v34 = vmax.f32 %v1455_v32, 0.0  ;;  %v2267_v35 = vpop.f32.mrb[54].mxu1  ;;  %2292 = vmatprep.subr.bf16.mxu0 %v2523_v43 }
 0x3d1   : > { %v1578_v37 = vsel %vm1534_vm7, %v1524_v31, -inf  ;;  %v1525_v39 = vmax.f32 %v2267_v35, 0.0  ;;  %v1458_v40 = vpop.f32.mrb[55].mxu1 }
 0x3d2   : > { %v1579_v42 = vmax.f32 %v1577_v36, %v1578_v37  ;;  %v1564_v44 = vsel %vm1534_vm7, %v1522_v34, -inf  ;;  %v1523_v45 = vmax.f32 %v1458_v40, 0.0 }
 0x3d3   : > { %v1565_v51 = vmax.f32 %v1563_v41, %v1564_v44  ;;  %v1585_v52 = vsel %vm1534_vm7, %v1525_v39, -inf  ;;  %2293 = vmatpush3.bf16.msra.mxu0 %v2449_v38 }
 0x3d4   : > { %v1586_v54 = vmax.f32 %v1584_v46, %v1585_v52  ;;  %v1571_v55 = vsel %vm1534_vm7, %v1523_v45, -inf  ;;  %2294 = vmatprep.subr.bf16.mxu0 %v2523_v43 }
 0x3d5   : > { %v1572_v56 = vmax.f32 %v1570_v53, %v1571_v55 }
 0x3d6   : > { %v2270_v14 = vpop.f32.mrb[56].mxu1 }
 0x3d7   : > { %v1528_v57 = vmax.f32 %v2270_v14, 0.0  ;;  %v1471_v58 = vpop.f32.mrb[57].mxu1  ;;  %2295 = vmatpush3.bf16.msra.mxu0 %v2450_v28 }
 0x3d8   : > { %v1526_v59 = vmax.f32 %v1471_v58, 0.0  ;;  %v2271_v11 = vpop.f32.mrb[58].mxu1  ;;  %2300 = vmatprep.subr.bf16.mxu0 %v2523_v43 }
 0x3d9   : > { %v1580_v60 = vsel %vm1534_vm7, %v1528_v57, -inf  ;;  %v1529_v61 = vmax.f32 %v2271_v11, 0.0  ;;  %v1474_v62 = vpop.f32.mrb[59].mxu1 }
 0x3da   : > { %v1581_v63 = vmax.f32 %v1579_v42, %v1580_v60  ;;  %v1566_v3 = vsel %vm1534_vm7, %v1526_v59, -inf  ;;  %v1527_v4 = vmax.f32 %v1474_v62, 0.0 }
 0x3db   : > { %v1567_v5 = vmax.f32 %v1565_v51, %v1566_v3  ;;  %v1587_v6 = vsel %vm1534_vm7, %v1529_v61, -inf }
 0x3dc   : > { %v1588_v7 = vmax.f32 %v1586_v54, %v1587_v6  ;;  %v1573_v8 = vsel %vm1534_vm7, %v1527_v4, -inf }
 0x3dd   : > { %v1574_v12 = vmax.f32 %v1572_v56, %v1573_v8 }
 0x3de   : > { %v2274_v13 = vpop.f32.mrb[60].mxu1 }
 0x3df   : > { %v1532_v10 = vmax.f32 %v2274_v13, 0.0  ;;  %v1487_v48 = vpop.f32.mrb[61].mxu1 }
 0x3e0   : > { %v1530_v47 = vmax.f32 %v1487_v48, 0.0  ;;  %v2275_v15 = vpop.f32.mrb[62].mxu1 }
 0x3e1   : > { %v1582_v9 = vsel %vm1534_vm7, %v1532_v10, -inf  ;;  %v1533_v50 = vmax.f32 %v2275_v15, 0.0  ;;  %v1490_v16 = vpop.f32.mrb[63].mxu1 }
 0x3e2   : > { %v1583_v17 = vmax.f32 %v1581_v63, %v1582_v9  ;;  %v1568_v49 = vsel %vm1534_vm7, %v1530_v47, -inf  ;;  %v1531_v18 = vmax.f32 %v1490_v16, 0.0 }
 0x3e3   : > { %v1569_v19 = vmax.f32 %v1567_v5, %v1568_v49  ;;  %v1589_v20 = vsel %vm1534_vm7, %v1533_v50, -inf  ;;  %v2451_v50 = vld [vmem:[%s3082_s6] sm:$0xff]  }
 0x3e4   : > { %v1590_v21 = vmax.f32 %v1588_v7, %v1589_v20  ;;  %v1575_v22 = vsel %vm1534_vm7, %v1531_v18, -inf }
 0x3e5   : > { %v1576_v23 = vmax.f32 %v1574_v12, %v1575_v22 }
 0x3e6   : > { %v1594_v24 = vpack.c.bf16 %v1590_v21, %v1583_v17  ;;  %v2452_v17 = vld [vmem:[%s3082_s6 + $0x8] sm:$0xff]   ;;  %v2453_v21 = vld [vmem:[%s3083_s7] sm:$0xff]  }
 0x3e7   : > { %v1593_v25 = vpack.c.bf16 %v1576_v23, %v1569_v19 }
 0x3e9   : > { %2284 = vmatprep.mubr.msk.bf16.mxu0 %vm1534_vm7, %v1593_v25 }
 0x3ea   : > { %2285 = vmatmul.mubr.msk.bf16.gmra.mrb[36].mxu0 %vm1534_vm7, %v1594_v24 }
 0x3eb   : > { %2296 = vmatprep.mubr.msk.bf16.mxu0 %vm2525_vm8, %v2523_v43 }
 0x49d   : > { %v2282_v0 = vpop.f32.mrb[32].mxu0 }
 0x49e   : > { %v1690_v2 = vmax.f32 %v2282_v0, 0.0  ;;  %v1657_v1 = vpop.f32.mrb[33].mxu0  ;;  %v2089_v0 = vld [vmem:[%s3084_s8] ss:$0 sm:$0xff] }
 0x49f   : > { %v1688_v29 = vmax.f32 %v1657_v1, 0.0  ;;  %v2283_v30 = vpop.f32.mrb[34].mxu0 }
 0x4a0   : > { %v1698_v31 = vsel %vm594_vm4, %v1690_v2, -inf  ;;  %v1691_v32 = vmax.f32 %v2283_v30, 0.0  ;;  %v1660_v33 = vpop.f32.mrb[35].mxu0 }
 0x4a1   : > { %v1696_v34 = vsel %vm594_vm4, %v1688_v29, -inf  ;;  %v1689_v35 = vmax.f32 %v1660_v33, 0.0 }
 0x4a2   : > { %v1699_v36 = vmax.f32 %v1696_v34, %v1698_v31  ;;  %v1700_v37 = vsel %vm594_vm4, %v1691_v32, -inf }
 0x4a3   : > { %v1697_v39 = vsel %vm594_vm4, %v1689_v35, -inf }
 0x4a4   : > { %v1701_v40 = vmax.f32 %v1697_v39, %v1700_v37 }
 0x4a6   : > { %v1702_v41 = vmax.f32 %v1699_v36, %v1701_v40 }
 0x4a8   : > { %v1703_v42 = vrot.slane %v1702_v41, 4 }
 0x4aa   : > { %v1704_v45 = vmax.f32 %v1702_v41, %v1703_v42 }
 0x4ac   : > { %v1705_v58 = vrot.slane %v1704_v45, 2 }
 0x4ae   : > { %v1706_v62 = vmax.f32 %v1704_v45, %v1705_v58 }
 0x4b0   : > { %v1707_v4 = vrot.slane %v1706_v62, 1 }
 0x4b2   : > { %v1708_v7 = vmax.f32 %v1706_v62, %v1707_v4 }
 0x4b4   : > { %v1722_v13 = vpack.c.bf16 %v1708_v7, %v1708_v7 }
 0x4b6   : > { %v1734_v47 = vunpack.c.l.b16 %v1722_v13 }
 0x4bd   : > { %v2286_v44 = vpop.f32.mrb[36].mxu0 }
 0x4be   : > { %v1694_v46 = vmax.f32 %v2286_v44, 0.0  ;;  %v1673_v51 = vpop.f32.mrb[37].mxu0 }
 0x4bf   : > { %v1692_v52 = vmax.f32 %v1673_v51, 0.0  ;;  %v2287_v53 = vpop.f32.mrb[38].mxu0 }
 0x4c0   : > { %v1711_v54 = vsel %vm594_vm4, %v1694_v46, -inf  ;;  %v1695_v55 = vmax.f32 %v2287_v53, 0.0  ;;  %v1676_v56 = vpop.f32.mrb[39].mxu0 }
 0x4c1   : > { %v1709_v14 = vsel %vm594_vm4, %v1692_v52, -inf  ;;  %v1693_v57 = vmax.f32 %v1676_v56, 0.0 }
 0x4c2   : > { %v1712_v59 = vmax.f32 %v1709_v14, %v1711_v54  ;;  %v1713_v11 = vsel %vm594_vm4, %v1695_v55, -inf }
 0x4c3   : > { %v1710_v60 = vsel %vm594_vm4, %v1693_v57, -inf }
 0x4c4   : > { %v1714_v61 = vmax.f32 %v1710_v60, %v1713_v11 }
 0x4c6   : > { %v1715_v63 = vmax.f32 %v1712_v59, %v1714_v61 }
 0x4c8   : > { %v1716_v3 = vrot.slane %v1715_v63, 4 }
 0x4ca   : > { %v1717_v5 = vmax.f32 %v1715_v63, %v1716_v3 }
 0x4cc   : > { %v1718_v6 = vrot.slane %v1717_v5, 2 }
 0x4ce   : > { %v1719_v8 = vmax.f32 %v1717_v5, %v1718_v6 }
 0x4d0   : > { %v1720_v12 = vrot.slane %v1719_v8, 1 }
 0x4d2   : > { %v1721_v10 = vmax.f32 %v1719_v8, %v1720_v12 }
 0x4d4   : > { %v1723_v48 = vpack.c.bf16 %v1721_v10, %v1721_v10 }
 0x4d6   : > { %v1735_v15 = vunpack.c.l.b16 %v1723_v48 }
 0x4d8   : > { %v1737_v9 = vsel %vm1736_vm9, %v1735_v15, %v1734_v47 }
 0x4d9   : > { %v1738_v16 = vpack.c.b16 %v1737_v9, %v1737_v9 }
 0x4db   : > { %2297 = vmatmul.mubr.msk.bf16.vlgmr.msra.gmra.mrb[40].mxu0 %vm594_vm4, %v1738_v16 }
 0x4dc   : > { %2301 = vmatpush3.bf16.msra.mxu0 %v2451_v50  ;;  %2304 = vmatprep.mubr.msk.bf16.mxu0 %vm2525_vm8, %v2523_v43 }
 0x4dd   : > { %2302 = vmatprep.subr.bf16.mxu0 %v2523_v43 }
 0x4e0   : > { %2303 = vmatpush3.bf16.msra.mxu0 %v2452_v17 }
 0x4e1   : > { %2308 = vmatprep.subr.bf16.mxu0 %v2523_v43 }
 0x5ae   : > { %v1800_v49 = vpop.f32.mrb[40].mxu0 }
 0x5af   : > { %v1806_v18 = vmax.f32 %v1800_v49, 0.0  ;;  %v2298_v19 = vpop.f32.mrb[41].mxu0 }
 0x5b0   : > { %v1803_v20 = vpop.f32.mrb[42].mxu0 }
 0x5b1   : > { %v1807_v22 = vpack.c.bf16 %v1806_v18, %v1806_v18  ;;  %v2299_v23 = vpop.f32.mrb[43].mxu0 }
 0x5b3   : > { %2305 = vmatmul.mubr.msk.bf16.vlgmr.msra.gmra.mrb[44].mxu0 %vm1534_vm7, %v1807_v22 }
 0x5b4   : > { %2309 = vmatpush3.bf16.msra.mxu0 %v2453_v21  ;;  %2310 = vmatprep.mubr.msk.bf16.mxu0 %vm2525_vm8, %v2523_v43 }
 0x686   : > { %v1861_v24 = vpop.f32.mrb[44].mxu0 }
 0x687   : > { %v1867_v25 = vmax.f32 %v1861_v24, 0.0  ;;  %v2306_v26 = vpop.f32.mrb[45].mxu0 }
 0x688   : > { %v1864_v27 = vpop.f32.mrb[46].mxu0 }
 0x689   : > { %v1868_v38 = vpack.c.bf16 %v1867_v25, %v1867_v25  ;;  %v2307_v28 = vpop.f32.mrb[47].mxu0 }
 0x68b   : > { %2311 = vmatmul.mubr.msk.bf16.vlgmr.msra.gmra.mrb[48].mxu0 %vm1292_vm6, %v1868_v38 }
 0x75e   : > { %v1921_v2 = vpop.f32.mrb[48].mxu0 }
 0x75f   : > { %v1922_v43 = vadd.f32 %v2089_v0, %v1921_v2  ;;  %v2312_v1 = vpop.f32.mrb[49].mxu0 }
 0x760   : > { %v1924_v29 = vpop.f32.mrb[50].mxu0 }
 0x761   : > { %1927 = vst [vmem:[%s340_s22] sm:$0x3] %v1922_v43  ;;  %v2313_v30 = vpop.f32.mrb[51].mxu0 }
 0x762   : > { %2471 = shalt.err (!%p2468_p3)
}
 0x763   : > { %s2472_s29 = scalar_lea.hbm %s3034_s26, 32  ;;  %s2476_s22 = scalar_lea.hbm %s3085_s9, 64 }
 0x764   : > { %p2473_p4 = scmp.ne.s32.totalorder %s3034_s26, %s2472_s29  ;;  %p2477_p9 = scmp.lt.u32.totalorder %s3034_s26, %s3085_s9 }
 0x765   : > { %p2478_p10 = scmp.lt.u32.totalorder %s2476_s22, %s2472_s29  ;;  %p2480_p12 = scmp.lt.u32.totalorder %s2472_s29, %s3034_s26 }
 0x766   : > { %p2474_p7 = pnand %p2473_p4, %p2615_p5 }
 0x767   : > { %p2479_p11 = por %p2478_p10, %p2477_p9 }
 0x768   : > { %p2475_p8 = pneg %p2474_p7 }
 0x769   : > { %p2481_p13 = por %p2480_p12, %p2479_p11 }
 0x76b   : > { %p2482_p0 = pnand %p2481_p13, %p2475_p8 }
 0x76d   : > { %2485 = shalt.err (!%p2482_p0)
}
 0x76e   : > { %2315 = dma.vmem_to_hbm [thread:$0]  (%p2615_p5), %s3036_s23, 32, %s3034_s26, %s1929_s27  }
 0x76f PF: > { %p2321_p1 = scmp.ge.s32.totalorder %s2520_s12, 2  ;;  %s1954_s13 = sand.u32 1, %s2508_s30  }
 0x770   : > { %s1955_s28 = scalar_lea.sflag [#allocation3], %s1954_s13 }
 0x771   : > { %p2318_p2 = pnand %p2321_p1, %p2619_p6 }
 0x773   : > { %2503 = dma.done.wait (!%p2318_p2), %s1955_s28, 32  }
 0x774   : > { %2505 = vsyncadd (!%p2318_p2), %s1955_s28, 4294967264  ;;  %p19_p3 = scmp.ge.s32.totalorder %s2602_s15, 4   ;;  %s3088_s30 = smov %s2512_s10 }
 0x775   : > { %s3089_s10 = smov %s2516_s11  ;;  %s3090_s11 = smov %s2613_s18 }
 0x776   : > { %s3091_s12 = smov %s2602_s15  ;;  %21 = sbr.rel (!%p19_p3) target bundleno = 3 (0x3), region = 94 }
 0x77d   :  { %1960 = vsyncpa [#allocation3], 1 }
 0x77e   :  { %1962 = vsyncpa [#allocation3 + $0x1], 1 }

// kernel: tpu_custom_call.1
= control target key start
LH: loop header
LB: loop body
LE: loop exit
PB: predicated region body
PF: predicated region fallthrough
CT: control target
= control target key end

     0   :  { %14 = vsyncpa [#allocation3], 0  ;;  %s3076_s0 = inlined_call_operand.vmem [shape: bf16[2,64,3], index: 0, kind: input, shape index: {}]   ;;  %s3077_s1 = inlined_call_operand.vmem [shape: s32[2,256,1], index: 1, kind: input, shape index: {}]   ;;  %s3078_s2 = inlined_call_operand.vmem [shape: bf16[6,16], index: 2, kind: input, shape index: {}]   ;;  %s3079_s3 = inlined_call_operand.vmem [shape: bf16[16,32], index: 3, kind: input, shape index: {}]   ;;  %s3080_s4 = inlined_call_operand.vmem [shape: bf16[32,64], index: 4, kind: input, shape index: {}]   ;;  %s3081_s5 = inlined_call_operand.vmem [shape: bf16[64,32], index: 5, kind: input, shape index: {}]   ;;  %s3082_s6 = inlined_call_operand.vmem [shape: bf16[32,16], index: 6, kind: input, shape index: {}]   ;;  %s3083_s7 = inlined_call_operand.vmem [shape: bf16[16,128], index: 7, kind: input, shape index: {}]   ;;  %s3084_s8 = inlined_call_operand.vmem [shape: f32[1,128], index: 8, kind: input, shape index: {}]   ;;  %s3085_s9 = inlined_call_operand.hbm [shape: f32[2,2,128], index: 9, kind: output, shape index: {}]  }
   0x1   :  { %16 = vsyncpa [#allocation3 + $0x1], 0  ;;  %s2577_s30 = smov 0   ;;  %s2579_s10 = smov 0  }
   0x2   :  { %s2581_s11 = smov 0   ;;  %s2583_s12 = smov 0  }
   0x3 LB: > { %s2598_s13 = sadd.s32 4294967295, %s2520_s12   ;;  %s2013_s14 = sadd.s32 4294967294, %s2520_s12   ;;  %s2520_s12 = sphi %s2583_s12, %s3091_s12   ;;  %s2516_s11 = sphi %s2581_s11, %s3090_s11   ;;  %s2512_s10 = sphi %s2579_s10, %s3089_s10   ;;  %s2508_s30 = sphi %s2577_s30, %s3088_s30  }
   0x4   : > { %s2602_s15 = sadd.s32 1, %s2520_s12   ;;  %s228_s16 = sadd.s32 1, %s2516_s11 }
   0x5   : > { %s225_s17 = ssub.s32 %s2520_s12, %s2602_s15  ;;  %p238_p0 = scmp.ne.s32.totalorder %s2516_s11, %s2512_s10 }
   0x6   : > { %p226_p1 = scmp.eq.s32.totalorder %s225_s17, 0  ;;  %p239_p2 = scmp.eq.s32.totalorder %s2598_s13, 1 }
   0x7   : > { %p244_p3 = scmp.ne.s32.totalorder %s2512_s10, %s2508_s30  ;;  %p245_p4 = scmp.eq.s32.totalorder %s2013_s14, 1 }
   0x8   : > { %s2613_s18 = scalar_select %p226_p1, %s2516_s11, %s228_s16  }
   0x9   : > { %p2615_p5 = por %p239_p2, %p238_p0  ;;  %p2619_p6 = por %p245_p4, %p244_p3 }
   0xa   : > { %p2016_p7 = scmp.ge.s32.totalorder %s2520_s12, 1  ;;  %p300_p8 = scmp.lt.s32.totalorder %s2520_s12, 3 }
   0xc   : > { %p301_p9 = pnand %p2016_p7, %p300_p8 }
   0xd   : > { %p341_p10 = scmp.lt.s32.totalorder (!%p301_p9), %s2598_s13, 1  ;;  %v2522_v0 = vmov (!%p301_p9), 0   ;;  %v392_v37 = vlaneseq (!%p301_p9)  ;;  %vm594_vm4 = vcmask (!%p301_p9), 523264   ;;  %v2523_v43 = vmov (!%p301_p9), 0.0   ;;  %s2524_s17 = smov (!%p301_p9), 3  }
   0xe   : > { %304 = sbr.rel (%p301_p9) target bundleno = 1903 (0x76f), region = 56  ;;  %2359 = vset.pattern.permute.xlu1 (!%p301_p9), %v2522_v0  ;;  %2358 = vset.pattern.permute.xlu0 (!%p301_p9), %v2522_v0  ;;  %s2526_s28 = smov (!%p301_p9), [#allocation2]  }
   0xf   : > { %v2683_v38 = vand.u32 (!%p301_p9), 127, %v392_v37 }
  0x15   : > { %s342_s21 = scalar_select %p341_p10, %s2598_s13, 1 }
  0x17   : > { %s2097_s22 = sshll.u32 %s342_s21, 8  ;;  %s2096_s26 = sshll.u32 %s342_s21, 5 }
  0x18   : > { %s2630_s25 = scalar_lea.vmem %s3077_s1, %s2097_s22  ;;  %s345_s29 = scalar_lea.vmem %s3076_s0, %s2096_s26 }
  0x19   : > { %v362_v1 = vld [vmem:[%s2630_s25 + $0x10] sm:$0xff]  ;;  %v360_v2 = vld [vmem:[%s2630_s25] sm:$0xff]  ;;  %v363_v3 = vld [vmem:[%s2630_s25 + $0x18] sm:$0xff]  ;;  %s2093_s21 = sshll.u32 %s2598_s13, 5 }
  0x1a   : > { %401 = vperm.xlu1 %2359, %v362_v1   ;;  %395 = vperm.xlu0 %2358, %v360_v2   ;;  %v361_v4 = vld [vmem:[%s2630_s25 + $0x8] sm:$0xff]  ;;  %v364_v6 = vld [vmem:[%s2630_s25 + $0x20] sm:$0xff]  ;;  %v367_v7 = vld [vmem:[%s2630_s25 + $0x38] sm:$0xff]  ;;  %s3034_s26 = scalar_lea.hbm %s3085_s9, %s2093_s21 }
  0x1b   : > { %v365_v5 = vld [vmem:[%s2630_s25 + $0x28] sm:$0xff]  ;;  %v366_v8 = vld [vmem:[%s2630_s25 + $0x30] sm:$0xff]  ;;  %v2643_v9 = vld [vmem:[%s345_s29] sm:$0xff]  }
  0x1c   : > { %v2645_v10 = vld [vmem:[%s345_s29 + $0x8] sm:$0xff]   ;;  %v2647_v11 = vld [vmem:[%s345_s29 + $0x10] sm:$0xff]   ;;  %v368_v13 = vld [vmem:[%s2630_s25 + $0x40] sm:$0xff]  ;;  %2168 = vmatprep.subr.bf16.mxu0 %v2643_v9 }
  0x1d   : > { %v369_v12 = vld [vmem:[%s2630_s25 + $0x48] sm:$0xff]  ;;  %2169 = vmatpush3.bf16.msra.mxu0 %v2643_v9  ;;  %v2654_v14 = vld [vmem:[%s345_s29 + $0x18] sm:$0xff]   ;;  %v370_v16 = vld [vmem:[%s2630_s25 + $0x50] sm:$0xff]  ;;  %s338_s29 = sand.u32 1, %s2512_s10  }
  0x1e   : > { %404 = vperm.xlu1 %2359, %v363_v3   ;;  %398 = vperm.xlu0 %2358, %v361_v4   ;;  %v371_v15 = vld [vmem:[%s2630_s25 + $0x58] sm:$0xff]  ;;  %v373_v17 = vld [vmem:[%s2630_s25 + $0x68] sm:$0xff]  ;;  %v372_v18 = vld [vmem:[%s2630_s25 + $0x60] sm:$0xff]  ;;  %s2017_s14 = sshll.u32 %s338_s29, 1  ;;  %s1929_s27 = scalar_lea.sflag [#allocation3], %s338_s29 }
  0x1f   : > { %2170 = vmatprep.subr.bf16.mxu0 %v2645_v10  ;;  %v375_v19 = vld [vmem:[%s2630_s25 + $0x78] sm:$0xff]  ;;  %v374_v20 = vld [vmem:[%s2630_s25 + $0x70] sm:$0xff]  ;;  %v377_v21 = vld [vmem:[%s2630_s25 + $0x88] sm:$0xff]  ;;  %s340_s22 = scalar_lea.vmem [#allocation2], %s2017_s14  ;;  %s2462_s14 = sshll.u32 %s2526_s28, 4  ;;  %s2463_s14 = int_to_ptr.vmem [resolvable:$false] %s2462_s14 }
  0x20   : > { %v376_v22 = vld [vmem:[%s2630_s25 + $0x80] sm:$0xff]  ;;  %v379_v23 = vld [vmem:[%s2630_s25 + $0x98] sm:$0xff]  ;;  %v378_v24 = vld [vmem:[%s2630_s25 + $0x90] sm:$0xff]  ;;  %s1942_s23 = sshll.u32 %s340_s22, 4  ;;  %s2464_s16 = scalar_lea.vmem %s2463_s14, 64  ;;  %s3036_s23 = int_to_ptr.vmem [resolvable:$true] %s1942_s23 }
  0x21   : > { %2171 = vmatpush3.bf16.msra.mxu0 %v2645_v10  ;;  %v381_v25 = vld [vmem:[%s2630_s25 + $0xa8] sm:$0xff]  ;;  %v380_v26 = vld [vmem:[%s2630_s25 + $0xa0] sm:$0xff]  ;;  %v383_v27 = vld [vmem:[%s2630_s25 + $0xb8] sm:$0xff]  ;;  %s2458_s13 = scalar_lea.vmem %s3036_s23, 32  ;;  %p2465_p0 = scmp.lt.s32.totalorder %s3036_s23, %s2463_s14 }
  0x22   : > { %410 = vperm.xlu1 %2359, %v365_v5   ;;  %407 = vperm.xlu0 %2358, %v364_v6   ;;  %v382_v28 = vld [vmem:[%s2630_s25 + $0xb0] sm:$0xff]  ;;  %v385_v29 = vld [vmem:[%s2630_s25 + $0xc8] sm:$0xff]  ;;  %v384_v30 = vld [vmem:[%s2630_s25 + $0xc0] sm:$0xff]  ;;  %p2459_p11 = scmp.ne.s32.totalorder %s3036_s23, %s2458_s13  ;;  %p2466_p1 = scmp.lt.s32.totalorder %s2464_s16, %s2458_s13 }
  0x23   : > { %2172 = vmatprep.subr.bf16.mxu0 %v2647_v11  ;;  %v387_v31 = vld [vmem:[%s2630_s25 + $0xd8] sm:$0xff]  ;;  %v386_v32 = vld [vmem:[%s2630_s25 + $0xd0] sm:$0xff]  ;;  %v389_v33 = vld [vmem:[%s2630_s25 + $0xe8] sm:$0xff] }
  0x24   : > { %v388_v34 = vld [vmem:[%s2630_s25 + $0xe0] sm:$0xff]  ;;  %v391_v35 = vld [vmem:[%s2630_s25 + $0xf8] sm:$0xff]  ;;  %v390_v36 = vld [vmem:[%s2630_s25 + $0xf0] sm:$0xff]  ;;  %p2460_p12 = pnand %p2459_p11, %p2615_p5  ;;  %p2467_p2 = por %p2466_p1, %p2465_p0 }
  0x25   : > { %2173 = vmatpush3.bf16.msra.mxu0 %v2647_v11 }
  0x26   : > { %416 = vperm.xlu1 %2359, %v367_v7   ;;  %413 = vperm.xlu0 %2358, %v366_v8   ;;  %p2461_p13 = pneg %p2460_p12 }
  0x27   : > { %2174 = vmatprep.subr.bf16.mxu0 %v2654_v14 }
  0x28   : > { %p2468_p3 = pnand %p2467_p2, %p2461_p13 }
  0x29   : > { %2175 = vmatpush3.bf16.msra.mxu0 %v2654_v14 }
  0x2a   : > { %422 = vperm.xlu1 %2359, %v369_v12   ;;  %419 = vperm.xlu0 %2358, %v368_v13  }
  0x2e   : > { %428 = vperm.xlu1 %2359, %v371_v15   ;;  %425 = vperm.xlu0 %2358, %v370_v16  }
  0x32   : > { %434 = vperm.xlu1 %2359, %v373_v17   ;;  %431 = vperm.xlu0 %2358, %v372_v18  }
  0x36   : > { %440 = vperm.xlu1 %2359, %v375_v19   ;;  %437 = vperm.xlu0 %2358, %v374_v20  }
  0x3a   : > { %446 = vperm.xlu1 %2359, %v377_v21   ;;  %443 = vperm.xlu0 %2358, %v376_v22  }
  0x3e   : > { %452 = vperm.xlu1 %2359, %v379_v23   ;;  %449 = vperm.xlu0 %2358, %v378_v24  }
  0x42   : > { %458 = vperm.xlu1 %2359, %v381_v25   ;;  %455 = vperm.xlu0 %2358, %v380_v26  }
  0x46   : > { %464 = vperm.xlu1 %2359, %v383_v27   ;;  %461 = vperm.xlu0 %2358, %v382_v28  }
  0x4a   : > { %470 = vperm.xlu1 %2359, %v385_v29   ;;  %467 = vperm.xlu0 %2358, %v384_v30  }
  0x4e   : > { %476 = vperm.xlu1 %2359, %v387_v31   ;;  %473 = vperm.xlu0 %2358, %v386_v32  }
  0x52   : > { %482 = vperm.xlu1 %2359, %v389_v33   ;;  %479 = vperm.xlu0 %2358, %v388_v34  }
  0x56   : > { %488 = vperm.xlu1 %2359, %v391_v35   ;;  %485 = vperm.xlu0 %2358, %v390_v36  }
  0x99   : > { %v402_v39 = vpop.permute.xlu1 %401  ;;  %v396_v40 = vpop.permute.xlu0 %395 }
  0x9a   : > { %vm492_vm0 = vcmp.eq.s32.totalorder %v2683_v38, %v402_v39  ;;  %vm490_vm1 = vcmp.eq.s32.totalorder %v2683_v38, %v396_v40 }
  0x9b   : > { %v524_v44 = vsel %vm492_vm0, 1.0, %v2523_v43  ;;  %v522_v45 = vsel %vm490_vm1, 1.0, %v2523_v43 }
  0x9d   : > { %v405_v41 = vpop.permute.xlu1 %404  ;;  %v399_v42 = vpop.permute.xlu0 %398 }
  0x9e   : > { %vm493_vm2 = vcmp.eq.s32.totalorder %v2683_v38, %v405_v41  ;;  %vm491_vm3 = vcmp.eq.s32.totalorder %v2683_v38, %v399_v42 }
  0x9f   : > { %v525_v46 = vsel %vm493_vm2, 1.0, %v2523_v43  ;;  %v523_v47 = vsel %vm491_vm3, 1.0, %v2523_v43 }
  0xa0   : > { %v555_v48 = vpack.c.bf16 %v525_v46, %v524_v44  ;;  %v554_v49 = vpack.c.bf16 %v523_v47, %v522_v45 }
  0xa1   : > { %v411_v50 = vpop.permute.xlu1 %410  ;;  %v408_v51 = vpop.permute.xlu0 %407 }
  0xa2   : > { %vm495_vm5 = vcmp.eq.s32.totalorder %v2683_v38, %v411_v50  ;;  %vm494_vm6 = vcmp.eq.s32.totalorder %v2683_v38, %v408_v51  ;;  %2176 = vmatprep.mubr.msk.bf16.mxu0 %vm594_vm4, %v554_v49 }
  0xa3   : > { %v527_v52 = vsel %vm495_vm5, 1.0, %v2523_v43  ;;  %v526_v53 = vsel %vm494_vm6, 1.0, %v2523_v43  ;;  %2177 = vmatmul.mubr.msk.bf16.vlgmr.msra.gmra.mrb[0].mxu0 %vm594_vm4, %v555_v48 }
  0xa4   : > { %v556_v54 = vpack.c.bf16 %v527_v52, %v526_v53 }
  0xa5   : > { %v417_v55 = vpop.permute.xlu1 %416  ;;  %v414_v56 = vpop.permute.xlu0 %413 }
  0xa6   : > { %vm497_vm7 = vcmp.eq.s32.totalorder %v2683_v38, %v417_v55  ;;  %vm496_vm8 = vcmp.eq.s32.totalorder %v2683_v38, %v414_v56  ;;  %2180 = vmatprep.mubr.msk.bf16.mxu0 %vm594_vm4, %v556_v54 }
  0xa7   : > { %v529_v57 = vsel %vm497_vm7, 1.0, %v2523_v43  ;;  %v528_v58 = vsel %vm496_vm8, 1.0, %v2523_v43 }
  0xa8   : > { %v557_v59 = vpack.c.bf16 %v529_v57, %v528_v58 }
  0xa9   : > { %v423_v60 = vpop.permute.xlu1 %422  ;;  %v420_v61 = vpop.permute.xlu0 %419 }
  0xaa   : > { %vm499_vm9 = vcmp.eq.s32.totalorder %v2683_v38, %v423_v60  ;;  %vm498_vm10 = vcmp.eq.s32.totalorder %v2683_v38, %v420_v61 }
  0xab   : > { %v531_v62 = vsel %vm499_vm9, 1.0, %v2523_v43  ;;  %v530_v63 = vsel %vm498_vm10, 1.0, %v2523_v43  ;;  %2181 = vmatmul.mubr.msk.bf16.gmra.mrb[4].mxu0 %vm594_vm4, %v557_v59 }
  0xac   : > { %v558_v0 = vpack.c.bf16 %v531_v62, %v530_v63  ;;  %v1021_v62 = vld [vmem:[%s3078_s2] sm:$0x7] }
  0xad   : > { %v429_v1 = vpop.permute.xlu1 %428  ;;  %v426_v2 = vpop.permute.xlu0 %425 }
  0xae   : > { %vm501_vm11 = vcmp.eq.s32.totalorder %v2683_v38, %v429_v1  ;;  %vm500_vm12 = vcmp.eq.s32.totalorder %v2683_v38, %v426_v2  ;;  %2184 = vmatprep.mubr.msk.bf16.mxu0 %vm594_vm4, %v558_v0  ;;  %v2769_v0 = vunpack.c.l.bf16 %v2645_v10  ;;  %v2775_v1 = vunpack.c.l.bf16 %v2643_v9 }
  0xaf   : > { %v533_v3 = vsel %vm501_vm11, 1.0, %v2523_v43  ;;  %v532_v4 = vsel %vm500_vm12, 1.0, %v2523_v43  ;;  %v2778_v2 = vunpack.c.h.bf16 %v2643_v9 }
  0xb0   : > { %v559_v5 = vpack.c.bf16 %v533_v3, %v532_v4 }
  0xb1   : > { %v435_v6 = vpop.permute.xlu1 %434  ;;  %v432_v7 = vpop.permute.xlu0 %431 }
  0xb2   : > { %vm503_vm13 = vcmp.eq.s32.totalorder %v2683_v38, %v435_v6  ;;  %vm502_vm14 = vcmp.eq.s32.totalorder %v2683_v38, %v432_v7 }
  0xb3   : > { %v535_v8 = vsel %vm503_vm13, 1.0, %v2523_v43  ;;  %v534_v12 = vsel %vm502_vm14, 1.0, %v2523_v43  ;;  %2185 = vmatmul.mubr.msk.bf16.gmra.mrb[8].mxu0 %vm594_vm4, %v559_v5 }
  0xb4   : > { %v560_v13 = vpack.c.bf16 %v535_v8, %v534_v12 }
  0xb5   : > { %v441_v15 = vpop.permute.xlu1 %440  ;;  %v438_v16 = vpop.permute.xlu0 %437 }
  0xb6   : > { %vm505_vm15 = vcmp.eq.s32.totalorder %v2683_v38, %v441_v15  ;;  %vm504_vm0 = vcmp.eq.s32.totalorder %v2683_v38, %v438_v16  ;;  %2188 = vmatprep.mubr.msk.bf16.mxu0 %vm594_vm4, %v560_v13 }
  0xb7   : > { %v537_v17 = vsel %vm505_vm15, 1.0, %v2523_v43  ;;  %v536_v18 = vsel %vm504_vm0, 1.0, %v2523_v43 }
  0xb8   : > { %v561_v19 = vpack.c.bf16 %v537_v17, %v536_v18 }
  0xb9   : > { %v447_v20 = vpop.permute.xlu1 %446  ;;  %v444_v21 = vpop.permute.xlu0 %443 }
  0xba   : > { %vm507_vm1 = vcmp.eq.s32.totalorder %v2683_v38, %v447_v20  ;;  %vm506_vm2 = vcmp.eq.s32.totalorder %v2683_v38, %v444_v21 }
  0xbb   : > { %v539_v22 = vsel %vm507_vm1, 1.0, %v2523_v43  ;;  %v538_v23 = vsel %vm506_vm2, 1.0, %v2523_v43  ;;  %2189 = vmatmul.mubr.msk.bf16.gmra.mrb[12].mxu0 %vm594_vm4, %v561_v19  ;;  %vm1071_vm2 = vcmask 1042432  }
  0xbc   : > { %v562_v24 = vpack.c.bf16 %v539_v22, %v538_v23  ;;  %2314 = vmatprep.subr.msk.bf16.mxu1 %vm1071_vm2, %v1021_v62  ;;  %v1073_v63 = vsel %vm1071_vm2, %v1021_v62, 0 }
  0xbd   : > { %v453_v25 = vpop.permute.xlu1 %452  ;;  %v450_v26 = vpop.permute.xlu0 %449  ;;  %2209 = vmatpush3.bf16.msra.mxu1 %v1073_v63 }
  0xbe   : > { %vm509_vm3 = vcmp.eq.s32.totalorder %v2683_v38, %v453_v25  ;;  %vm508_vm5 = vcmp.eq.s32.totalorder %v2683_v38, %v450_v26  ;;  %2192 = vmatprep.mubr.msk.bf16.mxu0 %vm594_vm4, %v562_v24 }
  0xbf   : > { %v541_v27 = vsel %vm509_vm3, 1.0, %v2523_v43  ;;  %v540_v28 = vsel %vm508_vm5, 1.0, %v2523_v43  ;;  %vm972_vm3 = vcmask 23552   ;;  %vm1022_vm5 = vcmask 48128  }
  0xc0   : > { %v563_v29 = vpack.c.bf16 %v541_v27, %v540_v28 }
  0xc1   : > { %v459_v30 = vpop.permute.xlu1 %458  ;;  %v456_v31 = vpop.permute.xlu0 %455 }
  0xc2   : > { %vm511_vm6 = vcmp.eq.s32.totalorder %v2683_v38, %v459_v30  ;;  %vm510_vm7 = vcmp.eq.s32.totalorder %v2683_v38, %v456_v31 }
  0xc3   : > { %v543_v32 = vsel %vm511_vm6, 1.0, %v2523_v43  ;;  %v542_v33 = vsel %vm510_vm7, 1.0, %v2523_v43  ;;  %2193 = vmatmul.mubr.msk.bf16.gmra.mrb[16].mxu0 %vm594_vm4, %v563_v29  ;;  %vm1292_vm6 = vcmask 130048   ;;  %vm1534_vm7 = vcmask 261120  }
  0xc4   : > { %v564_v34 = vpack.c.bf16 %v543_v32, %v542_v33 }
  0xc5   : > { %v465_v35 = vpop.permute.xlu1 %464  ;;  %v462_v36 = vpop.permute.xlu0 %461 }
  0xc6   : > { %vm513_vm8 = vcmp.eq.s32.totalorder %v2683_v38, %v465_v35  ;;  %vm512_vm9 = vcmp.eq.s32.totalorder %v2683_v38, %v462_v36  ;;  %2196 = vmatprep.mubr.msk.bf16.mxu0 %vm594_vm4, %v564_v34 }
  0xc7   : > { %v545_v37 = vsel %vm513_vm8, 1.0, %v2523_v43  ;;  %v544_v39 = vsel %vm512_vm9, 1.0, %v2523_v43  ;;  %vm2525_vm8 = vmmov 0   ;;  %vm1736_vm9 = vcmask 1041409  }
  0xc8   : > { %v565_v40 = vpack.c.bf16 %v545_v37, %v544_v39 }
  0xc9   : > { %v471_v41 = vpop.permute.xlu1 %470  ;;  %v468_v42 = vpop.permute.xlu0 %467 }
  0xca   : > { %vm515_vm10 = vcmp.eq.s32.totalorder %v2683_v38, %v471_v41  ;;  %vm514_vm11 = vcmp.eq.s32.totalorder %v2683_v38, %v468_v42 }
  0xcb   : > { %v547_v44 = vsel %vm515_vm10, 1.0, %v2523_v43  ;;  %v546_v45 = vsel %vm514_vm11, 1.0, %v2523_v43  ;;  %2197 = vmatmul.mubr.msk.bf16.gmra.mrb[20].mxu0 %vm594_vm4, %v565_v40 }
  0xcc   : > { %v566_v46 = vpack.c.bf16 %v547_v44, %v546_v45 }
  0xcd   : > { %v477_v47 = vpop.permute.xlu1 %476  ;;  %v474_v48 = vpop.permute.xlu0 %473 }
  0xce   : > { %vm517_vm12 = vcmp.eq.s32.totalorder %v2683_v38, %v477_v47  ;;  %vm516_vm13 = vcmp.eq.s32.totalorder %v2683_v38, %v474_v48  ;;  %2200 = vmatprep.mubr.msk.bf16.mxu0 %vm594_vm4, %v566_v46  ;;  %v2803_v47 = vunpack.c.l.bf16 %v2654_v14  ;;  %v2806_v48 = vunpack.c.h.bf16 %v2654_v14 }
  0xcf   : > { %v549_v49 = vsel %vm517_vm12, 1.0, %v2523_v43  ;;  %v548_v50 = vsel %vm516_vm13, 1.0, %v2523_v43 }
  0xd0   : > { %v567_v51 = vpack.c.bf16 %v549_v49, %v548_v50  ;;  %v2810_v49 = vunpack.c.l.bf16 %v2647_v11  ;;  %v2813_v50 = vunpack.c.h.bf16 %v2647_v11 }
  0xd1   : > { %v483_v52 = vpop.permute.xlu1 %482  ;;  %v480_v53 = vpop.permute.xlu0 %479 }
  0xd2   : > { %vm519_vm14 = vcmp.eq.s32.totalorder %v2683_v38, %v483_v52  ;;  %vm518_vm15 = vcmp.eq.s32.totalorder %v2683_v38, %v480_v53 }
  0xd3   : > { %v551_v54 = vsel %vm519_vm14, 1.0, %v2523_v43  ;;  %v550_v55 = vsel %vm518_vm15, 1.0, %v2523_v43  ;;  %2201 = vmatmul.mubr.msk.bf16.gmra.mrb[24].mxu0 %vm594_vm4, %v567_v51 }
  0xd4   : > { %v568_v56 = vpack.c.bf16 %v551_v54, %v550_v55 }
  0xd5   : > { %v489_v57 = vpop.permute.xlu1 %488  ;;  %v486_v58 = vpop.permute.xlu0 %485 }
  0xd6   : > { %vm521_vm0 = vcmp.eq.s32.totalorder %v2683_v38, %v489_v57  ;;  %vm520_vm1 = vcmp.eq.s32.totalorder %v2683_v38, %v486_v58  ;;  %2204 = vmatprep.mubr.msk.bf16.mxu0 %vm594_vm4, %v568_v56  ;;  %v2772_v38 = vunpack.c.h.bf16 %v2645_v10 }
  0xd7   : > { %v553_v59 = vsel %vm521_vm0, 1.0, %v2523_v43  ;;  %v552_v60 = vsel %vm520_vm1, 1.0, %v2523_v43 }
  0xd8   : > { %v569_v61 = vpack.c.bf16 %v553_v59, %v552_v60 }
  0xdb   : > { %2205 = vmatmul.mubr.msk.bf16.gmra.mrb[28].mxu0 %vm594_vm4, %v569_v61 }
 0x176   : > { %v2178_v3 = vpop.f32.mrb[0].mxu0 }
 0x177   : > { %v677_v4 = vpop.f32.mrb[1].mxu0  ;;  %v814_v6 = vsub.f32 %v2178_v3, %v2769_v0 }
 0x178   : > { %v2179_v5 = vpop.f32.mrb[2].mxu0  ;;  %v812_v12 = vsub.f32 %v677_v4, %v2775_v1 }
 0x179   : > { %v815_v7 = vsub.f32 %v2179_v5, %v2772_v38  ;;  %v680_v8 = vpop.f32.mrb[3].mxu0 }
 0x17a   : > { %v813_v13 = vsub.f32 %v680_v8, %v2778_v2 }
 0x17b   : > { %v2365_v10 = vpack.i.bf16 %v815_v7, %v814_v6 }
 0x17c   : > { %v2360_v15 = vpack.i.bf16 %v813_v13, %v812_v12 }
 0x17d   : > { %2366 = vrot.lane.b32.xlu1 %v2365_v10, %s2524_s17 }
 0x17e   : > { %2361 = vrot.lane.b32.xlu0 %v2360_v15, %s2524_s17  ;;  %v2182_v9 = vpop.f32.mrb[4].mxu0 }
 0x17f   : > { %v693_v16 = vpop.f32.mrb[5].mxu0  ;;  %v818_v18 = vsub.f32 %v2182_v9, %v2769_v0 }
 0x180   : > { %v2183_v17 = vpop.f32.mrb[6].mxu0  ;;  %v816_v21 = vsub.f32 %v693_v16, %v2775_v1 }
 0x181   : > { %v819_v19 = vsub.f32 %v2183_v17, %v2772_v38  ;;  %v696_v20 = vpop.f32.mrb[7].mxu0 }
 0x182   : > { %v817_v22 = vsub.f32 %v696_v20, %v2778_v2 }
 0x183   : > { %v2375_v23 = vpack.i.bf16 %v819_v19, %v818_v18 }
 0x184   : > { %v2370_v24 = vpack.i.bf16 %v817_v22, %v816_v21  ;;  %v2444_v22 = vld [vmem:[%s3079_s3] sm:$0xff]  }
 0x185   : > { %2376 = vrot.lane.b32.xlu1 %v2375_v23, %s2524_s17  ;;  %2242 = vmatprep.subr.bf16.mxu1 %v2444_v22 }
 0x186   : > { %2371 = vrot.lane.b32.xlu0 %v2370_v24, %s2524_s17  ;;  %v2186_v25 = vpop.f32.mrb[8].mxu0 }
 0x187   : > { %v709_v26 = vpop.f32.mrb[9].mxu0  ;;  %v822_v28 = vsub.f32 %v2186_v25, %v2769_v0 }
 0x188   : > { %v2187_v27 = vpop.f32.mrb[10].mxu0  ;;  %v820_v31 = vsub.f32 %v709_v26, %v2775_v1 }
 0x189   : > { %v823_v29 = vsub.f32 %v2187_v27, %v2772_v38  ;;  %v712_v30 = vpop.f32.mrb[11].mxu0 }
 0x18a   : > { %v821_v32 = vsub.f32 %v712_v30, %v2778_v2 }
 0x18b   : > { %v2385_v33 = vpack.i.bf16 %v823_v29, %v822_v28 }
 0x18c   : > { %v2380_v34 = vpack.i.bf16 %v821_v32, %v820_v31 }
 0x18d   : > { %2386 = vrot.lane.b32.xlu1 %v2385_v33, %s2524_s17 }
 0x18e   : > { %2381 = vrot.lane.b32.xlu0 %v2380_v34, %s2524_s17  ;;  %v2190_v35 = vpop.f32.mrb[12].mxu0 }
 0x18f   : > { %v725_v36 = vpop.f32.mrb[13].mxu0  ;;  %v826_v39 = vsub.f32 %v2190_v35, %v2769_v0 }
 0x190   : > { %v2191_v37 = vpop.f32.mrb[14].mxu0  ;;  %v824_v42 = vsub.f32 %v725_v36, %v2775_v1 }
 0x191   : > { %v827_v40 = vsub.f32 %v2191_v37, %v2772_v38  ;;  %v728_v41 = vpop.f32.mrb[15].mxu0 }
 0x192   : > { %v825_v44 = vsub.f32 %v728_v41, %v2778_v2 }
 0x193   : > { %v2395_v45 = vpack.i.bf16 %v827_v40, %v826_v39 }
 0x194   : > { %v2390_v46 = vpack.i.bf16 %v825_v44, %v824_v42 }
 0x195   : > { %2396 = vrot.lane.b32.xlu1 %v2395_v45, %s2524_s17 }
 0x196   : > { %2391 = vrot.lane.b32.xlu0 %v2390_v46, %s2524_s17  ;;  %v2194_v51 = vpop.f32.mrb[16].mxu0 }
 0x197   : > { %v741_v52 = vpop.f32.mrb[17].mxu0  ;;  %v830_v54 = vsub.f32 %v2194_v51, %v2803_v47 }
 0x198   : > { %v2195_v53 = vpop.f32.mrb[18].mxu0  ;;  %v828_v14 = vsub.f32 %v741_v52, %v2810_v49 }
 0x199   : > { %v831_v55 = vsub.f32 %v2195_v53, %v2806_v48  ;;  %v744_v56 = vpop.f32.mrb[19].mxu0 }
 0x19a   : > { %v829_v57 = vsub.f32 %v744_v56, %v2813_v50 }
 0x19b   : > { %v2405_v58 = vpack.i.bf16 %v831_v55, %v830_v54 }
 0x19c   : > { %v2400_v59 = vpack.i.bf16 %v829_v57, %v828_v14 }
 0x19d   : > { %2406 = vrot.lane.b32.xlu1 %v2405_v58, %s2524_s17 }
 0x19e   : > { %2401 = vrot.lane.b32.xlu0 %v2400_v59, %s2524_s17  ;;  %v2198_v11 = vpop.f32.mrb[20].mxu0 }
 0x19f   : > { %v757_v60 = vpop.f32.mrb[21].mxu0  ;;  %v834_v62 = vsub.f32 %v2198_v11, %v2803_v47 }
 0x1a0   : > { %v2199_v61 = vpop.f32.mrb[22].mxu0  ;;  %v832_v4 = vsub.f32 %v757_v60, %v2810_v49 }
 0x1a1   : > { %v835_v63 = vsub.f32 %v2199_v61, %v2806_v48  ;;  %v760_v3 = vpop.f32.mrb[23].mxu0 }
 0x1a2   : > { %v833_v5 = vsub.f32 %v760_v3, %v2813_v50 }
 0x1a3   : > { %v2415_v6 = vpack.i.bf16 %v835_v63, %v834_v62 }
 0x1a4   : > { %v2410_v7 = vpack.i.bf16 %v833_v5, %v832_v4 }
 0x1a5   : > { %2416 = vrot.lane.b32.xlu1 %v2415_v6, %s2524_s17 }
 0x1a6   : > { %2411 = vrot.lane.b32.xlu0 %v2410_v7, %s2524_s17  ;;  %v2202_v8 = vpop.f32.mrb[24].mxu0 }
 0x1a7   : > { %v773_v12 = vpop.f32.mrb[25].mxu0  ;;  %v838_v10 = vsub.f32 %v2202_v8, %v2803_v47 }
 0x1a8   : > { %v2203_v13 = vpop.f32.mrb[26].mxu0  ;;  %v836_v16 = vsub.f32 %v773_v12, %v2810_v49 }
 0x1a9   : > { %v839_v15 = vsub.f32 %v2203_v13, %v2806_v48  ;;  %v776_v9 = vpop.f32.mrb[27].mxu0 }
 0x1aa   : > { %v837_v17 = vsub.f32 %v776_v9, %v2813_v50 }
 0x1ab   : > { %v2425_v18 = vpack.i.bf16 %v839_v15, %v838_v10 }
 0x1ac   : > { %v2420_v19 = vpack.i.bf16 %v837_v17, %v836_v16 }
 0x1ad   : > { %2426 = vrot.lane.b32.xlu1 %v2425_v18, %s2524_s17 }
 0x1ae   : > { %2421 = vrot.lane.b32.xlu0 %v2420_v19, %s2524_s17  ;;  %v2206_v20 = vpop.f32.mrb[28].mxu0 }
 0x1af   : > { %v789_v21 = vpop.f32.mrb[29].mxu0  ;;  %v842_v24 = vsub.f32 %v2206_v20, %v2803_v47 }
 0x1b0   : > { %v2207_v23 = vpop.f32.mrb[30].mxu0  ;;  %v840_v27 = vsub.f32 %v789_v21, %v2810_v49 }
 0x1b1   : > { %v843_v25 = vsub.f32 %v2207_v23, %v2806_v48  ;;  %v792_v26 = vpop.f32.mrb[31].mxu0 }
 0x1b2   : > { %v841_v28 = vsub.f32 %v792_v26, %v2813_v50 }
 0x1b3   : > { %v2435_v29 = vpack.i.bf16 %v843_v25, %v842_v24 }
 0x1b4   : > { %v2430_v30 = vpack.i.bf16 %v841_v28, %v840_v27 }
 0x1b5   : > { %2436 = vrot.lane.b32.xlu1 %v2435_v29, %s2524_s17 }
 0x1b6   : > { %2431 = vrot.lane.b32.xlu0 %v2430_v30, %s2524_s17 }
 0x1ef   : > { %v2367_v31 = vpop.permute.xlu1 %2366 }
 0x1f0   : > { %v2369_v32 = vunpack.i.h.bf16 %v2367_v31  ;;  %v2368_v33 = vunpack.i.l.bf16 %v2367_v31  ;;  %v2362_v34 = vpop.permute.xlu0 %2361 }
 0x1f1   : > { %v2364_v35 = vunpack.i.h.bf16 %v2362_v34  ;;  %v2363_v36 = vunpack.i.l.bf16 %v2362_v34 }
 0x1f2   : > { %v976_v37 = vsel %vm972_vm3, %v2772_v38, %v2369_v32  ;;  %v975_v39 = vsel %vm972_vm3, %v2769_v0, %v2368_v33 }
 0x1f3   : > { %v973_v40 = vsel %vm972_vm3, %v2775_v1, %v2363_v36  ;;  %v974_v41 = vsel %vm972_vm3, %v2778_v2, %v2364_v35  ;;  %v1006_v44 = vpack.c.bf16 %v976_v37, %v975_v39 }
 0x1f4   : > { %v1005_v42 = vpack.c.bf16 %v974_v41, %v973_v40 }
 0x1f6   : > { %2210 = vmatprep.mubr.msk.bf16.mxu1 %vm1022_vm5, %v1005_v42 }
 0x1f7   : > { %2211 = vmatmul.mubr.msk.bf16.vlgmr.msra.gmra.mrb[0].mxu1 %vm1022_vm5, %v1006_v44  ;;  %v2377_v45 = vpop.permute.xlu1 %2376 }
 0x1f8   : > { %v2379_v46 = vunpack.i.h.bf16 %v2377_v45  ;;  %v2378_v51 = vunpack.i.l.bf16 %v2377_v45  ;;  %v2372_v52 = vpop.permute.xlu0 %2371  ;;  %2243 = vmatpush3.bf16.msra.mxu1 %v2444_v22 }
 0x1f9   : > { %v2374_v53 = vunpack.i.h.bf16 %v2372_v52  ;;  %v2373_v54 = vunpack.i.l.bf16 %v2372_v52 }
 0x1fa   : > { %v980_v55 = vsel %vm972_vm3, %v2772_v38, %v2379_v46  ;;  %v979_v56 = vsel %vm972_vm3, %v2769_v0, %v2378_v51 }
 0x1fb   : > { %v978_v14 = vsel %vm972_vm3, %v2778_v2, %v2374_v53  ;;  %v977_v57 = vsel %vm972_vm3, %v2775_v1, %v2373_v54  ;;  %v1008_v59 = vpack.c.bf16 %v980_v55, %v979_v56 }
 0x1fc   : > { %v1007_v58 = vpack.c.bf16 %v978_v14, %v977_v57 }
 0x1fe   : > { %2214 = vmatprep.mubr.msk.bf16.mxu1 %vm1022_vm5, %v1007_v58 }
 0x1ff   : > { %2215 = vmatmul.mubr.msk.bf16.gmra.mrb[4].mxu1 %vm1022_vm5, %v1008_v59  ;;  %v2387_v11 = vpop.permute.xlu1 %2386 }
 0x200   : > { %v2389_v60 = vunpack.i.h.bf16 %v2387_v11  ;;  %v2388_v61 = vunpack.i.l.bf16 %v2387_v11  ;;  %v2382_v62 = vpop.permute.xlu0 %2381 }
 0x201   : > { %v2384_v63 = vunpack.i.h.bf16 %v2382_v62  ;;  %v2383_v3 = vunpack.i.l.bf16 %v2382_v62 }
 0x202   : > { %v984_v4 = vsel %vm972_vm3, %v2772_v38, %v2389_v60  ;;  %v983_v5 = vsel %vm972_vm3, %v2769_v0, %v2388_v61 }
 0x203   : > { %v982_v6 = vsel %vm972_vm3, %v2778_v2, %v2384_v63  ;;  %v981_v7 = vsel %vm972_vm3, %v2775_v1, %v2383_v3  ;;  %v1010_v12 = vpack.c.bf16 %v984_v4, %v983_v5 }
 0x204   : > { %v1009_v8 = vpack.c.bf16 %v982_v6, %v981_v7 }
 0x206   : > { %2218 = vmatprep.mubr.msk.bf16.mxu1 %vm1022_vm5, %v1009_v8 }
 0x207   : > { %2219 = vmatmul.mubr.msk.bf16.gmra.mrb[8].mxu1 %vm1022_vm5, %v1010_v12  ;;  %v2397_v13 = vpop.permute.xlu1 %2396 }
 0x208   : > { %v2399_v10 = vunpack.i.h.bf16 %v2397_v13  ;;  %v2398_v15 = vunpack.i.l.bf16 %v2397_v13  ;;  %v2392_v9 = vpop.permute.xlu0 %2391 }
 0x209   : > { %v2394_v16 = vunpack.i.h.bf16 %v2392_v9  ;;  %v2393_v17 = vunpack.i.l.bf16 %v2392_v9 }
 0x20a   : > { %v988_v18 = vsel %vm972_vm3, %v2772_v38, %v2399_v10  ;;  %v987_v19 = vsel %vm972_vm3, %v2769_v0, %v2398_v15  ;;  %v2445_v10 = vld [vmem:[%s3080_s4] sm:$0xff]  }
 0x20b   : > { %v986_v20 = vsel %vm972_vm3, %v2778_v2, %v2394_v16  ;;  %v985_v21 = vsel %vm972_vm3, %v2775_v1, %v2393_v17  ;;  %v1012_v23 = vpack.c.bf16 %v988_v18, %v987_v19  ;;  %2276 = vmatprep.subr.bf16.mxu0 %v2445_v10 }
 0x20c   : > { %v1011_v22 = vpack.c.bf16 %v986_v20, %v985_v21  ;;  %2277 = vmatpush3.bf16.msra.mxu0 %v2445_v10 }
 0x20e   : > { %2222 = vmatprep.mubr.msk.bf16.mxu1 %vm1022_vm5, %v1011_v22 }
 0x20f   : > { %2223 = vmatmul.mubr.msk.bf16.gmra.mrb[12].mxu1 %vm1022_vm5, %v1012_v23  ;;  %v2407_v24 = vpop.permute.xlu1 %2406 }
 0x210   : > { %v2409_v25 = vunpack.i.h.bf16 %v2407_v24  ;;  %v2408_v26 = vunpack.i.l.bf16 %v2407_v24  ;;  %v2402_v27 = vpop.permute.xlu0 %2401 }
 0x211   : > { %v2404_v38 = vunpack.i.h.bf16 %v2402_v27  ;;  %v2403_v28 = vunpack.i.l.bf16 %v2402_v27 }
 0x212   : > { %v992_v0 = vsel %vm972_vm3, %v2806_v48, %v2409_v25  ;;  %v991_v2 = vsel %vm972_vm3, %v2803_v47, %v2408_v26 }
 0x213   : > { %v990_v1 = vsel %vm972_vm3, %v2813_v50, %v2404_v38  ;;  %v989_v29 = vsel %vm972_vm3, %v2810_v49, %v2403_v28  ;;  %v1014_v31 = vpack.c.bf16 %v992_v0, %v991_v2 }
 0x214   : > { %v1013_v30 = vpack.c.bf16 %v990_v1, %v989_v29 }
 0x216   : > { %2226 = vmatprep.mubr.msk.bf16.mxu1 %vm1022_vm5, %v1013_v30 }
 0x217   : > { %2227 = vmatmul.mubr.msk.bf16.gmra.mrb[16].mxu1 %vm1022_vm5, %v1014_v31  ;;  %v2417_v32 = vpop.permute.xlu1 %2416 }
 0x218   : > { %v2419_v33 = vunpack.i.h.bf16 %v2417_v32  ;;  %v2418_v34 = vunpack.i.l.bf16 %v2417_v32  ;;  %v2412_v35 = vpop.permute.xlu0 %2411 }
 0x219   : > { %v2414_v36 = vunpack.i.h.bf16 %v2412_v35  ;;  %v2413_v37 = vunpack.i.l.bf16 %v2412_v35 }
 0x21a   : > { %v996_v39 = vsel %vm972_vm3, %v2806_v48, %v2419_v33  ;;  %v995_v40 = vsel %vm972_vm3, %v2803_v47, %v2418_v34 }
 0x21b   : > { %v994_v41 = vsel %vm972_vm3, %v2813_v50, %v2414_v36  ;;  %v993_v42 = vsel %vm972_vm3, %v2810_v49, %v2413_v37  ;;  %v1016_v45 = vpack.c.bf16 %v996_v39, %v995_v40 }
 0x21c   : > { %v1015_v44 = vpack.c.bf16 %v994_v41, %v993_v42 }
 0x21e   : > { %2230 = vmatprep.mubr.msk.bf16.mxu1 %vm1022_vm5, %v1015_v44 }
 0x21f   : > { %2231 = vmatmul.mubr.msk.bf16.gmra.mrb[20].mxu1 %vm1022_vm5, %v1016_v45  ;;  %v2427_v46 = vpop.permute.xlu1 %2426 }
 0x220   : > { %v2429_v51 = vunpack.i.h.bf16 %v2427_v46  ;;  %v2428_v52 = vunpack.i.l.bf16 %v2427_v46  ;;  %v2422_v53 = vpop.permute.xlu0 %2421 }
 0x221   : > { %v2424_v54 = vunpack.i.h.bf16 %v2422_v53  ;;  %v2423_v55 = vunpack.i.l.bf16 %v2422_v53 }
 0x222   : > { %v1000_v56 = vsel %vm972_vm3, %v2806_v48, %v2429_v51  ;;  %v999_v14 = vsel %vm972_vm3, %v2803_v47, %v2428_v52 }
 0x223   : > { %v998_v57 = vsel %vm972_vm3, %v2813_v50, %v2424_v54  ;;  %v997_v58 = vsel %vm972_vm3, %v2810_v49, %v2423_v55  ;;  %v1018_v11 = vpack.c.bf16 %v1000_v56, %v999_v14 }
 0x224   : > { %v1017_v59 = vpack.c.bf16 %v998_v57, %v997_v58 }
 0x226   : > { %2234 = vmatprep.mubr.msk.bf16.mxu1 %vm1022_vm5, %v1017_v59 }
 0x227   : > { %2235 = vmatmul.mubr.msk.bf16.gmra.mrb[24].mxu1 %vm1022_vm5, %v1018_v11  ;;  %v2437_v60 = vpop.permute.xlu1 %2436 }
 0x228   : > { %v2439_v61 = vunpack.i.h.bf16 %v2437_v60  ;;  %v2438_v62 = vunpack.i.l.bf16 %v2437_v60  ;;  %v2432_v63 = vpop.permute.xlu0 %2431 }
 0x229   : > { %v2434_v3 = vunpack.i.h.bf16 %v2432_v63  ;;  %v2433_v4 = vunpack.i.l.bf16 %v2432_v63 }
 0x22a   : > { %v1004_v5 = vsel %vm972_vm3, %v2806_v48, %v2439_v61  ;;  %v1003_v6 = vsel %vm972_vm3, %v2803_v47, %v2438_v62 }
 0x22b   : > { %v1002_v7 = vsel %vm972_vm3, %v2813_v50, %v2434_v3  ;;  %v1001_v8 = vsel %vm972_vm3, %v2810_v49, %v2433_v4  ;;  %v1020_v13 = vpack.c.bf16 %v1004_v5, %v1003_v6 }
 0x22c   : > { %v1019_v12 = vpack.c.bf16 %v1002_v7, %v1001_v8 }
 0x22e   : > { %2238 = vmatprep.mubr.msk.bf16.mxu1 %vm1022_vm5, %v1019_v12 }
 0x22f   : > { %2239 = vmatmul.mubr.msk.bf16.gmra.mrb[28].mxu1 %vm1022_vm5, %v1020_v13 }
 0x2ca   : > { %v2212_v48 = vpop.f32.mrb[0].mxu1 }
 0x2cb   : > { %v1109_v47 = vpop.f32.mrb[1].mxu1  ;;  %v1238_v9 = vmax.f32 %v2212_v48, 0.0 }
 0x2cc   : > { %v2213_v15 = vpop.f32.mrb[2].mxu1  ;;  %v1236_v17 = vmax.f32 %v1109_v47, 0.0 }
 0x2cd   : > { %v1239_v50 = vmax.f32 %v2213_v15, 0.0  ;;  %v1112_v16 = vpop.f32.mrb[3].mxu1 }
 0x2ce   : > { %v1237_v49 = vmax.f32 %v1112_v16, 0.0 }
 0x2cf   : > { %v1269_v18 = vpack.c.bf16 %v1239_v50, %v1238_v9 }
 0x2d0   : > { %v1268_v19 = vpack.c.bf16 %v1237_v49, %v1236_v17 }
 0x2d2   : > { %v2216_v20 = vpop.f32.mrb[4].mxu1  ;;  %2244 = vmatprep.mubr.msk.bf16.mxu1 %vm1292_vm6, %v1268_v19 }
 0x2d3   : > { %v1125_v21 = vpop.f32.mrb[5].mxu1  ;;  %2245 = vmatmul.mubr.msk.bf16.vlgmr.msra.gmra.mrb[32].mxu1 %vm1292_vm6, %v1269_v18  ;;  %v1242_v23 = vmax.f32 %v2216_v20, 0.0 }
 0x2d4   : > { %v2217_v22 = vpop.f32.mrb[6].mxu1  ;;  %v1240_v26 = vmax.f32 %v1125_v21, 0.0 }
 0x2d5   : > { %v1243_v24 = vmax.f32 %v2217_v22, 0.0  ;;  %v1128_v25 = vpop.f32.mrb[7].mxu1 }
 0x2d6   : > { %v1241_v27 = vmax.f32 %v1128_v25, 0.0 }
 0x2d7   : > { %v1271_v38 = vpack.c.bf16 %v1243_v24, %v1242_v23 }
 0x2d8   : > { %v1270_v28 = vpack.c.bf16 %v1241_v27, %v1240_v26  ;;  %v2446_v27 = vld [vmem:[%s3080_s4 + $0x8] sm:$0xff]  }
 0x2d9   : > { %2278 = vmatprep.subr.bf16.mxu0 %v2446_v27 }
 0x2da   : > { %v2220_v0 = vpop.f32.mrb[8].mxu1  ;;  %2248 = vmatprep.mubr.msk.bf16.mxu1 %vm1292_vm6, %v1270_v28  ;;  %2279 = vmatpush3.bf16.msra.mxu0 %v2446_v27 }
 0x2db   : > { %v1141_v2 = vpop.f32.mrb[9].mxu1  ;;  %2249 = vmatmul.mubr.msk.bf16.gmra.mrb[36].mxu1 %vm1292_vm6, %v1271_v38  ;;  %v1246_v29 = vmax.f32 %v2220_v0, 0.0  ;;  %2288 = vmatprep.subr.bf16.mxu0 %v2523_v43 }
 0x2dc   : > { %v2221_v1 = vpop.f32.mrb[10].mxu1  ;;  %v1244_v32 = vmax.f32 %v1141_v2, 0.0 }
 0x2dd   : > { %v1247_v30 = vmax.f32 %v2221_v1, 0.0  ;;  %v1144_v31 = vpop.f32.mrb[11].mxu1 }
 0x2de   : > { %v1245_v33 = vmax.f32 %v1144_v31, 0.0 }
 0x2df   : > { %v1273_v34 = vpack.c.bf16 %v1247_v30, %v1246_v29 }
 0x2e0   : > { %v1272_v35 = vpack.c.bf16 %v1245_v33, %v1244_v32 }
 0x2e2   : > { %v2224_v36 = vpop.f32.mrb[12].mxu1  ;;  %2252 = vmatprep.mubr.msk.bf16.mxu1 %vm1292_vm6, %v1272_v35 }
 0x2e3   : > { %v1157_v37 = vpop.f32.mrb[13].mxu1  ;;  %2253 = vmatmul.mubr.msk.bf16.gmra.mrb[40].mxu1 %vm1292_vm6, %v1273_v34  ;;  %v1250_v40 = vmax.f32 %v2224_v36, 0.0 }
 0x2e4   : > { %v2225_v39 = vpop.f32.mrb[14].mxu1  ;;  %v1248_v44 = vmax.f32 %v1157_v37, 0.0 }
 0x2e5   : > { %v1251_v41 = vmax.f32 %v2225_v39, 0.0  ;;  %v1160_v42 = vpop.f32.mrb[15].mxu1 }
 0x2e6   : > { %v1249_v45 = vmax.f32 %v1160_v42, 0.0 }
 0x2e7   : > { %v1275_v46 = vpack.c.bf16 %v1251_v41, %v1250_v40 }
 0x2e8   : > { %v1274_v51 = vpack.c.bf16 %v1249_v45, %v1248_v44 }
 0x2ea   : > { %v2228_v52 = vpop.f32.mrb[16].mxu1  ;;  %2256 = vmatprep.mubr.msk.bf16.mxu1 %vm1292_vm6, %v1274_v51 }
 0x2eb   : > { %v1173_v53 = vpop.f32.mrb[17].mxu1  ;;  %2257 = vmatmul.mubr.msk.bf16.gmra.mrb[44].mxu1 %vm1292_vm6, %v1275_v46  ;;  %v1254_v55 = vmax.f32 %v2228_v52, 0.0 }
 0x2ec   : > { %v2229_v54 = vpop.f32.mrb[18].mxu1  ;;  %v1252_v57 = vmax.f32 %v1173_v53, 0.0 }
 0x2ed   : > { %v1255_v56 = vmax.f32 %v2229_v54, 0.0  ;;  %v1176_v14 = vpop.f32.mrb[19].mxu1 }
 0x2ee   : > { %v1253_v58 = vmax.f32 %v1176_v14, 0.0 }
 0x2ef   : > { %v1277_v59 = vpack.c.bf16 %v1255_v56, %v1254_v55 }
 0x2f0   : > { %v1276_v11 = vpack.c.bf16 %v1253_v58, %v1252_v57 }
 0x2f2   : > { %v2232_v60 = vpop.f32.mrb[20].mxu1  ;;  %2260 = vmatprep.mubr.msk.bf16.mxu1 %vm1292_vm6, %v1276_v11 }
 0x2f3   : > { %v1189_v61 = vpop.f32.mrb[21].mxu1  ;;  %2261 = vmatmul.mubr.msk.bf16.gmra.mrb[48].mxu1 %vm1292_vm6, %v1277_v59  ;;  %v1258_v63 = vmax.f32 %v2232_v60, 0.0 }
 0x2f4   : > { %v2233_v62 = vpop.f32.mrb[22].mxu1  ;;  %v1256_v5 = vmax.f32 %v1189_v61, 0.0 }
 0x2f5   : > { %v1259_v3 = vmax.f32 %v2233_v62, 0.0  ;;  %v1192_v4 = vpop.f32.mrb[23].mxu1 }
 0x2f6   : > { %v1257_v6 = vmax.f32 %v1192_v4, 0.0 }
 0x2f7   : > { %v1279_v7 = vpack.c.bf16 %v1259_v3, %v1258_v63 }
 0x2f8   : > { %v1278_v8 = vpack.c.bf16 %v1257_v6, %v1256_v5 }
 0x2fa   : > { %v2236_v12 = vpop.f32.mrb[24].mxu1  ;;  %2264 = vmatprep.mubr.msk.bf16.mxu1 %vm1292_vm6, %v1278_v8 }
 0x2fb   : > { %v1205_v13 = vpop.f32.mrb[25].mxu1  ;;  %2265 = vmatmul.mubr.msk.bf16.gmra.mrb[52].mxu1 %vm1292_vm6, %v1279_v7  ;;  %v1262_v48 = vmax.f32 %v2236_v12, 0.0 }
 0x2fc   : > { %v2237_v10 = vpop.f32.mrb[26].mxu1  ;;  %v1260_v9 = vmax.f32 %v1205_v13, 0.0 }
 0x2fd   : > { %v1263_v47 = vmax.f32 %v2237_v10, 0.0  ;;  %v1208_v15 = vpop.f32.mrb[27].mxu1 }
 0x2fe   : > { %v1261_v50 = vmax.f32 %v1208_v15, 0.0 }
 0x2ff   : > { %v1281_v16 = vpack.c.bf16 %v1263_v47, %v1262_v48 }
 0x300   : > { %v1280_v17 = vpack.c.bf16 %v1261_v50, %v1260_v9 }
 0x302   : > { %v2240_v49 = vpop.f32.mrb[28].mxu1  ;;  %2268 = vmatprep.mubr.msk.bf16.mxu1 %vm1292_vm6, %v1280_v17 }
 0x303   : > { %v1221_v18 = vpop.f32.mrb[29].mxu1  ;;  %2269 = vmatmul.mubr.msk.bf16.gmra.mrb[56].mxu1 %vm1292_vm6, %v1281_v16  ;;  %v1266_v20 = vmax.f32 %v2240_v49, 0.0 }
 0x304   : > { %v2241_v19 = vpop.f32.mrb[30].mxu1  ;;  %v1264_v23 = vmax.f32 %v1221_v18, 0.0 }
 0x305   : > { %v1267_v21 = vmax.f32 %v2241_v19, 0.0  ;;  %v1224_v22 = vpop.f32.mrb[31].mxu1 }
 0x306   : > { %v1265_v24 = vmax.f32 %v1224_v22, 0.0 }
 0x307   : > { %v1283_v25 = vpack.c.bf16 %v1267_v21, %v1266_v20 }
 0x308   : > { %v1282_v26 = vpack.c.bf16 %v1265_v24, %v1264_v23 }
 0x30a   : > { %2272 = vmatprep.mubr.msk.bf16.mxu1 %vm1292_vm6, %v1282_v26 }
 0x30b   : > { %2273 = vmatmul.mubr.msk.bf16.gmra.mrb[60].mxu1 %vm1292_vm6, %v1283_v25 }
 0x3a6   : > { %v2246_v38 = vpop.f32.mrb[32].mxu1 }
 0x3a7   : > { %v1375_v28 = vpop.f32.mrb[33].mxu1  ;;  %v1504_v1 = vmax.f32 %v2246_v38, 0.0 }
 0x3a8   : > { %v2247_v0 = vpop.f32.mrb[34].mxu1  ;;  %v1502_v29 = vmax.f32 %v1375_v28, 0.0 }
 0x3a9   : > { %v1378_v2 = vpop.f32.mrb[35].mxu1  ;;  %v1505_v31 = vmax.f32 %v2247_v0, 0.0  ;;  %v1549_v37 = vsel %vm1534_vm7, %v1504_v1, -inf }
 0x3aa   : > { %v1503_v34 = vmax.f32 %v1378_v2, 0.0  ;;  %v1535_v42 = vsel %vm1534_vm7, %v1502_v29, -inf }
 0x3ab   : > { %v1556_v51 = vsel %vm1534_vm7, %v1505_v31, -inf }
 0x3ac   : > { %v1542_v54 = vsel %vm1534_vm7, %v1503_v34, -inf }
 0x3ae   : > { %v2250_v30 = vpop.f32.mrb[36].mxu1 }
 0x3af   : > { %v1508_v32 = vmax.f32 %v2250_v30, 0.0  ;;  %v1391_v33 = vpop.f32.mrb[37].mxu1 }
 0x3b0   : > { %v1506_v35 = vmax.f32 %v1391_v33, 0.0  ;;  %v2251_v36 = vpop.f32.mrb[38].mxu1 }
 0x3b1   : > { %v1550_v39 = vsel %vm1534_vm7, %v1508_v32, -inf  ;;  %v1509_v40 = vmax.f32 %v2251_v36, 0.0  ;;  %v1394_v41 = vpop.f32.mrb[39].mxu1 }
 0x3b2   : > { %v1551_v44 = vmax.f32 %v1549_v37, %v1550_v39  ;;  %v1536_v45 = vsel %vm1534_vm7, %v1506_v35, -inf  ;;  %v1507_v46 = vmax.f32 %v1394_v41, 0.0 }
 0x3b3   : > { %v1537_v52 = vmax.f32 %v1535_v42, %v1536_v45  ;;  %v1557_v53 = vsel %vm1534_vm7, %v1509_v40, -inf }
 0x3b4   : > { %v1558_v55 = vmax.f32 %v1556_v51, %v1557_v53  ;;  %v1543_v56 = vsel %vm1534_vm7, %v1507_v46, -inf }
 0x3b5   : > { %v1544_v14 = vmax.f32 %v1542_v54, %v1543_v56 }
 0x3b6   : > { %v2254_v57 = vpop.f32.mrb[40].mxu1 }
 0x3b7   : > { %v1512_v58 = vmax.f32 %v2254_v57, 0.0  ;;  %v1407_v59 = vpop.f32.mrb[41].mxu1 }
 0x3b8   : > { %v1510_v11 = vmax.f32 %v1407_v59, 0.0  ;;  %v2255_v60 = vpop.f32.mrb[42].mxu1 }
 0x3b9   : > { %v1552_v61 = vsel %vm1534_vm7, %v1512_v58, -inf  ;;  %v1513_v62 = vmax.f32 %v2255_v60, 0.0  ;;  %v1410_v63 = vpop.f32.mrb[43].mxu1 }
 0x3ba   : > { %v1553_v3 = vmax.f32 %v1551_v44, %v1552_v61  ;;  %v1538_v4 = vsel %vm1534_vm7, %v1510_v11, -inf  ;;  %v1511_v5 = vmax.f32 %v1410_v63, 0.0 }
 0x3bb   : > { %v1539_v6 = vmax.f32 %v1537_v52, %v1538_v4  ;;  %v1559_v7 = vsel %vm1534_vm7, %v1513_v62, -inf }
 0x3bc   : > { %v1560_v8 = vmax.f32 %v1558_v55, %v1559_v7  ;;  %v1545_v12 = vsel %vm1534_vm7, %v1511_v5, -inf }
 0x3bd   : > { %v1546_v13 = vmax.f32 %v1544_v14, %v1545_v12 }
 0x3be   : > { %v2258_v10 = vpop.f32.mrb[44].mxu1 }
 0x3bf   : > { %v1516_v48 = vmax.f32 %v2258_v10, 0.0  ;;  %v1423_v47 = vpop.f32.mrb[45].mxu1 }
 0x3c0   : > { %v1514_v15 = vmax.f32 %v1423_v47, 0.0  ;;  %v2259_v9 = vpop.f32.mrb[46].mxu1 }
 0x3c1   : > { %v1554_v50 = vsel %vm1534_vm7, %v1516_v48, -inf  ;;  %v1517_v16 = vmax.f32 %v2259_v9, 0.0  ;;  %v1426_v17 = vpop.f32.mrb[47].mxu1 }
 0x3c2   : > { %v1555_v49 = vmax.f32 %v1553_v3, %v1554_v50  ;;  %v1540_v18 = vsel %vm1534_vm7, %v1514_v15, -inf  ;;  %v1515_v19 = vmax.f32 %v1426_v17, 0.0 }
 0x3c3   : > { %v1541_v20 = vmax.f32 %v1539_v6, %v1540_v18  ;;  %v1561_v21 = vsel %vm1534_vm7, %v1517_v16, -inf }
 0x3c4   : > { %v1562_v22 = vmax.f32 %v1560_v8, %v1561_v21  ;;  %v1547_v23 = vsel %vm1534_vm7, %v1515_v19, -inf }
 0x3c5   : > { %v1548_v24 = vmax.f32 %v1546_v13, %v1547_v23 }
 0x3c6   : > { %v1592_v25 = vpack.c.bf16 %v1562_v22, %v1555_v49  ;;  %v2262_v26 = vpop.f32.mrb[48].mxu1 }
 0x3c7   : > { %v1591_v27 = vpack.c.bf16 %v1548_v24, %v1541_v20  ;;  %v1439_v38 = vpop.f32.mrb[49].mxu1  ;;  %v1520_v2 = vmax.f32 %v2262_v26, 0.0  ;;  %v2447_v26 = vld [vmem:[%s3081_s5] sm:$0xff]  }
 0x3c8   : > { %v2263_v28 = vpop.f32.mrb[50].mxu1  ;;  %v1518_v1 = vmax.f32 %v1439_v38, 0.0  ;;  %v2449_v38 = vld [vmem:[%s3081_s5 + $0x10] sm:$0xff]  }
 0x3c9   : > { %v1442_v0 = vpop.f32.mrb[51].mxu1  ;;  %2280 = vmatprep.mubr.msk.bf16.mxu0 %vm1534_vm7, %v1591_v27  ;;  %v1521_v30 = vmax.f32 %v2263_v28, 0.0  ;;  %v1577_v36 = vsel %vm1534_vm7, %v1520_v2, -inf  ;;  %v2448_v27 = vld [vmem:[%s3081_s5 + $0x8] sm:$0xff]   ;;  %v2450_v28 = vld [vmem:[%s3081_s5 + $0x18] sm:$0xff]  }
 0x3ca   : > { %2281 = vmatmul.mubr.msk.bf16.vlgmr.msra.gmra.mrb[32].mxu0 %vm1534_vm7, %v1592_v25  ;;  %v1519_v33 = vmax.f32 %v1442_v0, 0.0  ;;  %v1563_v41 = vsel %vm1534_vm7, %v1518_v1, -inf }
 0x3cb   : > { %v1584_v46 = vsel %vm1534_vm7, %v1521_v30, -inf  ;;  %2289 = vmatpush3.bf16.msra.mxu0 %v2447_v26 }
 0x3cc   : > { %v1570_v53 = vsel %vm1534_vm7, %v1519_v33, -inf  ;;  %2290 = vmatprep.subr.bf16.mxu0 %v2523_v43 }
 0x3ce   : > { %v2266_v29 = vpop.f32.mrb[52].mxu1 }
 0x3cf   : > { %v1524_v31 = vmax.f32 %v2266_v29, 0.0  ;;  %v1455_v32 = vpop.f32.mrb[53].mxu1  ;;  %2291 = vmatpush3.bf16.msra.mxu0 %v2448_v27 }
 0x3d0   : > { %v1522_v34 = vmax.f32 %v1455_v32, 0.0  ;;  %v2267_v35 = vpop.f32.mrb[54].mxu1  ;;  %2292 = vmatprep.subr.bf16.mxu0 %v2523_v43 }
 0x3d1   : > { %v1578_v37 = vsel %vm1534_vm7, %v1524_v31, -inf  ;;  %v1525_v39 = vmax.f32 %v2267_v35, 0.0  ;;  %v1458_v40 = vpop.f32.mrb[55].mxu1 }
 0x3d2   : > { %v1579_v42 = vmax.f32 %v1577_v36, %v1578_v37  ;;  %v1564_v44 = vsel %vm1534_vm7, %v1522_v34, -inf  ;;  %v1523_v45 = vmax.f32 %v1458_v40, 0.0 }
 0x3d3   : > { %v1565_v51 = vmax.f32 %v1563_v41, %v1564_v44  ;;  %v1585_v52 = vsel %vm1534_vm7, %v1525_v39, -inf  ;;  %2293 = vmatpush3.bf16.msra.mxu0 %v2449_v38 }
 0x3d4   : > { %v1586_v54 = vmax.f32 %v1584_v46, %v1585_v52  ;;  %v1571_v55 = vsel %vm1534_vm7, %v1523_v45, -inf  ;;  %2294 = vmatprep.subr.bf16.mxu0 %v2523_v43 }
 0x3d5   : > { %v1572_v56 = vmax.f32 %v1570_v53, %v1571_v55 }
 0x3d6   : > { %v2270_v14 = vpop.f32.mrb[56].mxu1 }
 0x3d7   : > { %v1528_v57 = vmax.f32 %v2270_v14, 0.0  ;;  %v1471_v58 = vpop.f32.mrb[57].mxu1  ;;  %2295 = vmatpush3.bf16.msra.mxu0 %v2450_v28 }
 0x3d8   : > { %v1526_v59 = vmax.f32 %v1471_v58, 0.0  ;;  %v2271_v11 = vpop.f32.mrb[58].mxu1  ;;  %2300 = vmatprep.subr.bf16.mxu0 %v2523_v43 }
 0x3d9   : > { %v1580_v60 = vsel %vm1534_vm7, %v1528_v57, -inf  ;;  %v1529_v61 = vmax.f32 %v2271_v11, 0.0  ;;  %v1474_v62 = vpop.f32.mrb[59].mxu1 }
 0x3da   : > { %v1581_v63 = vmax.f32 %v1579_v42, %v1580_v60  ;;  %v1566_v3 = vsel %vm1534_vm7, %v1526_v59, -inf  ;;  %v1527_v4 = vmax.f32 %v1474_v62, 0.0 }
 0x3db   : > { %v1567_v5 = vmax.f32 %v1565_v51, %v1566_v3  ;;  %v1587_v6 = vsel %vm1534_vm7, %v1529_v61, -inf }
 0x3dc   : > { %v1588_v7 = vmax.f32 %v1586_v54, %v1587_v6  ;;  %v1573_v8 = vsel %vm1534_vm7, %v1527_v4, -inf }
 0x3dd   : > { %v1574_v12 = vmax.f32 %v1572_v56, %v1573_v8 }
 0x3de   : > { %v2274_v13 = vpop.f32.mrb[60].mxu1 }
 0x3df   : > { %v1532_v10 = vmax.f32 %v2274_v13, 0.0  ;;  %v1487_v48 = vpop.f32.mrb[61].mxu1 }
 0x3e0   : > { %v1530_v47 = vmax.f32 %v1487_v48, 0.0  ;;  %v2275_v15 = vpop.f32.mrb[62].mxu1 }
 0x3e1   : > { %v1582_v9 = vsel %vm1534_vm7, %v1532_v10, -inf  ;;  %v1533_v50 = vmax.f32 %v2275_v15, 0.0  ;;  %v1490_v16 = vpop.f32.mrb[63].mxu1 }
 0x3e2   : > { %v1583_v17 = vmax.f32 %v1581_v63, %v1582_v9  ;;  %v1568_v49 = vsel %vm1534_vm7, %v1530_v47, -inf  ;;  %v1531_v18 = vmax.f32 %v1490_v16, 0.0 }
 0x3e3   : > { %v1569_v19 = vmax.f32 %v1567_v5, %v1568_v49  ;;  %v1589_v20 = vsel %vm1534_vm7, %v1533_v50, -inf  ;;  %v2451_v50 = vld [vmem:[%s3082_s6] sm:$0xff]  }
 0x3e4   : > { %v1590_v21 = vmax.f32 %v1588_v7, %v1589_v20  ;;  %v1575_v22 = vsel %vm1534_vm7, %v1531_v18, -inf }
 0x3e5   : > { %v1576_v23 = vmax.f32 %v1574_v12, %v1575_v22 }
 0x3e6   : > { %v1594_v24 = vpack.c.bf16 %v1590_v21, %v1583_v17  ;;  %v2452_v17 = vld [vmem:[%s3082_s6 + $0x8] sm:$0xff]   ;;  %v2453_v21 = vld [vmem:[%s3083_s7] sm:$0xff]  }
 0x3e7   : > { %v1593_v25 = vpack.c.bf16 %v1576_v23, %v1569_v19 }
 0x3e9   : > { %2284 = vmatprep.mubr.msk.bf16.mxu0 %vm1534_vm7, %v1593_v25 }
 0x3ea   : > { %2285 = vmatmul.mubr.msk.bf16.gmra.mrb[36].mxu0 %vm1534_vm7, %v1594_v24 }
 0x3eb   : > { %2296 = vmatprep.mubr.msk.bf16.mxu0 %vm2525_vm8, %v2523_v43 }
 0x49d   : > { %v2282_v0 = vpop.f32.mrb[32].mxu0 }
 0x49e   : > { %v1690_v2 = vmax.f32 %v2282_v0, 0.0  ;;  %v1657_v1 = vpop.f32.mrb[33].mxu0  ;;  %v2089_v0 = vld [vmem:[%s3084_s8] ss:$0 sm:$0xff] }
 0x49f   : > { %v1688_v29 = vmax.f32 %v1657_v1, 0.0  ;;  %v2283_v30 = vpop.f32.mrb[34].mxu0 }
 0x4a0   : > { %v1698_v31 = vsel %vm594_vm4, %v1690_v2, -inf  ;;  %v1691_v32 = vmax.f32 %v2283_v30, 0.0  ;;  %v1660_v33 = vpop.f32.mrb[35].mxu0 }
 0x4a1   : > { %v1696_v34 = vsel %vm594_vm4, %v1688_v29, -inf  ;;  %v1689_v35 = vmax.f32 %v1660_v33, 0.0 }
 0x4a2   : > { %v1699_v36 = vmax.f32 %v1696_v34, %v1698_v31  ;;  %v1700_v37 = vsel %vm594_vm4, %v1691_v32, -inf }
 0x4a3   : > { %v1697_v39 = vsel %vm594_vm4, %v1689_v35, -inf }
 0x4a4   : > { %v1701_v40 = vmax.f32 %v1697_v39, %v1700_v37 }
 0x4a6   : > { %v1702_v41 = vmax.f32 %v1699_v36, %v1701_v40 }
 0x4a8   : > { %v1703_v42 = vrot.slane %v1702_v41, 4 }
 0x4aa   : > { %v1704_v45 = vmax.f32 %v1702_v41, %v1703_v42 }
 0x4ac   : > { %v1705_v58 = vrot.slane %v1704_v45, 2 }
 0x4ae   : > { %v1706_v62 = vmax.f32 %v1704_v45, %v1705_v58 }
 0x4b0   : > { %v1707_v4 = vrot.slane %v1706_v62, 1 }
 0x4b2   : > { %v1708_v7 = vmax.f32 %v1706_v62, %v1707_v4 }
 0x4b4   : > { %v1722_v13 = vpack.c.bf16 %v1708_v7, %v1708_v7 }
 0x4b6   : > { %v1734_v47 = vunpack.c.l.b16 %v1722_v13 }
 0x4bd   : > { %v2286_v44 = vpop.f32.mrb[36].mxu0 }
 0x4be   : > { %v1694_v46 = vmax.f32 %v2286_v44, 0.0  ;;  %v1673_v51 = vpop.f32.mrb[37].mxu0 }
 0x4bf   : > { %v1692_v52 = vmax.f32 %v1673_v51, 0.0  ;;  %v2287_v53 = vpop.f32.mrb[38].mxu0 }
 0x4c0   : > { %v1711_v54 = vsel %vm594_vm4, %v1694_v46, -inf  ;;  %v1695_v55 = vmax.f32 %v2287_v53, 0.0  ;;  %v1676_v56 = vpop.f32.mrb[39].mxu0 }
 0x4c1   : > { %v1709_v14 = vsel %vm594_vm4, %v1692_v52, -inf  ;;  %v1693_v57 = vmax.f32 %v1676_v56, 0.0 }
 0x4c2   : > { %v1712_v59 = vmax.f32 %v1709_v14, %v1711_v54  ;;  %v1713_v11 = vsel %vm594_vm4, %v1695_v55, -inf }
 0x4c3   : > { %v1710_v60 = vsel %vm594_vm4, %v1693_v57, -inf }
 0x4c4   : > { %v1714_v61 = vmax.f32 %v1710_v60, %v1713_v11 }
 0x4c6   : > { %v1715_v63 = vmax.f32 %v1712_v59, %v1714_v61 }
 0x4c8   : > { %v1716_v3 = vrot.slane %v1715_v63, 4 }
 0x4ca   : > { %v1717_v5 = vmax.f32 %v1715_v63, %v1716_v3 }
 0x4cc   : > { %v1718_v6 = vrot.slane %v1717_v5, 2 }
 0x4ce   : > { %v1719_v8 = vmax.f32 %v1717_v5, %v1718_v6 }
 0x4d0   : > { %v1720_v12 = vrot.slane %v1719_v8, 1 }
 0x4d2   : > { %v1721_v10 = vmax.f32 %v1719_v8, %v1720_v12 }
 0x4d4   : > { %v1723_v48 = vpack.c.bf16 %v1721_v10, %v1721_v10 }
 0x4d6   : > { %v1735_v15 = vunpack.c.l.b16 %v1723_v48 }
 0x4d8   : > { %v1737_v9 = vsel %vm1736_vm9, %v1735_v15, %v1734_v47 }
 0x4d9   : > { %v1738_v16 = vpack.c.b16 %v1737_v9, %v1737_v9 }
 0x4db   : > { %2297 = vmatmul.mubr.msk.bf16.vlgmr.msra.gmra.mrb[40].mxu0 %vm594_vm4, %v1738_v16 }
 0x4dc   : > { %2301 = vmatpush3.bf16.msra.mxu0 %v2451_v50  ;;  %2304 = vmatprep.mubr.msk.bf16.mxu0 %vm2525_vm8, %v2523_v43 }
 0x4dd   : > { %2302 = vmatprep.subr.bf16.mxu0 %v2523_v43 }
 0x4e0   : > { %2303 = vmatpush3.bf16.msra.mxu0 %v2452_v17 }
 0x4e1   : > { %2308 = vmatprep.subr.bf16.mxu0 %v2523_v43 }
 0x5ae   : > { %v1800_v49 = vpop.f32.mrb[40].mxu0 }
 0x5af   : > { %v1806_v18 = vmax.f32 %v1800_v49, 0.0  ;;  %v2298_v19 = vpop.f32.mrb[41].mxu0 }
 0x5b0   : > { %v1803_v20 = vpop.f32.mrb[42].mxu0 }
 0x5b1   : > { %v1807_v22 = vpack.c.bf16 %v1806_v18, %v1806_v18  ;;  %v2299_v23 = vpop.f32.mrb[43].mxu0 }
 0x5b3   : > { %2305 = vmatmul.mubr.msk.bf16.vlgmr.msra.gmra.mrb[44].mxu0 %vm1534_vm7, %v1807_v22 }
 0x5b4   : > { %2309 = vmatpush3.bf16.msra.mxu0 %v2453_v21  ;;  %2310 = vmatprep.mubr.msk.bf16.mxu0 %vm2525_vm8, %v2523_v43 }
 0x686   : > { %v1861_v24 = vpop.f32.mrb[44].mxu0 }
 0x687   : > { %v1867_v25 = vmax.f32 %v1861_v24, 0.0  ;;  %v2306_v26 = vpop.f32.mrb[45].mxu0 }
 0x688   : > { %v1864_v27 = vpop.f32.mrb[46].mxu0 }
 0x689   : > { %v1868_v38 = vpack.c.bf16 %v1867_v25, %v1867_v25  ;;  %v2307_v28 = vpop.f32.mrb[47].mxu0 }
 0x68b   : > { %2311 = vmatmul.mubr.msk.bf16.vlgmr.msra.gmra.mrb[48].mxu0 %vm1292_vm6, %v1868_v38 }
 0x75e   : > { %v1921_v2 = vpop.f32.mrb[48].mxu0 }
 0x75f   : > { %v1922_v43 = vadd.f32 %v2089_v0, %v1921_v2  ;;  %v2312_v1 = vpop.f32.mrb[49].mxu0 }
 0x760   : > { %v1924_v29 = vpop.f32.mrb[50].mxu0 }
 0x761   : > { %1927 = vst [vmem:[%s340_s22] sm:$0x3] %v1922_v43  ;;  %v2313_v30 = vpop.f32.mrb[51].mxu0 }
 0x762   : > { %2471 = shalt.err (!%p2468_p3)
}
 0x763   : > { %s2472_s29 = scalar_lea.hbm %s3034_s26, 32  ;;  %s2476_s22 = scalar_lea.hbm %s3085_s9, 64 }
 0x764   : > { %p2473_p4 = scmp.ne.s32.totalorder %s3034_s26, %s2472_s29  ;;  %p2477_p9 = scmp.lt.u32.totalorder %s3034_s26, %s3085_s9 }
 0x765   : > { %p2478_p10 = scmp.lt.u32.totalorder %s2476_s22, %s2472_s29  ;;  %p2480_p12 = scmp.lt.u32.totalorder %s2472_s29, %s3034_s26 }
 0x766   : > { %p2474_p7 = pnand %p2473_p4, %p2615_p5 }
 0x767   : > { %p2479_p11 = por %p2478_p10, %p2477_p9 }
 0x768   : > { %p2475_p8 = pneg %p2474_p7 }
 0x769   : > { %p2481_p13 = por %p2480_p12, %p2479_p11 }
 0x76b   : > { %p2482_p0 = pnand %p2481_p13, %p2475_p8 }
 0x76d   : > { %2485 = shalt.err (!%p2482_p0)
}
 0x76e   : > { %2315 = dma.vmem_to_hbm [thread:$0]  (%p2615_p5), %s3036_s23, 32, %s3034_s26, %s1929_s27  }
 0x76f PF: > { %p2321_p1 = scmp.ge.s32.totalorder %s2520_s12, 2  ;;  %s1954_s13 = sand.u32 1, %s2508_s30  }
 0x770   : > { %s1955_s28 = scalar_lea.sflag [#allocation3], %s1954_s13 }
 0x771   : > { %p2318_p2 = pnand %p2321_p1, %p2619_p6 }
 0x773   : > { %2503 = dma.done.wait (!%p2318_p2), %s1955_s28, 32  }
 0x774   : > { %2505 = vsyncadd (!%p2318_p2), %s1955_s28, 4294967264  ;;  %p19_p3 = scmp.ge.s32.totalorder %s2602_s15, 4   ;;  %s3088_s30 = smov %s2512_s10 }
 0x775   : > { %s3089_s10 = smov %s2516_s11  ;;  %s3090_s11 = smov %s2613_s18 }
 0x776   : > { %s3091_s12 = smov %s2602_s15  ;;  %21 = sbr.rel (!%p19_p3) target bundleno = 3 (0x3), region = 94 }
 0x77d   :  { %1960 = vsyncpa [#allocation3], 1 }
 0x77e   :  { %1962 = vsyncpa [#allocation3 + $0x1], 1 }

</bundles_post_ra>
